<compile_context>
chip_gen: v7x
topology: tpu7x:2x2x1
jax: 0.10.0
libtpu: 0.0.40
codegen_flags: <defaults>
</compile_context>

<pallas_src>
import functools

import jax
import jax.numpy as jnp
from jax import lax
from jax.experimental import pallas as pl
from jax.experimental.pallas import tpu as pltpu

LANE = 128
SUBLANE = 8


def _round_up(x, m):
    return (x + m - 1) // m * m


def _pad2d(x, rows, cols):
    return jnp.pad(x, ((0, rows - x.shape[0]), (0, cols - x.shape[1])))


def _pick_vmem_limit():
    """Per-generation VMEM budget: ~3/4 of physical, capped at 96 MiB."""
    try:
        cap = pltpu.get_tpu_info().vmem_capacity_bytes
        return int(min(cap * 3 // 4, 96 * 1024 * 1024))
    except Exception:
        return 48 * 1024 * 1024   # safe on every generation (incl. v7x 64 MiB VMEM)


VMEM_LIMIT = _pick_vmem_limit()


# ------------------------------ Pallas kernels ------------------------------

def sage_edge_reduce_kernel(h_ref, ef_ref, ssrc_ref, sdst_ref,
                            wm_n_ref, wm_e_ref, out_ref, p_sc):
    """Per-core partial scatter sum of edge messages over this core's edge tiles.

       m_e    = W_msg_n @ h_src(e) + W_msg_e @ efeat(e)   (bias deferred)
       out[c] = sum_{e in core c tiles} one_hot(dst(e))^T m_e   (f32 accumulator)
    """
    j = pl.program_id(1)

    @pl.when(j == 0)
    def _init():
        # Project node features once per core (project-then-gather re-association).
        p_sc[...] = jnp.dot(h_ref[...], wm_n_ref[...],
                            preferred_element_type=jnp.float32).astype(jnp.bfloat16)
        out_ref[...] = jnp.zeros_like(out_ref)

    m = (jnp.dot(ssrc_ref[...], p_sc[...], preferred_element_type=jnp.float32)
         + jnp.dot(ef_ref[...], wm_e_ref[...], preferred_element_type=jnp.float32))
    # Scatter-add to destination nodes on the bf16 MXU path (one-hot exact in bf16).
    out_ref[...] += lax.dot_general(
        sdst_ref[...], m.astype(jnp.bfloat16),
        (((0,), (0,)), ((), ())), preferred_element_type=jnp.float32)


def sage_finalize_kernel(h_ref, acc_ref, invdeg_ref, bm_ref,
                         wa_h_ref, wa_n_ref, ba_ref, out_ref):
    """Combine per-core partials, apply mean + message bias, W_apply and ReLU."""
    acc = acc_ref[0]
    for c in range(1, acc_ref.shape[0]):          # static combine over cores
        acc = acc + acc_ref[c]
    invd = invdeg_ref[...]                         # (N, 1) f32
    has_edge = (invd > 0.0).astype(jnp.float32)
    # mean(core)+b_msg for deg>0; exactly 0 for isolated nodes (DGL mean semantics).
    h_neigh = acc * invd + bm_ref[...] * has_edge
    z = (jnp.dot(h_ref[...], wa_h_ref[...], preferred_element_type=jnp.float32)
         + jnp.dot(h_neigh.astype(jnp.bfloat16), wa_n_ref[...],
                   preferred_element_type=jnp.float32)
         + ba_ref[...])
    out_ref[...] = jnp.maximum(z, 0.0).astype(out_ref.dtype)


def edge_predictor_kernel(pu_ref, pv_ref, ssrc_ref, sdst_ref, b_ref, out_ref):
    """MLPPredictor gather: projections were hoisted into the wrapper (one GEMM)."""
    out_ref[...] = (jnp.dot(ssrc_ref[...], pu_ref[...], preferred_element_type=jnp.float32)
                    + jnp.dot(sdst_ref[...], pv_ref[...], preferred_element_type=jnp.float32)
                    + b_ref[...]).astype(out_ref.dtype)


# ------------------------------ wrappers ------------------------------

def sage_layer(h, ef, s_src, s_dst, inv_deg,
               wm_n, wm_e, bm, wa_h, wa_n, ba, *, edge_tile, num_cores):
    n, dp = h.shape
    e_pad = ef.shape[0]
    dout = wm_n.shape[1]
    tiles = e_pad // edge_tile
    assert tiles % num_cores == 0
    tiles_per_core = tiles // num_cores

    full2 = lambda shape: pl.BlockSpec(shape, lambda c, j: (0, 0))
    etile = lambda cols: pl.BlockSpec(
        (edge_tile, cols), lambda c, j: (c * tiles_per_core + j, 0))

    # Pass 1: megacore-parallel edge reduction -> per-core partial neighbor sums.
    partials = pl.pallas_call(
        sage_edge_reduce_kernel,
        out_shape=jax.ShapeDtypeStruct((num_cores, n, dout), jnp.float32),
        grid_spec=pltpu.PrefetchScalarGridSpec(
            num_scalar_prefetch=0,
            grid=(num_cores, tiles_per_core),
            in_specs=[
                full2((n, dp)),                 # h  (resident across edge tiles)
                etile(ef.shape[1]),             # edge features, tiled over edges
                etile(n),                       # S_src tile
                etile(n),                       # S_dst tile
                full2(wm_n.shape),              # W_msg (node half)
                full2(wm_e.shape),              # W_msg (edge half)
            ],
            out_specs=pl.BlockSpec((None, n, dout), lambda c, j: (c, 0, 0)),
            scratch_shapes=[pltpu.VMEM((n, dout), jnp.bfloat16)],   # projected nodes
        ),
        compiler_params=pltpu.CompilerParams(
            dimension_semantics=("parallel", "arbitrary"),
            vmem_limit_bytes=VMEM_LIMIT),
    )(h, ef, s_src, s_dst, wm_n, wm_e)

    # Pass 2: combine partials + node-side apply (mean, bias, W_apply, ReLU).
    full1 = lambda shape: pl.BlockSpec(shape, lambda i, _s=None: (0,) * len(shape))
    return pl.pallas_call(
        sage_finalize_kernel,
        out_shape=jax.ShapeDtypeStruct((n, dout), jnp.bfloat16),
        grid_spec=pltpu.PrefetchScalarGridSpec(
            num_scalar_prefetch=0,
            grid=(1,),
            in_specs=[
                full1((n, dp)),
                full1((num_cores, n, dout)),
                full1((n, 1)),
                full1(bm.shape),
                full1(wa_h.shape),
                full1(wa_n.shape),
                full1(ba.shape),
            ],
            out_specs=full1((n, dout)),
        ),
        compiler_params=pltpu.CompilerParams(
            dimension_semantics=("arbitrary",),
            vmem_limit_bytes=VMEM_LIMIT),
    )(h, partials, inv_deg, bm, wa_h, wa_n, ba)


def edge_predictor(pu, pv, s_src, s_dst, b, *, edge_tile):
    n, dc = pu.shape
    e_pad = s_src.shape[0]
    grid = (e_pad // edge_tile,)
    full2 = lambda shape: pl.BlockSpec(shape, lambda e: (0, 0))

    return pl.pallas_call(
        edge_predictor_kernel,
        out_shape=jax.ShapeDtypeStruct((e_pad, dc), jnp.bfloat16),   # bf16 writeback
        grid_spec=pltpu.PrefetchScalarGridSpec(
            num_scalar_prefetch=0,
            grid=grid,
            in_specs=[
                full2((n, dc)),                                  # projected src feats
                full2((n, dc)),                                  # projected dst feats
                pl.BlockSpec((edge_tile, n), lambda e: (e, 0)),  # S_src tile
                pl.BlockSpec((edge_tile, n), lambda e: (e, 0)),  # S_dst tile
                full2(b.shape),
            ],
            out_specs=pl.BlockSpec((edge_tile, dc), lambda e: (e, 0)),
        ),
        compiler_params=pltpu.CompilerParams(
            dimension_semantics=("parallel",),                   # independent tiles
            vmem_limit_bytes=VMEM_LIMIT),
    )(pu, pv, s_src, s_dst, b)


def model_forward(pp, nf_p, ef_p, s_src, s_dst, inv_deg, *, edge_tile, num_cores):
    """Model.forward: 2-layer E-GraphSAGE then per-edge MLP predictor (eval mode)."""
    h = sage_layer(nf_p, ef_p, s_src, s_dst, inv_deg,
                   pp["l1_wm_n"], pp["l1_wm_e"], pp["l1_bm"],
                   pp["l1_wa_h"], pp["l1_wa_n"], pp["l1_ba"],
                   edge_tile=edge_tile, num_cores=num_cores)
    h = sage_layer(h, ef_p, s_src, s_dst, inv_deg,
                   pp["l2_wm_n"], pp["l2_wm_e"], pp["l2_bm"],
                   pp["l2_wa_h"], pp["l2_wa_n"], pp["l2_ba"],
                   edge_tile=edge_tile, num_cores=num_cores)
    # nfeats.sum(1) in PyTorch sums the singleton middle dim -> no-op here.
    # Predictor projections hoisted out of the per-edge-tile grid (one fused GEMM).
    p_uv = jnp.dot(h, pp["pr_wuv"],
                   preferred_element_type=jnp.float32).astype(jnp.bfloat16)
    dc = pp["pr_b"].shape[1]
    pu, pv = p_uv[:, :dc], p_uv[:, dc:]
    return edge_predictor(pu, pv, s_src, s_dst, pp["pr_b"], edge_tile=edge_tile)


# ------------------------------ param / graph setup ------------------------------

def linear_init(key, fan_in, fan_out):
    """PyTorch nn.Linear default init; weight stored (in, out)."""
    kw, kb = jax.random.split(key)
    bound = 1.0 / jnp.sqrt(fan_in)
    W = jax.random.uniform(kw, (fan_in, fan_out), jnp.float32, -bound, bound)
    b = jax.random.uniform(kb, (fan_out,), jnp.float32, -bound, bound)
    return W, b


def make_params(key, ndim_in, edim, ndim_out, hidden=128, n_classes=2):
    ks = jax.random.split(key, 5)
    p = {}
    p["l1_Wmsg"], p["l1_bmsg"] = linear_init(ks[0], ndim_in + edim, hidden)
    p["l1_Wapp"], p["l1_bapp"] = linear_init(ks[1], ndim_in + hidden, hidden)
    p["l2_Wmsg"], p["l2_bmsg"] = linear_init(ks[2], hidden + edim, ndim_out)
    p["l2_Wapp"], p["l2_bapp"] = linear_init(ks[3], hidden + ndim_out, ndim_out)
    p["pred_W"], p["pred_b"] = linear_init(ks[4], 2 * ndim_out, n_classes)
    return p


def pad_params(p, ndim_in, edim, ndim_out, hidden, n_classes):
    """Split concat-Linear weights, zero-pad every dim to a lane multiple, cast bf16."""
    din = _round_up(ndim_in, LANE)
    de = _round_up(edim, LANE)
    dh = _round_up(hidden, LANE)
    do = _round_up(ndim_out, LANE)
    dc = _round_up(n_classes, LANE)

    pw = lambda w, r, c: _pad2d(w, r, c).astype(jnp.bfloat16)
    pb = lambda b, c: _pad2d(b.reshape(1, -1), 1, c).astype(jnp.float32)

    out = {}
    out["l1_wm_n"] = pw(p["l1_Wmsg"][:ndim_in], din, dh)
    out["l1_wm_e"] = pw(p["l1_Wmsg"][ndim_in:], de, dh)
    out["l1_bm"] = pb(p["l1_bmsg"], dh)
    out["l1_wa_h"] = pw(p["l1_Wapp"][:ndim_in], din, dh)
    out["l1_wa_n"] = pw(p["l1_Wapp"][ndim_in:], dh, dh)
    out["l1_ba"] = pb(p["l1_bapp"], dh)

    out["l2_wm_n"] = pw(p["l2_Wmsg"][:hidden], dh, do)
    out["l2_wm_e"] = pw(p["l2_Wmsg"][hidden:], de, do)
    out["l2_bm"] = pb(p["l2_bmsg"], do)
    out["l2_wa_h"] = pw(p["l2_Wapp"][:hidden], dh, do)
    out["l2_wa_n"] = pw(p["l2_Wapp"][hidden:], do, do)
    out["l2_ba"] = pb(p["l2_bapp"], do)

    wu = pw(p["pred_W"][:ndim_out], do, dc)
    wv = pw(p["pred_W"][ndim_out:], do, dc)
    out["pr_wuv"] = jnp.concatenate([wu, wv], axis=1)   # (do, 2*dc) fused projection
    out["pr_b"] = pb(p["pred_b"], dc)
    return out


def prepare_inputs(nfeats, efeats, src, dst, num_nodes, edge_tile, num_cores):
    """Dense one-hot structure + lane/sublane padding; bf16 for MXU operands."""
    E = src.shape[0]
    Np = _round_up(max(num_nodes, LANE), LANE)
    tiles = pl.cdiv(max(E, 1), edge_tile)
    tiles = _round_up(tiles, num_cores)
    Ep = tiles * edge_tile
    din = _round_up(nfeats.shape[1], LANE)
    de = _round_up(efeats.shape[1], LANE)

    s_src = jax.nn.one_hot(src, Np, dtype=jnp.float32)          # (E, Np)
    s_dst = jax.nn.one_hot(dst, Np, dtype=jnp.float32)
    deg = s_dst.sum(axis=0)
    inv_deg = jnp.where(deg > 0, 1.0 / jnp.maximum(deg, 1.0), 0.0).reshape(Np, 1)

    s_src = _pad2d(s_src, Ep, Np).astype(jnp.bfloat16)          # padded edge rows = 0
    s_dst = _pad2d(s_dst, Ep, Np).astype(jnp.bfloat16)
    nf_p = _pad2d(nfeats, Np, din).astype(jnp.bfloat16)
    ef_p = _pad2d(efeats, Ep, de).astype(jnp.bfloat16)
    return nf_p, ef_p, s_src, s_dst, inv_deg.astype(jnp.float32)


# ------------------------------ references (plain JAX) ------------------------------

def _mirror_layer(h, ef, ssrc, sdst, invd, wm_n, wm_e, bm, wa_h, wa_n, ba):
    """Mirror of the kernel math (same bf16 casts, f32 MXU accumulation)."""
    p = jnp.dot(h, wm_n, preferred_element_type=jnp.float32).astype(jnp.bfloat16)
    m = (jnp.dot(ssrc, p, preferred_element_type=jnp.float32)
         + jnp.dot(ef, wm_e, preferred_element_type=jnp.float32))
    acc = lax.dot_general(sdst, m.astype(jnp.bfloat16),
                          (((0,), (0,)), ((), ())), preferred_element_type=jnp.float32)
    h_neigh = acc * invd + bm * (invd > 0.0).astype(jnp.float32)
    z = (jnp.dot(h, wa_h, preferred_element_type=jnp.float32)
         + jnp.dot(h_neigh.astype(jnp.bfloat16), wa_n, preferred_element_type=jnp.float32)
         + ba)
    return jnp.maximum(z, 0.0).astype(jnp.bfloat16)


def _mirror_model(pp, nf_p, ef_p, s_src, s_dst, inv_deg):
    h = _mirror_layer(nf_p, ef_p, s_src, s_dst, inv_deg,
                      pp["l1_wm_n"], pp["l1_wm_e"], pp["l1_bm"],
                      pp["l1_wa_h"], pp["l1_wa_n"], pp["l1_ba"])
    h = _mirror_layer(h, ef_p, s_src, s_dst, inv_deg,
                      pp["l2_wm_n"], pp["l2_wm_e"], pp["l2_bm"],
                      pp["l2_wa_h"], pp["l2_wa_n"], pp["l2_ba"])
    p_uv = jnp.dot(h, pp["pr_wuv"],
                   preferred_element_type=jnp.float32).astype(jnp.bfloat16)
    dc = pp["pr_b"].shape[1]
    pu, pv = p_uv[:, :dc], p_uv[:, dc:]
    score = (jnp.dot(s_src, pu, preferred_element_type=jnp.float32)
             + jnp.dot(s_dst, pv, preferred_element_type=jnp.float32) + pp["pr_b"])
    return score.astype(jnp.bfloat16)


def _ref_model_f32(params, nfeats, efeats, src, dst, num_nodes):
    """Full-precision reference matching the PyTorch module semantics."""
    S_src = jax.nn.one_hot(src, num_nodes, dtype=jnp.float32)
    S_dst = jax.nn.one_hot(dst, num_nodes, dtype=jnp.float32)
    deg = S_dst.sum(axis=0)
    inv = jnp.where(deg > 0, 1.0 / jnp.maximum(deg, 1.0), 0.0)

    def layer(h, Wm, bm, Wa, ba):
        h_src = S_src @ h
        m = jnp.concatenate([h_src, efeats], axis=1) @ Wm + bm
        h_neigh = (S_dst.T @ m) * inv[:, None]
        return jax.nn.relu(jnp.concatenate([h, h_neigh], axis=1) @ Wa + ba)

    h = layer(nfeats, params["l1_Wmsg"], params["l1_bmsg"],
              params["l1_Wapp"], params["l1_bapp"])
    h = layer(h, params["l2_Wmsg"], params["l2_bmsg"],
              params["l2_Wapp"], params["l2_bapp"])
    hu, hv = S_src @ h, S_dst @ h
    return jnp.concatenate([hu, hv], axis=1) @ params["pred_W"] + params["pred_b"]


# ------------------------------ main ------------------------------

if __name__ == "__main__":
    N, E = 64, 600                      # nodes, edges (multiple edge tiles per core)
    ndim_in, edim, ndim_out = 8, 8, 16
    hidden, n_classes = 128, 2
    edge_tile = 256                     # MXU-sized edge tiles
    num_cores = 2                       # 2-TC parallel split of the edge reduction

    key = jax.random.PRNGKey(0)
    k_src, k_dst, k_nf, k_ef, k_par = jax.random.split(key, 5)

    src = jax.random.randint(k_src, (E,), 0, N)
    dst = jax.random.randint(k_dst, (E,), 0, N)
    # PyTorch inputs are nfeats (N,1,ndim_in), efeats (E,1,edim); singleton squeezed.
    nfeats = jax.random.normal(k_nf, (N, ndim_in), jnp.float32)
    efeats = jax.random.normal(k_ef, (E, edim), jnp.float32)

    params = make_params(k_par, ndim_in, edim, ndim_out, hidden, n_classes)
    pp = pad_params(params, ndim_in, edim, ndim_out, hidden, n_classes)
    nf_p, ef_p, s_src, s_dst, inv_deg = prepare_inputs(
        nfeats, efeats, src, dst, N, edge_tile, num_cores)

    fwd = jax.jit(functools.partial(model_forward,
                                    edge_tile=edge_tile, num_cores=num_cores))
    scores_full = jax.block_until_ready(fwd(pp, nf_p, ef_p, s_src, s_dst, inv_deg))
    scores = scores_full[:E, :n_classes].astype(jnp.float32)
    assert scores.shape == (E, n_classes)

    # Mirror of the kernel math (same bf16 casts) -> tight check.
    mirror = _mirror_model(pp, nf_p, ef_p, s_src, s_dst,
                           inv_deg)[:E, :n_classes].astype(jnp.float32)
    assert jnp.allclose(scores, mirror, atol=1e-2, rtol=1e-2), "mismatch vs mirror ref"

    # Full-f32 module semantics -> loose check (bf16 MXU precision).
    ref32 = _ref_model_f32(params, nfeats, efeats, src, dst, N)
    assert float(jnp.max(jnp.abs(scores - ref32))) < 0.15, "mismatch vs f32 reference"

    print("KERNEL_OK")
</pallas_src>

<mosaic_0001>
module attributes {stable_mosaic.version = 11 : i64} {
  func.func @sage_finalize_kernel(%arg0: i32, %arg1: memref<128x128xbf16, #tpu.memory_space<vmem>>, %arg2: memref<2x128x128xf32, #tpu.memory_space<vmem>>, %arg3: memref<128x1xf32, #tpu.memory_space<vmem>>, %arg4: memref<1x128xf32, #tpu.memory_space<vmem>>, %arg5: memref<128x128xbf16, #tpu.memory_space<vmem>>, %arg6: memref<128x128xbf16, #tpu.memory_space<vmem>>, %arg7: memref<1x128xf32, #tpu.memory_space<vmem>>, %arg8: memref<128x128xbf16, #tpu.memory_space<vmem>>) attributes {dimension_semantics = [#tpu.dimension_semantics<arbitrary>], iteration_bounds = array<i64: 1>, scalar_prefetch = 0 : i64, scratch_operands = 0 : i64, tpu.core_type = #tpu.core_type<tc>, window_params = [{pipeline_mode = #tpu.pipeline_mode<synchronous>, transform_indices = @transform_0, window_bounds = array<i64: 128, 128>}, {pipeline_mode = #tpu.pipeline_mode<synchronous>, transform_indices = @transform_1, window_bounds = array<i64: 2, 128, 128>}, {pipeline_mode = #tpu.pipeline_mode<synchronous>, transform_indices = @transform_2, window_bounds = array<i64: 128, 1>}, {pipeline_mode = #tpu.pipeline_mode<synchronous>, transform_indices = @transform_3, window_bounds = array<i64: 1, 128>}, {pipeline_mode = #tpu.pipeline_mode<synchronous>, transform_indices = @transform_4, window_bounds = array<i64: 128, 128>}, {pipeline_mode = #tpu.pipeline_mode<synchronous>, transform_indices = @transform_5, window_bounds = array<i64: 128, 128>}, {pipeline_mode = #tpu.pipeline_mode<synchronous>, transform_indices = @transform_6, window_bounds = array<i64: 1, 128>}, {pipeline_mode = #tpu.pipeline_mode<synchronous>, transform_indices = @transform_7, window_bounds = array<i64: 128, 128>}]} {
    %c0 = arith.constant 0 : index
    %c0_0 = arith.constant 0 : index
    %c0_1 = arith.constant 0 : index
    %0 = vector.load %arg2[%c0, %c0_0, %c0_1] : memref<2x128x128xf32, #tpu.memory_space<vmem>>, vector<1x128x128xf32>
    %1 = vector.shape_cast %0 : vector<1x128x128xf32> to vector<128x128xf32>
    %c1 = arith.constant 1 : index
    %c0_2 = arith.constant 0 : index
    %c0_3 = arith.constant 0 : index
    %2 = vector.load %arg2[%c1, %c0_2, %c0_3] : memref<2x128x128xf32, #tpu.memory_space<vmem>>, vector<1x128x128xf32>
    %3 = vector.shape_cast %2 : vector<1x128x128xf32> to vector<128x128xf32>
    %4 = arith.addf %1, %3 : vector<128x128xf32>
    %c0_4 = arith.constant 0 : index
    %c0_5 = arith.constant 0 : index
    %5 = vector.load %arg3[%c0_4, %c0_5] : memref<128x1xf32, #tpu.memory_space<vmem>>, vector<128x1xf32>
    %cst = arith.constant 0.000000e+00 : f32
    %6 = vector.broadcast %cst : f32 to vector<128x1xf32>
    %7 = arith.cmpf ogt, %5, %6 : vector<128x1xf32>
    %8 = arith.extui %7 : vector<128x1xi1> to vector<128x1xi32>
    %9 = arith.sitofp %8 : vector<128x1xi32> to vector<128x1xf32>
    %10 = vector.broadcast %5 : vector<128x1xf32> to vector<128x128xf32>
    %11 = arith.mulf %4, %10 : vector<128x128xf32>
    %c0_6 = arith.constant 0 : index
    %c0_7 = arith.constant 0 : index
    %12 = vector.load %arg4[%c0_6, %c0_7] : memref<1x128xf32, #tpu.memory_space<vmem>>, vector<1x128xf32>
    %13 = vector.broadcast %12 : vector<1x128xf32> to vector<128x128xf32>
    %14 = vector.broadcast %9 : vector<128x1xf32> to vector<128x128xf32>
    %15 = arith.mulf %13, %14 : vector<128x128xf32>
    %16 = arith.addf %11, %15 : vector<128x128xf32>
    %c0_8 = arith.constant 0 : index
    %c0_9 = arith.constant 0 : index
    %17 = vector.load %arg1[%c0_8, %c0_9] : memref<128x128xbf16, #tpu.memory_space<vmem>>, vector<128x128xbf16>
    %c0_10 = arith.constant 0 : index
    %c0_11 = arith.constant 0 : index
    %18 = vector.load %arg5[%c0_10, %c0_11] : memref<128x128xbf16, #tpu.memory_space<vmem>>, vector<128x128xbf16>
    %cst_12 = arith.constant dense<0.000000e+00> : vector<128x128xf32>
    %19 = tpu.matmul %17, %18, %cst_12 {dimension_numbers = #tpu.dot_dimension_numbers<[1], [0], [0], [1], [0, 0, 1, 1], [], []>} : vector<128x128xbf16>, vector<128x128xbf16>, vector<128x128xf32> -> vector<128x128xf32>
    %20 = arith.truncf %16 : vector<128x128xf32> to vector<128x128xbf16>
    %c0_13 = arith.constant 0 : index
    %c0_14 = arith.constant 0 : index
    %21 = vector.load %arg6[%c0_13, %c0_14] : memref<128x128xbf16, #tpu.memory_space<vmem>>, vector<128x128xbf16>
    %cst_15 = arith.constant dense<0.000000e+00> : vector<128x128xf32>
    %22 = tpu.matmul %20, %21, %cst_15 {dimension_numbers = #tpu.dot_dimension_numbers<[1], [0], [0], [1], [0, 0, 1, 1], [], []>} : vector<128x128xbf16>, vector<128x128xbf16>, vector<128x128xf32> -> vector<128x128xf32>
    %23 = arith.addf %19, %22 : vector<128x128xf32>
    %c0_16 = arith.constant 0 : index
    %c0_17 = arith.constant 0 : index
    %24 = vector.load %arg7[%c0_16, %c0_17] : memref<1x128xf32, #tpu.memory_space<vmem>>, vector<1x128xf32>
    %25 = vector.broadcast %24 : vector<1x128xf32> to vector<128x128xf32>
    %26 = arith.addf %23, %25 : vector<128x128xf32>
    %cst_18 = arith.constant 0.000000e+00 : f32
    %27 = vector.broadcast %cst_18 : f32 to vector<128x128xf32>
    %28 = arith.maximumf %26, %27 : vector<128x128xf32>
    %29 = arith.truncf %28 : vector<128x128xf32> to vector<128x128xbf16>
    %c0_19 = arith.constant 0 : index
    %c0_20 = arith.constant 0 : index
    %30 = vector.load %arg8[%c0_19, %c0_20] : memref<128x128xbf16, #tpu.memory_space<vmem>>, vector<128x128xbf16>
    tpu.vector_store %arg8[%c0_19, %c0_20], %29 {strides = array<i32>} : memref<128x128xbf16, #tpu.memory_space<vmem>>, vector<128x128xbf16>,
    return
  }
  func.func @transform_0(%arg0: i32) -> (i32, i32) {
    %c0_i32 = arith.constant 0 : i32
    %c0_i32_0 = arith.constant 0 : i32
    %c0_i32_1 = arith.constant 0 : i32
    return %c0_i32, %c0_i32_0 : i32, i32
  }
  func.func @transform_1(%arg0: i32) -> (i32, i32, i32) {
    %c0_i32 = arith.constant 0 : i32
    %c0_i32_0 = arith.constant 0 : i32
    %c0_i32_1 = arith.constant 0 : i32
    %c0_i32_2 = arith.constant 0 : i32
    return %c0_i32, %c0_i32_0, %c0_i32_1 : i32, i32, i32
  }
  func.func @transform_2(%arg0: i32) -> (i32, i32) {
    %c0_i32 = arith.constant 0 : i32
    %c0_i32_0 = arith.constant 0 : i32
    %c0_i32_1 = arith.constant 0 : i32
    return %c0_i32, %c0_i32_0 : i32, i32
  }
  func.func @transform_3(%arg0: i32) -> (i32, i32) {
    %c0_i32 = arith.constant 0 : i32
    %c0_i32_0 = arith.constant 0 : i32
    %c0_i32_1 = arith.constant 0 : i32
    return %c0_i32, %c0_i32_0 : i32, i32
  }
  func.func @transform_4(%arg0: i32) -> (i32, i32) {
    %c0_i32 = arith.constant 0 : i32
    %c0_i32_0 = arith.constant 0 : i32
    %c0_i32_1 = arith.constant 0 : i32
    return %c0_i32, %c0_i32_0 : i32, i32
  }
  func.func @transform_5(%arg0: i32) -> (i32, i32) {
    %c0_i32 = arith.constant 0 : i32
    %c0_i32_0 = arith.constant 0 : i32
    %c0_i32_1 = arith.constant 0 : i32
    return %c0_i32, %c0_i32_0 : i32, i32
  }
  func.func @transform_6(%arg0: i32) -> (i32, i32) {
    %c0_i32 = arith.constant 0 : i32
    %c0_i32_0 = arith.constant 0 : i32
    %c0_i32_1 = arith.constant 0 : i32
    return %c0_i32, %c0_i32_0 : i32, i32
  }
  func.func @transform_7(%arg0: i32) -> (i32, i32) {
    %c0_i32 = arith.constant 0 : i32
    %c0_i32_0 = arith.constant 0 : i32
    %c0_i32_1 = arith.constant 0 : i32
    return %c0_i32, %c0_i32_0 : i32, i32
  }
}

module attributes {stable_mosaic.version = 11 : i64} {
  func.func @sage_edge_reduce_kernel(%arg0: i32, %arg1: i32, %arg2: memref<128x128xbf16, #tpu.memory_space<vmem>>, %arg3: memref<256x128xbf16, #tpu.memory_space<vmem>>, %arg4: memref<256x128xbf16, #tpu.memory_space<vmem>>, %arg5: memref<256x128xbf16, #tpu.memory_space<vmem>>, %arg6: memref<128x128xbf16, #tpu.memory_space<vmem>>, %arg7: memref<128x128xbf16, #tpu.memory_space<vmem>>, %arg8: memref<1x128x128xf32, #tpu.memory_space<vmem>>, %arg9: memref<128x128xbf16, #tpu.memory_space<vmem>>) attributes {dimension_semantics = [#tpu.dimension_semantics<parallel>, #tpu.dimension_semantics<arbitrary>], iteration_bounds = array<i64: 2, 2>, scalar_prefetch = 0 : i64, scratch_operands = 1 : i64, tpu.core_type = #tpu.core_type<tc>, window_params = [{pipeline_mode = #tpu.pipeline_mode<synchronous>, transform_indices = @transform_0, window_bounds = array<i64: 128, 128>}, {transform_indices = @transform_1, window_bounds = array<i64: 256, 128>}, {transform_indices = @transform_2, window_bounds = array<i64: 256, 128>}, {transform_indices = @transform_3, window_bounds = array<i64: 256, 128>}, {pipeline_mode = #tpu.pipeline_mode<synchronous>, transform_indices = @transform_4, window_bounds = array<i64: 128, 128>}, {pipeline_mode = #tpu.pipeline_mode<synchronous>, transform_indices = @transform_5, window_bounds = array<i64: 128, 128>}, {transform_indices = @transform_6, window_bounds = array<i64: 1, 128, 128>}]} {
    %c0_i32 = arith.constant 0 : i32
    %0 = arith.cmpi eq, %arg1, %c0_i32 : i32
    %1 = arith.extui %0 : i1 to i32
    %c0_i32_0 = arith.constant 0 : i32
    %2 = arith.cmpi ne, %1, %c0_i32_0 : i32
    scf.if %2 {
      %c0_18 = arith.constant 0 : index
      %c0_19 = arith.constant 0 : index
      %19 = vector.load %arg2[%c0_18, %c0_19] : memref<128x128xbf16, #tpu.memory_space<vmem>>, vector<128x128xbf16>
      %c0_20 = arith.constant 0 : index
      %c0_21 = arith.constant 0 : index
      %20 = vector.load %arg6[%c0_20, %c0_21] : memref<128x128xbf16, #tpu.memory_space<vmem>>, vector<128x128xbf16>
      %cst_22 = arith.constant dense<0.000000e+00> : vector<128x128xf32>
      %21 = tpu.matmul %19, %20, %cst_22 {dimension_numbers = #tpu.dot_dimension_numbers<[1], [0], [0], [1], [0, 0, 1, 1], [], []>} : vector<128x128xbf16>, vector<128x128xbf16>, vector<128x128xf32> -> vector<128x128xf32>
      %22 = arith.truncf %21 : vector<128x128xf32> to vector<128x128xbf16>
      %c0_23 = arith.constant 0 : index
      %c0_24 = arith.constant 0 : index
      %23 = vector.load %arg9[%c0_23, %c0_24] : memref<128x128xbf16, #tpu.memory_space<vmem>>, vector<128x128xbf16>
      tpu.vector_store %arg9[%c0_23, %c0_24], %22 {strides = array<i32>} : memref<128x128xbf16, #tpu.memory_space<vmem>>, vector<128x128xbf16>,
      %cst_25 = arith.constant 0.000000e+00 : f32
      %24 = vector.broadcast %cst_25 : f32 to vector<128x128xf32>
      %c0_26 = arith.constant 0 : index
      %c0_27 = arith.constant 0 : index
      %c0_28 = arith.constant 0 : index
      %25 = vector.load %arg8[%c0_26, %c0_27, %c0_28] : memref<1x128x128xf32, #tpu.memory_space<vmem>>, vector<1x128x128xf32>
      %26 = vector.shape_cast %25 : vector<1x128x128xf32> to vector<128x128xf32>
      %27 = vector.shape_cast %24 : vector<128x128xf32> to vector<1x128x128xf32>
      tpu.vector_store %arg8[%c0_26, %c0_27, %c0_28], %27 {strides = array<i32>} : memref<1x128x128xf32, #tpu.memory_space<vmem>>, vector<1x128x128xf32>,
    } else {
    }
    %c0 = arith.constant 0 : index
    %c0_1 = arith.constant 0 : index
    %3 = vector.load %arg4[%c0, %c0_1] : memref<256x128xbf16, #tpu.memory_space<vmem>>, vector<256x128xbf16>
    %c0_2 = arith.constant 0 : index
    %c0_3 = arith.constant 0 : index
    %4 = vector.load %arg9[%c0_2, %c0_3] : memref<128x128xbf16, #tpu.memory_space<vmem>>, vector<128x128xbf16>
    %cst = arith.constant dense<0.000000e+00> : vector<256x128xf32>
    %5 = tpu.matmul %3, %4, %cst {dimension_numbers = #tpu.dot_dimension_numbers<[1], [0], [0], [1], [0, 0, 1, 1], [], []>} : vector<256x128xbf16>, vector<128x128xbf16>, vector<256x128xf32> -> vector<256x128xf32>
    %c0_4 = arith.constant 0 : index
    %c0_5 = arith.constant 0 : index
    %6 = vector.load %arg3[%c0_4, %c0_5] : memref<256x128xbf16, #tpu.memory_space<vmem>>, vector<256x128xbf16>
    %c0_6 = arith.constant 0 : index
    %c0_7 = arith.constant 0 : index
    %7 = vector.load %arg7[%c0_6, %c0_7] : memref<128x128xbf16, #tpu.memory_space<vmem>>, vector<128x128xbf16>
    %cst_8 = arith.constant dense<0.000000e+00> : vector<256x128xf32>
    %8 = tpu.matmul %6, %7, %cst_8 {dimension_numbers = #tpu.dot_dimension_numbers<[1], [0], [0], [1], [0, 0, 1, 1], [], []>} : vector<256x128xbf16>, vector<128x128xbf16>, vector<256x128xf32> -> vector<256x128xf32>
    %9 = arith.addf %5, %8 : vector<256x128xf32>
    %c0_9 = arith.constant 0 : index
    %c0_10 = arith.constant 0 : index
    %c0_11 = arith.constant 0 : index
    %10 = vector.load %arg8[%c0_9, %c0_10, %c0_11] : memref<1x128x128xf32, #tpu.memory_space<vmem>>, vector<1x128x128xf32>
    %11 = vector.shape_cast %10 : vector<1x128x128xf32> to vector<128x128xf32>
    %c0_12 = arith.constant 0 : index
    %c0_13 = arith.constant 0 : index
    %12 = vector.load %arg5[%c0_12, %c0_13] : memref<256x128xbf16, #tpu.memory_space<vmem>>, vector<256x128xbf16>
    %13 = arith.truncf %9 : vector<256x128xf32> to vector<256x128xbf16>
    %cst_14 = arith.constant dense<0.000000e+00> : vector<128x128xf32>
    %14 = tpu.matmul %12, %13, %cst_14 {dimension_numbers = #tpu.dot_dimension_numbers<[0], [0], [1], [1], [0, 1, 1, 1], [], []>} : vector<256x128xbf16>, vector<256x128xbf16>, vector<128x128xf32> -> vector<128x128xf32>
    %15 = arith.addf %11, %14 : vector<128x128xf32>
    %c0_15 = arith.constant 0 : index
    %c0_16 = arith.constant 0 : index
    %c0_17 = arith.constant 0 : index
    %16 = vector.load %arg8[%c0_15, %c0_16, %c0_17] : memref<1x128x128xf32, #tpu.memory_space<vmem>>, vector<1x128x128xf32>
    %17 = vector.shape_cast %16 : vector<1x128x128xf32> to vector<128x128xf32>
    %18 = vector.shape_cast %15 : vector<128x128xf32> to vector<1x128x128xf32>
    tpu.vector_store %arg8[%c0_15, %c0_16, %c0_17], %18 {strides = array<i32>} : memref<1x128x128xf32, #tpu.memory_space<vmem>>, vector<1x128x128xf32>,
    return
  }
  func.func @transform_0(%arg0: i32, %arg1: i32) -> (i32, i32) {
    %c0_i32 = arith.constant 0 : i32
    %c0_i32_0 = arith.constant 0 : i32
    %c0_i32_1 = arith.constant 0 : i32
    return %c0_i32, %c0_i32_0 : i32, i32
  }
  func.func @transform_1(%arg0: i32, %arg1: i32) -> (i32, i32) {
    %c2_i32 = arith.constant 2 : i32
    %0 = arith.muli %arg0, %c2_i32 : i32
    %1 = arith.addi %0, %arg1 : i32
    %c0_i32 = arith.constant 0 : i32
    %c0_i32_0 = arith.constant 0 : i32
    return %1, %c0_i32 : i32, i32
  }
  func.func @transform_2(%arg0: i32, %arg1: i32) -> (i32, i32) {
    %c2_i32 = arith.constant 2 : i32
    %0 = arith.muli %arg0, %c2_i32 : i32
    %1 = arith.addi %0, %arg1 : i32
    %c0_i32 = arith.constant 0 : i32
    %c0_i32_0 = arith.constant 0 : i32
    return %1, %c0_i32 : i32, i32
  }
  func.func @transform_3(%arg0: i32, %arg1: i32) -> (i32, i32) {
    %c2_i32 = arith.constant 2 : i32
    %0 = arith.muli %arg0, %c2_i32 : i32
    %1 = arith.addi %0, %arg1 : i32
    %c0_i32 = arith.constant 0 : i32
    %c0_i32_0 = arith.constant 0 : i32
    return %1, %c0_i32 : i32, i32
  }
  func.func @transform_4(%arg0: i32, %arg1: i32) -> (i32, i32) {
    %c0_i32 = arith.constant 0 : i32
    %c0_i32_0 = arith.constant 0 : i32
    %c0_i32_1 = arith.constant 0 : i32
    return %c0_i32, %c0_i32_0 : i32, i32
  }
  func.func @transform_5(%arg0: i32, %arg1: i32) -> (i32, i32) {
    %c0_i32 = arith.constant 0 : i32
    %c0_i32_0 = arith.constant 0 : i32
    %c0_i32_1 = arith.constant 0 : i32
    return %c0_i32, %c0_i32_0 : i32, i32
  }
  func.func @transform_6(%arg0: i32, %arg1: i32) -> (i32, i32, i32) {
    %c0_i32 = arith.constant 0 : i32
    %c0_i32_0 = arith.constant 0 : i32
    %c0_i32_1 = arith.constant 0 : i32
    return %arg0, %c0_i32, %c0_i32_0 : i32, i32, i32
  }
}

module attributes {stable_mosaic.version = 11 : i64} {
  func.func @sage_edge_reduce_kernel(%arg0: i32, %arg1: i32, %arg2: memref<128x128xbf16, #tpu.memory_space<vmem>>, %arg3: memref<256x128xbf16, #tpu.memory_space<vmem>>, %arg4: memref<256x128xbf16, #tpu.memory_space<vmem>>, %arg5: memref<256x128xbf16, #tpu.memory_space<vmem>>, %arg6: memref<128x128xbf16, #tpu.memory_space<vmem>>, %arg7: memref<128x128xbf16, #tpu.memory_space<vmem>>, %arg8: memref<1x128x128xf32, #tpu.memory_space<vmem>>, %arg9: memref<128x128xbf16, #tpu.memory_space<vmem>>) attributes {dimension_semantics = [#tpu.dimension_semantics<parallel>, #tpu.dimension_semantics<arbitrary>], iteration_bounds = array<i64: 2, 2>, scalar_prefetch = 0 : i64, scratch_operands = 1 : i64, tpu.core_type = #tpu.core_type<tc>, window_params = [{pipeline_mode = #tpu.pipeline_mode<synchronous>, transform_indices = @transform_0, window_bounds = array<i64: 128, 128>}, {transform_indices = @transform_1, window_bounds = array<i64: 256, 128>}, {transform_indices = @transform_2, window_bounds = array<i64: 256, 128>}, {transform_indices = @transform_3, window_bounds = array<i64: 256, 128>}, {pipeline_mode = #tpu.pipeline_mode<synchronous>, transform_indices = @transform_4, window_bounds = array<i64: 128, 128>}, {pipeline_mode = #tpu.pipeline_mode<synchronous>, transform_indices = @transform_5, window_bounds = array<i64: 128, 128>}, {transform_indices = @transform_6, window_bounds = array<i64: 1, 128, 128>}]} {
    %c0_i32 = arith.constant 0 : i32
    %0 = arith.cmpi eq, %arg1, %c0_i32 : i32
    %1 = arith.extui %0 : i1 to i32
    %c0_i32_0 = arith.constant 0 : i32
    %2 = arith.cmpi ne, %1, %c0_i32_0 : i32
    scf.if %2 {
      %c0_18 = arith.constant 0 : index
      %c0_19 = arith.constant 0 : index
      %19 = vector.load %arg2[%c0_18, %c0_19] : memref<128x128xbf16, #tpu.memory_space<vmem>>, vector<128x128xbf16>
      %c0_20 = arith.constant 0 : index
      %c0_21 = arith.constant 0 : index
      %20 = vector.load %arg6[%c0_20, %c0_21] : memref<128x128xbf16, #tpu.memory_space<vmem>>, vector<128x128xbf16>
      %cst_22 = arith.constant dense<0.000000e+00> : vector<128x128xf32>
      %21 = tpu.matmul %19, %20, %cst_22 {dimension_numbers = #tpu.dot_dimension_numbers<[1], [0], [0], [1], [0, 0, 1, 1], [], []>} : vector<128x128xbf16>, vector<128x128xbf16>, vector<128x128xf32> -> vector<128x128xf32>
      %22 = arith.truncf %21 : vector<128x128xf32> to vector<128x128xbf16>
      %c0_23 = arith.constant 0 : index
      %c0_24 = arith.constant 0 : index
      %23 = vector.load %arg9[%c0_23, %c0_24] : memref<128x128xbf16, #tpu.memory_space<vmem>>, vector<128x128xbf16>
      tpu.vector_store %arg9[%c0_23, %c0_24], %22 {strides = array<i32>} : memref<128x128xbf16, #tpu.memory_space<vmem>>, vector<128x128xbf16>,
      %cst_25 = arith.constant 0.000000e+00 : f32
      %24 = vector.broadcast %cst_25 : f32 to vector<128x128xf32>
      %c0_26 = arith.constant 0 : index
      %c0_27 = arith.constant 0 : index
      %c0_28 = arith.constant 0 : index
      %25 = vector.load %arg8[%c0_26, %c0_27, %c0_28] : memref<1x128x128xf32, #tpu.memory_space<vmem>>, vector<1x128x128xf32>
      %26 = vector.shape_cast %25 : vector<1x128x128xf32> to vector<128x128xf32>
      %27 = vector.shape_cast %24 : vector<128x128xf32> to vector<1x128x128xf32>
      tpu.vector_store %arg8[%c0_26, %c0_27, %c0_28], %27 {strides = array<i32>} : memref<1x128x128xf32, #tpu.memory_space<vmem>>, vector<1x128x128xf32>,
    } else {
    }
    %c0 = arith.constant 0 : index
    %c0_1 = arith.constant 0 : index
    %3 = vector.load %arg4[%c0, %c0_1] : memref<256x128xbf16, #tpu.memory_space<vmem>>, vector<256x128xbf16>
    %c0_2 = arith.constant 0 : index
    %c0_3 = arith.constant 0 : index
    %4 = vector.load %arg9[%c0_2, %c0_3] : memref<128x128xbf16, #tpu.memory_space<vmem>>, vector<128x128xbf16>
    %cst = arith.constant dense<0.000000e+00> : vector<256x128xf32>
    %5 = tpu.matmul %3, %4, %cst {dimension_numbers = #tpu.dot_dimension_numbers<[1], [0], [0], [1], [0, 0, 1, 1], [], []>} : vector<256x128xbf16>, vector<128x128xbf16>, vector<256x128xf32> -> vector<256x128xf32>
    %c0_4 = arith.constant 0 : index
    %c0_5 = arith.constant 0 : index
    %6 = vector.load %arg3[%c0_4, %c0_5] : memref<256x128xbf16, #tpu.memory_space<vmem>>, vector<256x128xbf16>
    %c0_6 = arith.constant 0 : index
    %c0_7 = arith.constant 0 : index
    %7 = vector.load %arg7[%c0_6, %c0_7] : memref<128x128xbf16, #tpu.memory_space<vmem>>, vector<128x128xbf16>
    %cst_8 = arith.constant dense<0.000000e+00> : vector<256x128xf32>
    %8 = tpu.matmul %6, %7, %cst_8 {dimension_numbers = #tpu.dot_dimension_numbers<[1], [0], [0], [1], [0, 0, 1, 1], [], []>} : vector<256x128xbf16>, vector<128x128xbf16>, vector<256x128xf32> -> vector<256x128xf32>
    %9 = arith.addf %5, %8 : vector<256x128xf32>
    %c0_9 = arith.constant 0 : index
    %c0_10 = arith.constant 0 : index
    %c0_11 = arith.constant 0 : index
    %10 = vector.load %arg8[%c0_9, %c0_10, %c0_11] : memref<1x128x128xf32, #tpu.memory_space<vmem>>, vector<1x128x128xf32>
    %11 = vector.shape_cast %10 : vector<1x128x128xf32> to vector<128x128xf32>
    %c0_12 = arith.constant 0 : index
    %c0_13 = arith.constant 0 : index
    %12 = vector.load %arg5[%c0_12, %c0_13] : memref<256x128xbf16, #tpu.memory_space<vmem>>, vector<256x128xbf16>
    %13 = arith.truncf %9 : vector<256x128xf32> to vector<256x128xbf16>
    %cst_14 = arith.constant dense<0.000000e+00> : vector<128x128xf32>
    %14 = tpu.matmul %12, %13, %cst_14 {dimension_numbers = #tpu.dot_dimension_numbers<[0], [0], [1], [1], [0, 1, 1, 1], [], []>} : vector<256x128xbf16>, vector<256x128xbf16>, vector<128x128xf32> -> vector<128x128xf32>
    %15 = arith.addf %11, %14 : vector<128x128xf32>
    %c0_15 = arith.constant 0 : index
    %c0_16 = arith.constant 0 : index
    %c0_17 = arith.constant 0 : index
    %16 = vector.load %arg8[%c0_15, %c0_16, %c0_17] : memref<1x128x128xf32, #tpu.memory_space<vmem>>, vector<1x128x128xf32>
    %17 = vector.shape_cast %16 : vector<1x128x128xf32> to vector<128x128xf32>
    %18 = vector.shape_cast %15 : vector<128x128xf32> to vector<1x128x128xf32>
    tpu.vector_store %arg8[%c0_15, %c0_16, %c0_17], %18 {strides = array<i32>} : memref<1x128x128xf32, #tpu.memory_space<vmem>>, vector<1x128x128xf32>,
    return
  }
  func.func @transform_0(%arg0: i32, %arg1: i32) -> (i32, i32) {
    %c0_i32 = arith.constant 0 : i32
    %c0_i32_0 = arith.constant 0 : i32
    %c0_i32_1 = arith.constant 0 : i32
    return %c0_i32, %c0_i32_0 : i32, i32
  }
  func.func @transform_1(%arg0: i32, %arg1: i32) -> (i32, i32) {
    %c2_i32 = arith.constant 2 : i32
    %0 = arith.muli %arg0, %c2_i32 : i32
    %1 = arith.addi %0, %arg1 : i32
    %c0_i32 = arith.constant 0 : i32
    %c0_i32_0 = arith.constant 0 : i32
    return %1, %c0_i32 : i32, i32
  }
  func.func @transform_2(%arg0: i32, %arg1: i32) -> (i32, i32) {
    %c2_i32 = arith.constant 2 : i32
    %0 = arith.muli %arg0, %c2_i32 : i32
    %1 = arith.addi %0, %arg1 : i32
    %c0_i32 = arith.constant 0 : i32
    %c0_i32_0 = arith.constant 0 : i32
    return %1, %c0_i32 : i32, i32
  }
  func.func @transform_3(%arg0: i32, %arg1: i32) -> (i32, i32) {
    %c2_i32 = arith.constant 2 : i32
    %0 = arith.muli %arg0, %c2_i32 : i32
    %1 = arith.addi %0, %arg1 : i32
    %c0_i32 = arith.constant 0 : i32
    %c0_i32_0 = arith.constant 0 : i32
    return %1, %c0_i32 : i32, i32
  }
  func.func @transform_4(%arg0: i32, %arg1: i32) -> (i32, i32) {
    %c0_i32 = arith.constant 0 : i32
    %c0_i32_0 = arith.constant 0 : i32
    %c0_i32_1 = arith.constant 0 : i32
    return %c0_i32, %c0_i32_0 : i32, i32
  }
  func.func @transform_5(%arg0: i32, %arg1: i32) -> (i32, i32) {
    %c0_i32 = arith.constant 0 : i32
    %c0_i32_0 = arith.constant 0 : i32
    %c0_i32_1 = arith.constant 0 : i32
    return %c0_i32, %c0_i32_0 : i32, i32
  }
  func.func @transform_6(%arg0: i32, %arg1: i32) -> (i32, i32, i32) {
    %c0_i32 = arith.constant 0 : i32
    %c0_i32_0 = arith.constant 0 : i32
    %c0_i32_1 = arith.constant 0 : i32
    return %arg0, %c0_i32, %c0_i32_0 : i32, i32, i32
  }
}

module attributes {stable_mosaic.version = 11 : i64} {
  func.func @sage_finalize_kernel(%arg0: i32, %arg1: memref<128x128xbf16, #tpu.memory_space<vmem>>, %arg2: memref<2x128x128xf32, #tpu.memory_space<vmem>>, %arg3: memref<128x1xf32, #tpu.memory_space<vmem>>, %arg4: memref<1x128xf32, #tpu.memory_space<vmem>>, %arg5: memref<128x128xbf16, #tpu.memory_space<vmem>>, %arg6: memref<128x128xbf16, #tpu.memory_space<vmem>>, %arg7: memref<1x128xf32, #tpu.memory_space<vmem>>, %arg8: memref<128x128xbf16, #tpu.memory_space<vmem>>) attributes {dimension_semantics = [#tpu.dimension_semantics<arbitrary>], iteration_bounds = array<i64: 1>, scalar_prefetch = 0 : i64, scratch_operands = 0 : i64, tpu.core_type = #tpu.core_type<tc>, window_params = [{pipeline_mode = #tpu.pipeline_mode<synchronous>, transform_indices = @transform_0, window_bounds = array<i64: 128, 128>}, {pipeline_mode = #tpu.pipeline_mode<synchronous>, transform_indices = @transform_1, window_bounds = array<i64: 2, 128, 128>}, {pipeline_mode = #tpu.pipeline_mode<synchronous>, transform_indices = @transform_2, window_bounds = array<i64: 128, 1>}, {pipeline_mode = #tpu.pipeline_mode<synchronous>, transform_indices = @transform_3, window_bounds = array<i64: 1, 128>}, {pipeline_mode = #tpu.pipeline_mode<synchronous>, transform_indices = @transform_4, window_bounds = array<i64: 128, 128>}, {pipeline_mode = #tpu.pipeline_mode<synchronous>, transform_indices = @transform_5, window_bounds = array<i64: 128, 128>}, {pipeline_mode = #tpu.pipeline_mode<synchronous>, transform_indices = @transform_6, window_bounds = array<i64: 1, 128>}, {pipeline_mode = #tpu.pipeline_mode<synchronous>, transform_indices = @transform_7, window_bounds = array<i64: 128, 128>}]} {
    %c0 = arith.constant 0 : index
    %c0_0 = arith.constant 0 : index
    %c0_1 = arith.constant 0 : index
    %0 = vector.load %arg2[%c0, %c0_0, %c0_1] : memref<2x128x128xf32, #tpu.memory_space<vmem>>, vector<1x128x128xf32>
    %1 = vector.shape_cast %0 : vector<1x128x128xf32> to vector<128x128xf32>
    %c1 = arith.constant 1 : index
    %c0_2 = arith.constant 0 : index
    %c0_3 = arith.constant 0 : index
    %2 = vector.load %arg2[%c1, %c0_2, %c0_3] : memref<2x128x128xf32, #tpu.memory_space<vmem>>, vector<1x128x128xf32>
    %3 = vector.shape_cast %2 : vector<1x128x128xf32> to vector<128x128xf32>
    %4 = arith.addf %1, %3 : vector<128x128xf32>
    %c0_4 = arith.constant 0 : index
    %c0_5 = arith.constant 0 : index
    %5 = vector.load %arg3[%c0_4, %c0_5] : memref<128x1xf32, #tpu.memory_space<vmem>>, vector<128x1xf32>
    %cst = arith.constant 0.000000e+00 : f32
    %6 = vector.broadcast %cst : f32 to vector<128x1xf32>
    %7 = arith.cmpf ogt, %5, %6 : vector<128x1xf32>
    %8 = arith.extui %7 : vector<128x1xi1> to vector<128x1xi32>
    %9 = arith.sitofp %8 : vector<128x1xi32> to vector<128x1xf32>
    %10 = vector.broadcast %5 : vector<128x1xf32> to vector<128x128xf32>
    %11 = arith.mulf %4, %10 : vector<128x128xf32>
    %c0_6 = arith.constant 0 : index
    %c0_7 = arith.constant 0 : index
    %12 = vector.load %arg4[%c0_6, %c0_7] : memref<1x128xf32, #tpu.memory_space<vmem>>, vector<1x128xf32>
    %13 = vector.broadcast %12 : vector<1x128xf32> to vector<128x128xf32>
    %14 = vector.broadcast %9 : vector<128x1xf32> to vector<128x128xf32>
    %15 = arith.mulf %13, %14 : vector<128x128xf32>
    %16 = arith.addf %11, %15 : vector<128x128xf32>
    %c0_8 = arith.constant 0 : index
    %c0_9 = arith.constant 0 : index
    %17 = vector.load %arg1[%c0_8, %c0_9] : memref<128x128xbf16, #tpu.memory_space<vmem>>, vector<128x128xbf16>
    %c0_10 = arith.constant 0 : index
    %c0_11 = arith.constant 0 : index
    %18 = vector.load %arg5[%c0_10, %c0_11] : memref<128x128xbf16, #tpu.memory_space<vmem>>, vector<128x128xbf16>
    %cst_12 = arith.constant dense<0.000000e+00> : vector<128x128xf32>
    %19 = tpu.matmul %17, %18, %cst_12 {dimension_numbers = #tpu.dot_dimension_numbers<[1], [0], [0], [1], [0, 0, 1, 1], [], []>} : vector<128x128xbf16>, vector<128x128xbf16>, vector<128x128xf32> -> vector<128x128xf32>
    %20 = arith.truncf %16 : vector<128x128xf32> to vector<128x128xbf16>
    %c0_13 = arith.constant 0 : index
    %c0_14 = arith.constant 0 : index
    %21 = vector.load %arg6[%c0_13, %c0_14] : memref<128x128xbf16, #tpu.memory_space<vmem>>, vector<128x128xbf16>
    %cst_15 = arith.constant dense<0.000000e+00> : vector<128x128xf32>
    %22 = tpu.matmul %20, %21, %cst_15 {dimension_numbers = #tpu.dot_dimension_numbers<[1], [0], [0], [1], [0, 0, 1, 1], [], []>} : vector<128x128xbf16>, vector<128x128xbf16>, vector<128x128xf32> -> vector<128x128xf32>
    %23 = arith.addf %19, %22 : vector<128x128xf32>
    %c0_16 = arith.constant 0 : index
    %c0_17 = arith.constant 0 : index
    %24 = vector.load %arg7[%c0_16, %c0_17] : memref<1x128xf32, #tpu.memory_space<vmem>>, vector<1x128xf32>
    %25 = vector.broadcast %24 : vector<1x128xf32> to vector<128x128xf32>
    %26 = arith.addf %23, %25 : vector<128x128xf32>
    %cst_18 = arith.constant 0.000000e+00 : f32
    %27 = vector.broadcast %cst_18 : f32 to vector<128x128xf32>
    %28 = arith.maximumf %26, %27 : vector<128x128xf32>
    %29 = arith.truncf %28 : vector<128x128xf32> to vector<128x128xbf16>
    %c0_19 = arith.constant 0 : index
    %c0_20 = arith.constant 0 : index
    %30 = vector.load %arg8[%c0_19, %c0_20] : memref<128x128xbf16, #tpu.memory_space<vmem>>, vector<128x128xbf16>
    tpu.vector_store %arg8[%c0_19, %c0_20], %29 {strides = array<i32>} : memref<128x128xbf16, #tpu.memory_space<vmem>>, vector<128x128xbf16>,
    return
  }
  func.func @transform_0(%arg0: i32) -> (i32, i32) {
    %c0_i32 = arith.constant 0 : i32
    %c0_i32_0 = arith.constant 0 : i32
    %c0_i32_1 = arith.constant 0 : i32
    return %c0_i32, %c0_i32_0 : i32, i32
  }
  func.func @transform_1(%arg0: i32) -> (i32, i32, i32) {
    %c0_i32 = arith.constant 0 : i32
    %c0_i32_0 = arith.constant 0 : i32
    %c0_i32_1 = arith.constant 0 : i32
    %c0_i32_2 = arith.constant 0 : i32
    return %c0_i32, %c0_i32_0, %c0_i32_1 : i32, i32, i32
  }
  func.func @transform_2(%arg0: i32) -> (i32, i32) {
    %c0_i32 = arith.constant 0 : i32
    %c0_i32_0 = arith.constant 0 : i32
    %c0_i32_1 = arith.constant 0 : i32
    return %c0_i32, %c0_i32_0 : i32, i32
  }
  func.func @transform_3(%arg0: i32) -> (i32, i32) {
    %c0_i32 = arith.constant 0 : i32
    %c0_i32_0 = arith.constant 0 : i32
    %c0_i32_1 = arith.constant 0 : i32
    return %c0_i32, %c0_i32_0 : i32, i32
  }
  func.func @transform_4(%arg0: i32) -> (i32, i32) {
    %c0_i32 = arith.constant 0 : i32
    %c0_i32_0 = arith.constant 0 : i32
    %c0_i32_1 = arith.constant 0 : i32
    return %c0_i32, %c0_i32_0 : i32, i32
  }
  func.func @transform_5(%arg0: i32) -> (i32, i32) {
    %c0_i32 = arith.constant 0 : i32
    %c0_i32_0 = arith.constant 0 : i32
    %c0_i32_1 = arith.constant 0 : i32
    return %c0_i32, %c0_i32_0 : i32, i32
  }
  func.func @transform_6(%arg0: i32) -> (i32, i32) {
    %c0_i32 = arith.constant 0 : i32
    %c0_i32_0 = arith.constant 0 : i32
    %c0_i32_1 = arith.constant 0 : i32
    return %c0_i32, %c0_i32_0 : i32, i32
  }
  func.func @transform_7(%arg0: i32) -> (i32, i32) {
    %c0_i32 = arith.constant 0 : i32
    %c0_i32_0 = arith.constant 0 : i32
    %c0_i32_1 = arith.constant 0 : i32
    return %c0_i32, %c0_i32_0 : i32, i32
  }
}

module attributes {stable_mosaic.version = 11 : i64} {
  func.func @edge_predictor_kernel(%arg0: i32, %arg1: memref<128x128xbf16, #tpu.memory_space<vmem>>, %arg2: memref<128x128xbf16, #tpu.memory_space<vmem>>, %arg3: memref<256x128xbf16, #tpu.memory_space<vmem>>, %arg4: memref<256x128xbf16, #tpu.memory_space<vmem>>, %arg5: memref<1x128xf32, #tpu.memory_space<vmem>>, %arg6: memref<256x128xbf16, #tpu.memory_space<vmem>>) attributes {dimension_semantics = [#tpu.dimension_semantics<parallel>], iteration_bounds = array<i64: 4>, scalar_prefetch = 0 : i64, scratch_operands = 0 : i64, tpu.core_type = #tpu.core_type<tc>, window_params = [{pipeline_mode = #tpu.pipeline_mode<synchronous>, transform_indices = @transform_0, window_bounds = array<i64: 128, 128>}, {pipeline_mode = #tpu.pipeline_mode<synchronous>, transform_indices = @transform_1, window_bounds = array<i64: 128, 128>}, {transform_indices = @transform_2, window_bounds = array<i64: 256, 128>}, {transform_indices = @transform_3, window_bounds = array<i64: 256, 128>}, {pipeline_mode = #tpu.pipeline_mode<synchronous>, transform_indices = @transform_4, window_bounds = array<i64: 1, 128>}, {transform_indices = @transform_5, window_bounds = array<i64: 256, 128>}]} {
    %c0 = arith.constant 0 : index
    %c0_0 = arith.constant 0 : index
    %0 = vector.load %arg3[%c0, %c0_0] : memref<256x128xbf16, #tpu.memory_space<vmem>>, vector<256x128xbf16>
    %c0_1 = arith.constant 0 : index
    %c0_2 = arith.constant 0 : index
    %1 = vector.load %arg1[%c0_1, %c0_2] : memref<128x128xbf16, #tpu.memory_space<vmem>>, vector<128x128xbf16>
    %cst = arith.constant dense<0.000000e+00> : vector<256x128xf32>
    %2 = tpu.matmul %0, %1, %cst {dimension_numbers = #tpu.dot_dimension_numbers<[1], [0], [0], [1], [0, 0, 1, 1], [], []>} : vector<256x128xbf16>, vector<128x128xbf16>, vector<256x128xf32> -> vector<256x128xf32>
    %c0_3 = arith.constant 0 : index
    %c0_4 = arith.constant 0 : index
    %3 = vector.load %arg4[%c0_3, %c0_4] : memref<256x128xbf16, #tpu.memory_space<vmem>>, vector<256x128xbf16>
    %c0_5 = arith.constant 0 : index
    %c0_6 = arith.constant 0 : index
    %4 = vector.load %arg2[%c0_5, %c0_6] : memref<128x128xbf16, #tpu.memory_space<vmem>>, vector<128x128xbf16>
    %cst_7 = arith.constant dense<0.000000e+00> : vector<256x128xf32>
    %5 = tpu.matmul %3, %4, %cst_7 {dimension_numbers = #tpu.dot_dimension_numbers<[1], [0], [0], [1], [0, 0, 1, 1], [], []>} : vector<256x128xbf16>, vector<128x128xbf16>, vector<256x128xf32> -> vector<256x128xf32>
    %6 = arith.addf %2, %5 : vector<256x128xf32>
    %c0_8 = arith.constant 0 : index
    %c0_9 = arith.constant 0 : index
    %7 = vector.load %arg5[%c0_8, %c0_9] : memref<1x128xf32, #tpu.memory_space<vmem>>, vector<1x128xf32>
    %8 = vector.broadcast %7 : vector<1x128xf32> to vector<256x128xf32>
    %9 = arith.addf %6, %8 : vector<256x128xf32>
    %10 = arith.truncf %9 : vector<256x128xf32> to vector<256x128xbf16>
    %c0_10 = arith.constant 0 : index
    %c0_11 = arith.constant 0 : index
    %11 = vector.load %arg6[%c0_10, %c0_11] : memref<256x128xbf16, #tpu.memory_space<vmem>>, vector<256x128xbf16>
    tpu.vector_store %arg6[%c0_10, %c0_11], %10 {strides = array<i32>} : memref<256x128xbf16, #tpu.memory_space<vmem>>, vector<256x128xbf16>,
    return
  }
  func.func @transform_0(%arg0: i32) -> (i32, i32) {
    %c0_i32 = arith.constant 0 : i32
    %c0_i32_0 = arith.constant 0 : i32
    %c0_i32_1 = arith.constant 0 : i32
    return %c0_i32, %c0_i32_0 : i32, i32
  }
  func.func @transform_1(%arg0: i32) -> (i32, i32) {
    %c0_i32 = arith.constant 0 : i32
    %c0_i32_0 = arith.constant 0 : i32
    %c0_i32_1 = arith.constant 0 : i32
    return %c0_i32, %c0_i32_0 : i32, i32
  }
  func.func @transform_2(%arg0: i32) -> (i32, i32) {
    %c0_i32 = arith.constant 0 : i32
    %c0_i32_0 = arith.constant 0 : i32
    return %arg0, %c0_i32 : i32, i32
  }
  func.func @transform_3(%arg0: i32) -> (i32, i32) {
    %c0_i32 = arith.constant 0 : i32
    %c0_i32_0 = arith.constant 0 : i32
    return %arg0, %c0_i32 : i32, i32
  }
  func.func @transform_4(%arg0: i32) -> (i32, i32) {
    %c0_i32 = arith.constant 0 : i32
    %c0_i32_0 = arith.constant 0 : i32
    %c0_i32_1 = arith.constant 0 : i32
    return %c0_i32, %c0_i32_0 : i32, i32
  }
  func.func @transform_5(%arg0: i32) -> (i32, i32) {
    %c0_i32 = arith.constant 0 : i32
    %c0_i32_0 = arith.constant 0 : i32
    return %arg0, %c0_i32 : i32, i32
  }
}

</mosaic_0001>

<bundles_post_ra>
// kernel: model_forward.6
= control target key start
LH: loop header
LB: loop body
LE: loop exit
PB: predicated region body
PF: predicated region fallthrough
CT: control target
= control target key end

     0   :  { %v1189_v0 = vmov 0   ;;  %v1190_v5 = vmov 0.0   ;;  %s1541_s2 = inlined_call_operand.vmem [shape: f32[128,1], index: 2, kind: input, shape index: {}]   ;;  %s1542_s5 = inlined_call_operand.vmem [shape: bf16[128,128], index: 5, kind: input, shape index: {}]   ;;  %s1543_s4 = inlined_call_operand.vmem [shape: bf16[128,128], index: 4, kind: input, shape index: {}]   ;;  %s1544_s0 = inlined_call_operand.vmem [shape: bf16[128,128], index: 0, kind: input, shape index: {}]   ;;  %s1545_s1 = inlined_call_operand.vmem [shape: f32[2,128,128], index: 1, kind: input, shape index: {}]   ;;  %s1546_s3 = inlined_call_operand.vmem [shape: f32[1,128], index: 3, kind: input, shape index: {}]   ;;  %s1547_s6 = inlined_call_operand.vmem [shape: f32[1,128], index: 6, kind: input, shape index: {}]   ;;  %s1548_s7 = inlined_call_operand.vmem [shape: bf16[128,128], index: 7, kind: output, shape index: {}]  }
   0x1   :  { %1124 = vset.pattern.permute.xlu1 %v1189_v0  ;;  %1123 = vset.pattern.permute.xlu0 %v1189_v0  ;;  %v78_v1 = vld [vmem:[%s1541_s2 + $0x10] sm:$0xff]  ;;  %v76_v2 = vld [vmem:[%s1541_s2] sm:$0xff]  ;;  %v77_v3 = vld [vmem:[%s1541_s2 + $0x8] sm:$0xff] }
   0x2   :  { %152 = vperm.xlu1 %1124, %v78_v1   ;;  %vm94_vm0 = vcmp.gt.f32.partialorder %v78_v1, 0.0  ;;  %142 = vperm.xlu0 %1123, %v76_v2   ;;  %vm92_vm1 = vcmp.gt.f32.partialorder %v76_v2, 0.0  ;;  %vm93_vm2 = vcmp.gt.f32.partialorder %v77_v3, 0.0  ;;  %v79_v4 = vld [vmem:[%s1541_s2 + $0x18] sm:$0xff]  ;;  %v80_v11 = vld [vmem:[%s1541_s2 + $0x20] sm:$0xff]  ;;  %v81_v12 = vld [vmem:[%s1541_s2 + $0x28] sm:$0xff] }
   0x3   :  { %v890_v6 = vsel %vm94_vm0, 1.0, %v1190_v5  ;;  %v888_v7 = vsel %vm92_vm1, 1.0, %v1190_v5  ;;  %v889_v8 = vsel %vm93_vm2, 1.0, %v1190_v5  ;;  %vm95_vm3 = vcmp.gt.f32.partialorder %v79_v4, 0.0  ;;  %v1165_v14 = vld [vmem:[%s1542_s5] sm:$0xff]   ;;  %v82_v15 = vld [vmem:[%s1541_s2 + $0x30] sm:$0xff] }
   0x4   :  { %v1125_v9 = vpack.i.bf16 %v889_v8, %v888_v7  ;;  %v891_v10 = vsel %vm95_vm3, 1.0, %v1190_v5  ;;  %vm96_vm4 = vcmp.gt.f32.partialorder %v80_v11, 0.0  ;;  %vm97_vm5 = vcmp.gt.f32.partialorder %v81_v12, 0.0  ;;  %1041 = vmatprep.subr.bf16.mxu1 %v1165_v14  ;;  %v1166_v16 = vld [vmem:[%s1543_s4] sm:$0xff]   ;;  %v83_v17 = vld [vmem:[%s1541_s2 + $0x38] sm:$0xff]  ;;  %v1167_v18 = vld [vmem:[%s1542_s5 + $0x8] sm:$0xff]  }
   0x5   :  { %v1130_v13 = vpack.i.bf16 %v891_v10, %v890_v6  ;;  %1042 = vmatpush3.bf16.msra.mxu1 %v1165_v14  ;;  %v892_v19 = vsel %vm96_vm4, 1.0, %v1190_v5  ;;  %v1168_v20 = vld [vmem:[%s1543_s4 + $0x8] sm:$0xff]   ;;  %v893_v21 = vsel %vm97_vm5, 1.0, %v1190_v5  ;;  %vm98_vm6 = vcmp.gt.f32.partialorder %v82_v15, 0.0  ;;  %1073 = vmatprep.subr.bf16.mxu0 %v1166_v16  ;;  %v1169_v22 = vld [vmem:[%s1542_s5 + $0x10] sm:$0xff]   ;;  %v1171_v27 = vld [vmem:[%s1542_s5 + $0x18] sm:$0xff]  }
   0x6   :  { %147 = vperm.xlu0 %1123, %v77_v3   ;;  %1126 = vperm.xlu1 %1124, %v1125_v9   ;;  %vm99_vm7 = vcmp.gt.f32.partialorder %v83_v17, 0.0  ;;  %v1135_v23 = vpack.i.bf16 %v893_v21, %v892_v19  ;;  %v894_v24 = vsel %vm98_vm6, 1.0, %v1190_v5  ;;  %v1170_v25 = vld [vmem:[%s1543_s4 + $0x10] sm:$0xff]   ;;  %v84_v28 = vld [vmem:[%s1541_s2 + $0x40] sm:$0xff]  ;;  %v85_v29 = vld [vmem:[%s1541_s2 + $0x48] sm:$0xff] }
   0x7   :  { %1043 = vmatprep.subr.bf16.mxu1 %v1167_v18  ;;  %1074 = vmatpush3.bf16.msra.mxu0 %v1166_v16  ;;  %v895_v26 = vsel %vm99_vm7, 1.0, %v1190_v5  ;;  %v1172_v30 = vld [vmem:[%s1543_s4 + $0x18] sm:$0xff]   ;;  %v1173_v32 = vld [vmem:[%s1542_s5 + $0x20] sm:$0xff]   ;;  %vm100_vm8 = vcmp.gt.f32.partialorder %v84_v28, 0.0  ;;  %vm101_vm9 = vcmp.gt.f32.partialorder %v85_v29, 0.0  ;;  %v86_v33 = vld [vmem:[%s1541_s2 + $0x50] sm:$0xff] }
   0x8   :  { %1075 = vmatprep.subr.bf16.mxu0 %v1168_v20  ;;  %v1140_v31 = vpack.i.bf16 %v895_v26, %v894_v24  ;;  %v87_v34 = vld [vmem:[%s1541_s2 + $0x58] sm:$0xff]  ;;  %v1174_v35 = vld [vmem:[%s1543_s4 + $0x20] sm:$0xff]   ;;  %v896_v36 = vsel %vm100_vm8, 1.0, %v1190_v5  ;;  %v897_v37 = vsel %vm101_vm9, 1.0, %v1190_v5  ;;  %vm102_vm10 = vcmp.gt.f32.partialorder %v86_v33, 0.0  ;;  %v1175_v38 = vld [vmem:[%s1542_s5 + $0x28] sm:$0xff]  }
   0x9   :  { %1044 = vmatpush3.bf16.msra.mxu1 %v1167_v18  ;;  %vm103_vm11 = vcmp.gt.f32.partialorder %v87_v34, 0.0  ;;  %v1176_v39 = vld [vmem:[%s1543_s4 + $0x28] sm:$0xff]   ;;  %v1145_v40 = vpack.i.bf16 %v897_v37, %v896_v36  ;;  %v898_v41 = vsel %vm102_vm10, 1.0, %v1190_v5  ;;  %v1177_v43 = vld [vmem:[%s1542_s5 + $0x30] sm:$0xff]   ;;  %v88_v44 = vld [vmem:[%s1541_s2 + $0x60] sm:$0xff] }
   0xa   :  { %157 = vperm.xlu0 %1123, %v79_v4   ;;  %1131 = vperm.xlu1 %1124, %v1130_v13   ;;  %v899_v42 = vsel %vm103_vm11, 1.0, %v1190_v5  ;;  %v89_v45 = vld [vmem:[%s1541_s2 + $0x68] sm:$0xff]  ;;  %v1178_v46 = vld [vmem:[%s1543_s4 + $0x30] sm:$0xff]   ;;  %v1181_v48 = vld [vmem:[%s1544_s0] sm:$0xff]   ;;  %vm104_vm12 = vcmp.gt.f32.partialorder %v88_v44, 0.0 }
   0xb   :  { %1045 = vmatprep.subr.bf16.mxu1 %v1169_v22  ;;  %1076 = vmatpush3.bf16.msra.mxu0 %v1168_v20  ;;  %v1150_v47 = vpack.i.bf16 %v899_v42, %v898_v41  ;;  %v90_v49 = vld [vmem:[%s1541_s2 + $0x70] sm:$0xff]  ;;  %v1179_v50 = vld [vmem:[%s1542_s5 + $0x38] sm:$0xff]   ;;  %vm105_vm13 = vcmp.gt.f32.partialorder %v89_v45, 0.0  ;;  %v900_v53 = vsel %vm104_vm12, 1.0, %v1190_v5  ;;  %v1182_v58 = vld [vmem:[%s1544_s0 + $0x8] sm:$0xff]  }
   0xc   :  { %1077 = vmatprep.subr.bf16.mxu0 %v1170_v25  ;;  %v91_v51 = vld [vmem:[%s1541_s2 + $0x78] sm:$0xff]  ;;  %1089 = vmatprep.mubr.bf16.mxu0 %v1181_v48  ;;  %vm106_vm14 = vcmp.gt.f32.partialorder %v90_v49, 0.0  ;;  %v901_v54 = vsel %vm105_vm13, 1.0, %v1190_v5  ;;  %v1183_v59 = vld [vmem:[%s1544_s0 + $0x10] sm:$0xff]   ;;  %v1185_v62 = vld [vmem:[%s1544_s0 + $0x20] sm:$0xff]  }
   0xd   :  { %1046 = vmatpush3.bf16.msra.mxu1 %v1169_v22  ;;  %v1180_v52 = vld [vmem:[%s1543_s4 + $0x38] sm:$0xff]   ;;  %vm107_vm15 = vcmp.gt.f32.partialorder %v91_v51, 0.0  ;;  %v902_v55 = vsel %vm106_vm14, 1.0, %v1190_v5  ;;  %v1155_v56 = vpack.i.bf16 %v901_v54, %v900_v53  ;;  %v1186_v63 = vld [vmem:[%s1544_s0 + $0x28] sm:$0xff]   ;;  %v1187_v0 = vld [vmem:[%s1544_s0 + $0x30] sm:$0xff]  }
   0xe   :  { %162 = vperm.xlu0 %1123, %v80_v11   ;;  %167 = vperm.xlu1 %1124, %v81_v12   ;;  %v903_v57 = vsel %vm107_vm15, 1.0, %v1190_v5  ;;  %v1184_v61 = vld [vmem:[%s1544_s0 + $0x18] sm:$0xff]   ;;  %v27_v4 = vld [vmem:[%s1545_s1] sm:$0xff]  ;;  %v28_v6 = vld [vmem:[%s1545_s1 + $0x8] sm:$0xff] }
   0xf   :  { %1047 = vmatprep.subr.bf16.mxu1 %v1171_v27  ;;  %1078 = vmatpush3.bf16.msra.mxu0 %v1170_v25  ;;  %v1160_v60 = vpack.i.bf16 %v903_v57, %v902_v55  ;;  %v1188_v1 = vld [vmem:[%s1544_s0 + $0x38] sm:$0xff]   ;;  %v872_v5 = vld [vmem:[%s1545_s1 + $0x80] sm:$0xff]  ;;  %v873_v7 = vld [vmem:[%s1545_s1 + $0x88] sm:$0xff] }
  0x10   :  { %1079 = vmatprep.subr.bf16.mxu0 %v1172_v30  ;;  %v29_v8 = vld [vmem:[%s1545_s1 + $0x10] sm:$0xff]  ;;  %v60_v10 = vadd.f32 %v872_v5, %v27_v4  ;;  %v61_v12 = vadd.f32 %v873_v7, %v28_v6  ;;  %v1388_v13 = vld [vmem:[%s1546_s3] ss:$0 sm:$0xff]  ;;  %v875_v16 = vld [vmem:[%s1545_s1 + $0x98] sm:$0xff] }
  0x11   :  { %1048 = vmatpush3.bf16.msra.mxu1 %v1171_v27  ;;  %v874_v9 = vld [vmem:[%s1545_s1 + $0x90] sm:$0xff]  ;;  %v876_v37 = vld [vmem:[%s1545_s1 + $0xa0] sm:$0xff]  ;;  %v879_v48 = vld [vmem:[%s1545_s1 + $0xb8] sm:$0xff] }
  0x12   :  { %1136 = vperm.xlu0 %1123, %v1135_v23   ;;  %172 = vperm.xlu1 %1124, %v82_v15   ;;  %v30_v15 = vld [vmem:[%s1545_s1 + $0x18] sm:$0xff]  ;;  %v62_v19 = vadd.f32 %v874_v9, %v29_v8  ;;  %v33_v53 = vld [vmem:[%s1545_s1 + $0x30] sm:$0xff]  ;;  %v35_v5 = vld [vmem:[%s1545_s1 + $0x40] sm:$0xff] }
  0x13   :  { %1049 = vmatprep.subr.bf16.mxu1 %v1173_v32  ;;  %1080 = vmatpush3.bf16.msra.mxu0 %v1172_v30  ;;  %v63_v23 = vadd.f32 %v875_v16, %v30_v15  ;;  %v878_v54 = vld [vmem:[%s1545_s1 + $0xb0] sm:$0xff] }
  0x14   :  { %1081 = vmatprep.subr.bf16.mxu0 %v1174_v35 }
  0x15   :  { %1050 = vmatpush3.bf16.msra.mxu1 %v1173_v32 }
  0x16   :  { %177 = vperm.xlu0 %1123, %v83_v17   ;;  %1141 = vperm.xlu1 %1124, %v1140_v31  }
  0x17   :  { %1051 = vmatprep.subr.bf16.mxu1 %v1175_v38  ;;  %1082 = vmatpush3.bf16.msra.mxu0 %v1174_v35  ;;  %v31_v35 = vld [vmem:[%s1545_s1 + $0x20] sm:$0xff] }
  0x18   :  { %1083 = vmatprep.subr.bf16.mxu0 %v1176_v39 }
  0x19   :  { %1052 = vmatpush3.bf16.msra.mxu1 %v1175_v38 }
  0x1a   :  { %182 = vperm.xlu0 %1123, %v84_v28   ;;  %187 = vperm.xlu1 %1124, %v85_v29  }
  0x1b   :  { %1053 = vmatprep.subr.bf16.mxu1 %v1177_v43  ;;  %1084 = vmatpush3.bf16.msra.mxu0 %v1176_v39  ;;  %v32_v39 = vld [vmem:[%s1545_s1 + $0x28] sm:$0xff] }
  0x1c   :  { %1085 = vmatprep.subr.bf16.mxu0 %v1178_v46 }
  0x1d   :  { %1054 = vmatpush3.bf16.msra.mxu1 %v1177_v43 }
  0x1e   :  { %1146 = vperm.xlu0 %1123, %v1145_v40   ;;  %192 = vperm.xlu1 %1124, %v86_v33   ;;  %v877_v40 = vld [vmem:[%s1545_s1 + $0xa8] sm:$0xff] }
  0x1f   :  { %1055 = vmatprep.subr.bf16.mxu1 %v1179_v50  ;;  %1086 = vmatpush3.bf16.msra.mxu0 %v1178_v46 }
  0x20   :  { %1087 = vmatprep.subr.bf16.mxu0 %v1180_v52 }
  0x21   :  { %1056 = vmatpush3.bf16.msra.mxu1 %v1179_v50 }
  0x22   :  { %197 = vperm.xlu0 %1123, %v87_v34   ;;  %1151 = vperm.xlu1 %1124, %v1150_v47   ;;  %v34_v47 = vld [vmem:[%s1545_s1 + $0x38] sm:$0xff] }
  0x23   :  { %1088 = vmatpush3.bf16.msra.mxu0 %v1180_v52  ;;  %v67_v55 = vadd.f32 %v879_v48, %v34_v47  ;;  %v884_v47 = vld [vmem:[%s1545_s1 + $0xe0] sm:$0xff] }
  0x26   :  { %202 = vperm.xlu0 %1123, %v88_v44   ;;  %207 = vperm.xlu1 %1124, %v89_v45   ;;  %v64_v44 = vadd.f32 %v876_v37, %v31_v35  ;;  %v65_v45 = vadd.f32 %v877_v40, %v32_v39 }
  0x27   :  { %1090 = vmatmul.mubr.bf16.vlgmr.msra.gmra.mrb[0].mxu0 %v1182_v58 }
  0x28   :  { %1093 = vmatprep.mubr.bf16.mxu0 %v1183_v59 }
  0x2a   :  { %1156 = vperm.xlu0 %1123, %v1155_v56   ;;  %212 = vperm.xlu1 %1124, %v90_v49  }
  0x2e   :  { %217 = vperm.xlu0 %1123, %v91_v51   ;;  %1161 = vperm.xlu1 %1124, %v1160_v60   ;;  %v66_v60 = vadd.f32 %v878_v54, %v33_v53 }
  0x2f   :  { %1094 = vmatmul.mubr.bf16.gmra.mrb[4].mxu0 %v1184_v61 }
  0x30   :  { %1097 = vmatprep.mubr.bf16.mxu0 %v1185_v62 }
  0x37   :  { %1098 = vmatmul.mubr.bf16.gmra.mrb[8].mxu0 %v1186_v63 }
  0x38   :  { %1101 = vmatprep.mubr.bf16.mxu0 %v1187_v0 }
  0x3f   :  { %1102 = vmatmul.mubr.bf16.gmra.mrb[12].mxu0 %v1188_v1 }
  0x81   :  { %v153_v2 = vpop.permute.xlu1 %152  ;;  %v143_v3 = vpop.permute.xlu0 %142 }
  0x82   :  { %v220_v20 = vmul.f32 %v143_v3, %v60_v10  ;;  %v222_v31 = vmul.f32 %v153_v2, %v62_v19  ;;  %v880_v10 = vld [vmem:[%s1545_s1 + $0xc0] sm:$0xff]  ;;  %v38_v19 = vld [vmem:[%s1545_s1 + $0x58] sm:$0xff] }
  0x85   :  { %v148_v11 = vpop.permute.xlu0 %147  ;;  %v1127_v14 = vpop.permute.xlu1 %1126 }
  0x86   :  { %v1129_v17 = vunpack.i.h.bf16 %v1127_v14  ;;  %v1128_v18 = vunpack.i.l.bf16 %v1127_v14  ;;  %v221_v24 = vmul.f32 %v148_v11, %v61_v12  ;;  %v36_v12 = vld [vmem:[%s1545_s1 + $0x48] sm:$0xff] }
  0x87   :  { %v881_v14 = vld [vmem:[%s1545_s1 + $0xc8] sm:$0xff] }
  0x88   :  { %v324_v21 = vmul.f32 %v1129_v17, %v1388_v13  ;;  %v323_v22 = vmul.f32 %v1128_v18, %v1388_v13  ;;  %v68_v17 = vadd.f32 %v880_v10, %v35_v5  ;;  %v69_v18 = vadd.f32 %v881_v14, %v36_v12 }
  0x89   :  { %v158_v25 = vpop.permute.xlu0 %157  ;;  %v1132_v26 = vpop.permute.xlu1 %1131 }
  0x8a   :  { %v1134_v27 = vunpack.i.h.bf16 %v1132_v26  ;;  %v1133_v28 = vunpack.i.l.bf16 %v1132_v26  ;;  %v339_v29 = vadd.f32 %v323_v22, %v220_v20  ;;  %v340_v30 = vadd.f32 %v324_v21, %v221_v24  ;;  %v883_v20 = vld [vmem:[%s1545_s1 + $0xd8] sm:$0xff]  ;;  %v37_v26 = vld [vmem:[%s1545_s1 + $0x50] sm:$0xff] }
  0x8b   :  { %v223_v32 = vmul.f32 %v158_v25, %v63_v23 }
  0x8c   :  { %v326_v33 = vmul.f32 %v1134_v27, %v1388_v13  ;;  %v325_v34 = vmul.f32 %v1133_v28, %v1388_v13  ;;  %v387_v41 = vpack.c.bf16 %v340_v30, %v339_v29  ;;  %v882_v27 = vld [vmem:[%s1545_s1 + $0xd0] sm:$0xff]  ;;  %v71_v28 = vadd.f32 %v883_v20, %v38_v19 }
  0x8d   :  { %v163_v36 = vpop.permute.xlu0 %162  ;;  %v168_v38 = vpop.permute.xlu1 %167 }
  0x8e   :  { %v341_v42 = vadd.f32 %v325_v34, %v222_v31  ;;  %v342_v43 = vadd.f32 %v326_v33, %v223_v32  ;;  %1057 = vmatprep.mubr.bf16.mxu1 %v387_v41  ;;  %v224_v56 = vmul.f32 %v163_v36, %v64_v44  ;;  %v225_v57 = vmul.f32 %v168_v38, %v65_v45 }
  0x8f   :  { %v70_v33 = vadd.f32 %v882_v27, %v37_v26 }
  0x90   :  { %v388_v46 = vpack.c.bf16 %v342_v43, %v341_v42  ;;  %v39_v42 = vld [vmem:[%s1545_s1 + $0x60] sm:$0xff] }
  0x91   :  { %v1137_v49 = vpop.permute.xlu0 %1136  ;;  %v173_v50 = vpop.permute.xlu1 %172  ;;  %v72_v53 = vadd.f32 %v884_v47, %v39_v42 }
  0x92   :  { %v1139_v51 = vunpack.i.h.bf16 %v1137_v49  ;;  %v1138_v52 = vunpack.i.l.bf16 %v1137_v49  ;;  %1058 = vmatmul.mubr.bf16.vlgmr.msra.gmra.mrb[0].mxu1 %v388_v46  ;;  %v226_v7 = vmul.f32 %v173_v50, %v66_v60  ;;  %v40_v49 = vld [vmem:[%s1545_s1 + $0x68] sm:$0xff] }
  0x93   :  { %v885_v50 = vld [vmem:[%s1545_s1 + $0xe8] sm:$0xff] }
  0x94   :  { %v328_v58 = vmul.f32 %v1139_v51, %v1388_v13  ;;  %v327_v59 = vmul.f32 %v1138_v52, %v1388_v13  ;;  %v73_v54 = vadd.f32 %v885_v50, %v40_v49 }
  0x95   :  { %v178_v61 = vpop.permute.xlu0 %177  ;;  %v1142_v62 = vpop.permute.xlu1 %1141 }
  0x96   :  { %v343_v63 = vadd.f32 %v327_v59, %v224_v56  ;;  %v344_v0 = vadd.f32 %v328_v58, %v225_v57  ;;  %v1144_v1 = vunpack.i.h.bf16 %v1142_v62  ;;  %v1143_v2 = vunpack.i.l.bf16 %v1142_v62  ;;  %v887_v56 = vld [vmem:[%s1545_s1 + $0xf8] sm:$0xff]  ;;  %v41_v62 = vld [vmem:[%s1545_s1 + $0x70] sm:$0xff] }
  0x97   :  { %v227_v3 = vmul.f32 %v178_v61, %v67_v55  ;;  %v42_v55 = vld [vmem:[%s1545_s1 + $0x78] sm:$0xff] }
  0x98   :  { %v330_v4 = vmul.f32 %v1144_v1, %v1388_v13  ;;  %v389_v6 = vpack.c.bf16 %v344_v0, %v343_v63  ;;  %v329_v8 = vmul.f32 %v1143_v2, %v1388_v13  ;;  %v886_v63 = vld [vmem:[%s1545_s1 + $0xf0] sm:$0xff]  ;;  %v75_v0 = vadd.f32 %v887_v56, %v42_v55 }
  0x99   :  { %v183_v9 = vpop.permute.xlu0 %182  ;;  %v188_v11 = vpop.permute.xlu1 %187  ;;  %v74_v5 = vadd.f32 %v886_v63, %v41_v62 }
  0x9a   :  { %v346_v15 = vadd.f32 %v330_v4, %v227_v3  ;;  %1061 = vmatprep.mubr.bf16.mxu1 %v389_v6  ;;  %v345_v16 = vadd.f32 %v329_v8, %v226_v7  ;;  %v228_v29 = vmul.f32 %v183_v9, %v68_v17  ;;  %v229_v30 = vmul.f32 %v188_v11, %v69_v18 }
  0x9c   :  { %v390_v23 = vpack.c.bf16 %v346_v15, %v345_v16 }
  0x9d   :  { %v1147_v21 = vpop.permute.xlu0 %1146  ;;  %v193_v22 = vpop.permute.xlu1 %192 }
  0x9e   :  { %v1149_v24 = vunpack.i.h.bf16 %v1147_v21  ;;  %v1148_v25 = vunpack.i.l.bf16 %v1147_v21  ;;  %1062 = vmatmul.mubr.bf16.gmra.mrb[4].mxu1 %v390_v23  ;;  %v230_v44 = vmul.f32 %v193_v22, %v70_v33 }
  0xa0   :  { %v332_v31 = vmul.f32 %v1149_v24, %v1388_v13  ;;  %v331_v32 = vmul.f32 %v1148_v25, %v1388_v13 }
  0xa1   :  { %v198_v34 = vpop.permute.xlu0 %197  ;;  %v1152_v35 = vpop.permute.xlu1 %1151 }
  0xa2   :  { %v347_v36 = vadd.f32 %v331_v32, %v228_v29  ;;  %v348_v37 = vadd.f32 %v332_v31, %v229_v30  ;;  %v1154_v38 = vunpack.i.h.bf16 %v1152_v35  ;;  %v1153_v39 = vunpack.i.l.bf16 %v1152_v35 }
  0xa3   :  { %v231_v40 = vmul.f32 %v198_v34, %v71_v28 }
  0xa4   :  { %v334_v41 = vmul.f32 %v1154_v38, %v1388_v13  ;;  %v391_v43 = vpack.c.bf16 %v348_v37, %v347_v36  ;;  %v333_v45 = vmul.f32 %v1153_v39, %v1388_v13  ;;  %v1495_v37 = vld [vmem:[%s1547_s6] ss:$0 sm:$0xff] }
  0xa5   :  { %v203_v46 = vpop.permute.xlu0 %202  ;;  %v208_v48 = vpop.permute.xlu1 %207 }
  0xa6   :  { %v350_v51 = vadd.f32 %v334_v41, %v231_v40  ;;  %1065 = vmatprep.mubr.bf16.mxu1 %v391_v43  ;;  %v349_v52 = vadd.f32 %v333_v45, %v230_v44  ;;  %v232_v1 = vmul.f32 %v203_v46, %v72_v53  ;;  %v233_v2 = vmul.f32 %v208_v48, %v73_v54 }
  0xa8   :  { %v392_v59 = vpack.c.bf16 %v350_v51, %v349_v52 }
  0xa9   :  { %v1157_v57 = vpop.permute.xlu0 %1156  ;;  %v213_v58 = vpop.permute.xlu1 %212 }
  0xaa   :  { %v1159_v60 = vunpack.i.h.bf16 %v1157_v57  ;;  %v1158_v61 = vunpack.i.l.bf16 %v1157_v57  ;;  %1066 = vmatmul.mubr.bf16.gmra.mrb[8].mxu1 %v392_v59  ;;  %v234_v16 = vmul.f32 %v213_v58, %v74_v5 }
  0xac   :  { %v336_v3 = vmul.f32 %v1159_v60, %v1388_v13  ;;  %v335_v4 = vmul.f32 %v1158_v61, %v1388_v13 }
  0xad   :  { %v218_v6 = vpop.permute.xlu0 %217  ;;  %v1162_v7 = vpop.permute.xlu1 %1161 }
  0xae   :  { %v351_v8 = vadd.f32 %v335_v4, %v232_v1  ;;  %v352_v9 = vadd.f32 %v336_v3, %v233_v2  ;;  %v1164_v10 = vunpack.i.h.bf16 %v1162_v7  ;;  %v1163_v11 = vunpack.i.l.bf16 %v1162_v7 }
  0xaf   :  { %v235_v12 = vmul.f32 %v218_v6, %v75_v0 }
  0xb0   :  { %v338_v14 = vmul.f32 %v1164_v10, %v1388_v13  ;;  %v393_v15 = vpack.c.bf16 %v352_v9, %v351_v8  ;;  %v337_v17 = vmul.f32 %v1163_v11, %v1388_v13 }
  0xb2   :  { %v354_v18 = vadd.f32 %v338_v14, %v235_v12  ;;  %1069 = vmatprep.mubr.bf16.mxu1 %v393_v15  ;;  %v353_v19 = vadd.f32 %v337_v17, %v234_v16 }
  0xb4   :  { %v394_v20 = vpack.c.bf16 %v354_v18, %v353_v19 }
  0xb6   :  { %1070 = vmatmul.mubr.bf16.gmra.mrb[12].mxu1 %v394_v20 }
  0xfa   :  { %v1091_v21 = vpop.f32.mrb[0].mxu0 }
  0xfb   :  { %v686_v22 = vpop.f32.mrb[1].mxu0 }
  0xfc   :  { %v1092_v23 = vpop.f32.mrb[2].mxu0 }
  0xfd   :  { %v689_v24 = vpop.f32.mrb[3].mxu0 }
 0x102   :  { %v1095_v25 = vpop.f32.mrb[4].mxu0 }
 0x103   :  { %v702_v26 = vpop.f32.mrb[5].mxu0 }
 0x104   :  { %v1096_v27 = vpop.f32.mrb[6].mxu0 }
 0x105   :  { %v705_v28 = vpop.f32.mrb[7].mxu0 }
 0x10a   :  { %v1099_v29 = vpop.f32.mrb[8].mxu0 }
 0x10b   :  { %v718_v30 = vpop.f32.mrb[9].mxu0 }
 0x10c   :  { %v1100_v31 = vpop.f32.mrb[10].mxu0 }
 0x10d   :  { %v721_v32 = vpop.f32.mrb[11].mxu0 }
 0x112   :  { %v1484_v33 = vpop.f32.mrb[12].mxu0 }
 0x113   :  { %v1486_v13 = vpop.f32.mrb[13].mxu0 }
 0x114   :  { %v1488_v34 = vpop.f32.mrb[14].mxu0 }
 0x115   :  { %v1490_v35 = vpop.f32.mrb[15].mxu0 }
 0x165   :  { %v1059_v36 = vpop.f32.mrb[0].mxu1 }
 0x166   :  { %v695_v38 = vadd.f32 %v1091_v21, %v1059_v36  ;;  %v493_v39 = vpop.f32.mrb[1].mxu1 }
 0x167   :  { %v687_v40 = vadd.f32 %v686_v22, %v493_v39  ;;  %v1060_v41 = vpop.f32.mrb[2].mxu1 }
 0x168   :  { %v758_v42 = vadd.f32 %v1495_v37, %v695_v38  ;;  %v698_v43 = vadd.f32 %v1092_v23, %v1060_v41  ;;  %v496_v44 = vpop.f32.mrb[3].mxu1 }
 0x169   :  { %v756_v45 = vadd.f32 %v1495_v37, %v687_v40  ;;  %v690_v46 = vadd.f32 %v689_v24, %v496_v44 }
 0x16a   :  { %v759_v47 = vadd.f32 %v1495_v37, %v698_v43  ;;  %v774_v49 = vmax.f32 %v758_v42, 0.0 }
 0x16b   :  { %v757_v48 = vadd.f32 %v1495_v37, %v690_v46  ;;  %v772_v51 = vmax.f32 %v756_v45, 0.0 }
 0x16c   :  { %v775_v50 = vmax.f32 %v759_v47, 0.0 }
 0x16d   :  { %v773_v52 = vmax.f32 %v757_v48, 0.0 }
 0x16e   :  { %v970_v53 = vpack.c.bf16 %v775_v50, %v774_v49 }
 0x16f   :  { %v965_v54 = vpack.c.bf16 %v773_v52, %v772_v51 }
 0x170   :  { %1002 = vst [vmem:[%s1548_s7 + $0x8] sm:$0xff] %v970_v53  }
 0x171   :  { %966 = vst [vmem:[%s1548_s7] sm:$0xff] %v965_v54   ;;  %v1063_v55 = vpop.f32.mrb[4].mxu1 }
 0x172   :  { %v711_v56 = vadd.f32 %v1095_v25, %v1063_v55  ;;  %v509_v57 = vpop.f32.mrb[5].mxu1 }
 0x173   :  { %v703_v58 = vadd.f32 %v702_v26, %v509_v57  ;;  %v1064_v59 = vpop.f32.mrb[6].mxu1 }
 0x174   :  { %v762_v60 = vadd.f32 %v1495_v37, %v711_v56  ;;  %v714_v61 = vadd.f32 %v1096_v27, %v1064_v59  ;;  %v512_v62 = vpop.f32.mrb[7].mxu1 }
 0x175   :  { %v760_v63 = vadd.f32 %v1495_v37, %v703_v58  ;;  %v706_v0 = vadd.f32 %v705_v28, %v512_v62 }
 0x176   :  { %v763_v1 = vadd.f32 %v1495_v37, %v714_v61  ;;  %v778_v3 = vmax.f32 %v762_v60, 0.0 }
 0x177   :  { %v761_v2 = vadd.f32 %v1495_v37, %v706_v0  ;;  %v776_v5 = vmax.f32 %v760_v63, 0.0 }
 0x178   :  { %v779_v4 = vmax.f32 %v763_v1, 0.0 }
 0x179   :  { %v777_v6 = vmax.f32 %v761_v2, 0.0 }
 0x17a   :  { %v980_v7 = vpack.c.bf16 %v779_v4, %v778_v3 }
 0x17b   :  { %v975_v8 = vpack.c.bf16 %v777_v6, %v776_v5 }
 0x17c   :  { %1004 = vst [vmem:[%s1548_s7 + $0x18] sm:$0xff] %v980_v7  }
 0x17d   :  { %1003 = vst [vmem:[%s1548_s7 + $0x10] sm:$0xff] %v975_v8   ;;  %v1067_v9 = vpop.f32.mrb[8].mxu1 }
 0x17e   :  { %v727_v10 = vadd.f32 %v1099_v29, %v1067_v9  ;;  %v525_v11 = vpop.f32.mrb[9].mxu1 }
 0x17f   :  { %v719_v12 = vadd.f32 %v718_v30, %v525_v11  ;;  %v1068_v14 = vpop.f32.mrb[10].mxu1 }
 0x180   :  { %v766_v15 = vadd.f32 %v1495_v37, %v727_v10  ;;  %v730_v16 = vadd.f32 %v1100_v31, %v1068_v14  ;;  %v528_v17 = vpop.f32.mrb[11].mxu1 }
 0x181   :  { %v764_v18 = vadd.f32 %v1495_v37, %v719_v12  ;;  %v722_v19 = vadd.f32 %v721_v32, %v528_v17 }
 0x182   :  { %v767_v20 = vadd.f32 %v1495_v37, %v730_v16  ;;  %v782_v22 = vmax.f32 %v766_v15, 0.0 }
 0x183   :  { %v765_v21 = vadd.f32 %v1495_v37, %v722_v19  ;;  %v780_v24 = vmax.f32 %v764_v18, 0.0 }
 0x184   :  { %v783_v23 = vmax.f32 %v767_v20, 0.0 }
 0x185   :  { %v781_v25 = vmax.f32 %v765_v21, 0.0 }
 0x186   :  { %v990_v26 = vpack.c.bf16 %v783_v23, %v782_v22 }
 0x187   :  { %v985_v27 = vpack.c.bf16 %v781_v25, %v780_v24 }
 0x188   :  { %1006 = vst [vmem:[%s1548_s7 + $0x28] sm:$0xff] %v990_v26  }
 0x189   :  { %1005 = vst [vmem:[%s1548_s7 + $0x20] sm:$0xff] %v985_v27   ;;  %v1071_v28 = vpop.f32.mrb[12].mxu1 }
 0x18a   :  { %v743_v29 = vadd.f32 %v1484_v33, %v1071_v28  ;;  %v541_v30 = vpop.f32.mrb[13].mxu1 }
 0x18b   :  { %v735_v31 = vadd.f32 %v1486_v13, %v541_v30  ;;  %v1072_v32 = vpop.f32.mrb[14].mxu1 }
 0x18c   :  { %v770_v36 = vadd.f32 %v1495_v37, %v743_v29  ;;  %v746_v38 = vadd.f32 %v1488_v34, %v1072_v32  ;;  %v544_v39 = vpop.f32.mrb[15].mxu1 }
 0x18d   :  { %v768_v40 = vadd.f32 %v1495_v37, %v735_v31  ;;  %v738_v41 = vadd.f32 %v1490_v35, %v544_v39 }
 0x18e   :  { %v771_v42 = vadd.f32 %v1495_v37, %v746_v38  ;;  %v786_v44 = vmax.f32 %v770_v36, 0.0 }
 0x18f   :  { %v769_v43 = vadd.f32 %v1495_v37, %v738_v41  ;;  %v784_v33 = vmax.f32 %v768_v40, 0.0 }
 0x190   :  { %v787_v45 = vmax.f32 %v771_v42, 0.0 }
 0x191   :  { %v785_v46 = vmax.f32 %v769_v43, 0.0 }
 0x192   :  { %v1000_v47 = vpack.c.bf16 %v787_v45, %v786_v44 }
 0x193   :  { %v995_v13 = vpack.c.bf16 %v785_v46, %v784_v33 }
 0x194   :  { %1008 = vst [vmem:[%s1548_s7 + $0x38] sm:$0xff] %v1000_v47  }
 0x195   :  { %1007 = vst [vmem:[%s1548_s7 + $0x30] sm:$0xff] %v995_v13  }

// kernel: model_forward.7
= control target key start
LH: loop header
LB: loop body
LE: loop exit
PB: predicated region body
PF: predicated region fallthrough
CT: control target
= control target key end

     0   :  { %s2282_s21 = smov 0   ;;  %s2284_s22 = smov 0   ;;  %s2534_s0 = inlined_call_operand.vmem [shape: bf16[128,128], index: 0, kind: input, shape index: {}]   ;;  %s2535_s1 = inlined_call_operand.vmem [shape: bf16[1024,128], index: 1, kind: input, shape index: {}]   ;;  %s2536_s2 = inlined_call_operand.vmem [shape: bf16[1024,128], index: 2, kind: input, shape index: {}]   ;;  %s2537_s3 = inlined_call_operand.vmem [shape: bf16[1024,128], index: 3, kind: input, shape index: {}]   ;;  %s2538_s4 = inlined_call_operand.vmem [shape: bf16[128,128], index: 4, kind: input, shape index: {}]   ;;  %s2539_s5 = inlined_call_operand.vmem [shape: bf16[128,128], index: 5, kind: input, shape index: {}]   ;;  %s2540_s6 = inlined_call_operand.vmem [shape: f32[2,128,128], index: 6, kind: output, shape index: {}]  }
   0x1   :  { %s2286_s23 = smov 0   ;;  %s2288_s24 = smov 0  }
   0x2   :  { %s2290_s25 = smov 0  }
   0x3 LB: > { %s25_s26 = sadd.s32 1, %s2236_s23  ;;  %s28_s27 = sadd.s32 1, %s2240_s24  ;;  %s2244_s25 = sphi %s2290_s25, %s16_s25   ;;  %s2240_s24 = sphi %s2288_s24, %s2544_s24   ;;  %s2236_s23 = sphi %s2286_s23, %s2543_s23   ;;  %s2232_s22 = sphi %s2284_s22, %s2542_s22   ;;  %s2228_s21 = sphi %s2282_s21, %s2541_s21  }
   0x4   : > { %p26_p0 = scmp.ge.s32.totalorder %s25_s26, 2  ;;  %p1685_p1 = scmp.ge.s32.totalorder %s2244_s25, 1 }
   0x5   : > { %p271_p2 = scmp.lt.s32.totalorder %s2244_s25, 5 }
   0x6   : > { %s2546_s26 = smov (%p26_p0, %s25_s26), 0  ;;  %s2548_s27 = smov (!%p26_p0, %s28_s27), %s2240_s24 }
   0x7   : > { %p272_p3 = pnand %p1685_p1, %p271_p2  ;;  %p30_p4 = scmp.ge.s32.totalorder %s2548_s27, 2 }
   0x8   : > { %s1686_s28 = sshll.u32 (!%p272_p3), %s2232_s22, 1  ;;  %p347_p5 = scmp.lt.s32.totalorder (!%p272_p3), %s2232_s22, 1 }
   0x9   : > { %s2550_s27 = smov (%p30_p4, %s2548_s27), 0  ;;  %275 = sbr.rel (%p272_p3) target bundleno = 900 (0x384), region = 44 }
   0xa   : > { %s318_s29 = sadd.s32 (!%p272_p3), %s2228_s21, %s1686_s28  ;;  %p1697_p7 = scmp.ne.s32.totalorder (!%p272_p3), %s2228_s21, 0 }
   0xb   : > { %s1687_s30 = sshll.u32 (!%p272_p3), %s318_s29, 5 }
   0xc   : > { %p320_p6 = scmp.lt.s32.totalorder (!%p272_p3), %s1687_s30, 127 }
  0x10   : > { %s2552_s22 = smov (!%p347_p5, %s2232_s22), 1  ;;  %s2554_s30 = smov (!%p320_p6, %s1687_s30), 127 }
  0x11   : > { %s1772_s7 = sshll.u32 %s2552_s22, 7  ;;  %s1688_s8 = sshll.u32 %s2554_s30, 2  ;;  %v2134_v0 = vld [vmem:[%s2538_s4] sm:$0xff] (!%p1697_p7)   ;;  %v2135_v1 = vld [vmem:[%s2538_s4 + $0x8] sm:$0xff] (!%p1697_p7)   ;;  %v2136_v2 = vld [vmem:[%s2538_s4 + $0x10] sm:$0xff] (!%p1697_p7)   ;;  %v2246_v16 = vmov (!%p1697_p7), 0.0  }
  0x12   : > { %s2318_s11 = scalar_lea.vmem %s2540_s6, %s1772_s7  ;;  %s2323_s14 = scalar_lea.vmem %s2535_s1, %s1688_s8  ;;  %1901 = vmatprep.subr.bf16.mxu0 (!%p1697_p7), %v2134_v0  ;;  %2029 = vmatprep.subr.bf16.mxu1 (!%p1697_p7), %v2134_v0  ;;  %v2137_v3 = vld [vmem:[%s2538_s4 + $0x18] sm:$0xff] (!%p1697_p7)   ;;  %v2142_v4 = vld [vmem:[%s2534_s0] sm:$0xff] (!%p1697_p7)   ;;  %v2139_v7 = vld [vmem:[%s2538_s4 + $0x28] sm:$0xff] (!%p1697_p7)  }
  0x13   : > { %s2328_s17 = scalar_lea.vmem %s2536_s2, %s1688_s8  ;;  %s2333_s20 = scalar_lea.vmem %s2537_s3, %s1688_s8  ;;  %1902 = vmatpush3.bf16.msra.mxu0 (!%p1697_p7), %v2134_v0  ;;  %2037 = vmatpush3.bf16.msra.mxu1 (!%p1697_p7), %v2134_v0  ;;  %v2143_v5 = vld [vmem:[%s2534_s0 + $0x20] sm:$0xff] (!%p1697_p7)   ;;  %v2140_v8 = vld [vmem:[%s2538_s4 + $0x30] sm:$0xff] (!%p1697_p7)   ;;  %v2141_v9 = vld [vmem:[%s2538_s4 + $0x38] sm:$0xff] (!%p1697_p7)   ;;  %598 = vst [vmem:[%s2318_s11] sm:$0xff] (!%p1697_p7), %v2246_v16 }
  0x14   : > { %356 = sbr.rel (%p1697_p7) target bundleno = 276 (0x114), region = 48  ;;  %1903 = vmatprep.subr.bf16.mxu0 (!%p1697_p7), %v2135_v1  ;;  %2030 = vmatprep.subr.bf16.mxu1 (!%p1697_p7), %v2135_v1  ;;  %v2138_v6 = vld [vmem:[%s2538_s4 + $0x20] sm:$0xff] (!%p1697_p7)   ;;  %v2144_v10 = vld [vmem:[%s2534_s0 + $0x8] sm:$0xff] (!%p1697_p7)   ;;  %v2146_v12 = vld [vmem:[%s2534_s0 + $0x10] sm:$0xff] (!%p1697_p7)   ;;  %599 = vst [vmem:[%s2318_s11 + $0x8] sm:$0xff] (!%p1697_p7), %v2246_v16 }
  0x15   : > { %1917 = vmatprep.mubr.bf16.mxu0 (!%p1697_p7), %v2142_v4  ;;  %1925 = vmatprep.mubr.bf16.mxu1 (!%p1697_p7), %v2143_v5  ;;  %v2145_v11 = vld [vmem:[%s2534_s0 + $0x28] sm:$0xff] (!%p1697_p7)   ;;  %v2147_v13 = vld [vmem:[%s2534_s0 + $0x30] sm:$0xff] (!%p1697_p7)   ;;  %v2148_v14 = vld [vmem:[%s2534_s0 + $0x18] sm:$0xff] (!%p1697_p7)   ;;  %600 = vst [vmem:[%s2318_s11 + $0x10] sm:$0xff] (!%p1697_p7), %v2246_v16 }
  0x16   : > { %v2149_v15 = vld [vmem:[%s2534_s0 + $0x38] sm:$0xff] (!%p1697_p7)   ;;  %601 = vst [vmem:[%s2318_s11 + $0x18] sm:$0xff] (!%p1697_p7), %v2246_v16  ;;  %602 = vst [vmem:[%s2318_s11 + $0x20] sm:$0xff] (!%p1697_p7), %v2246_v16 }
  0x17   : > { %1904 = vmatpush3.bf16.msra.mxu0 (!%p1697_p7), %v2135_v1  ;;  %2038 = vmatpush3.bf16.msra.mxu1 (!%p1697_p7), %v2135_v1  ;;  %603 = vst [vmem:[%s2318_s11 + $0x28] sm:$0xff] (!%p1697_p7), %v2246_v16  ;;  %604 = vst [vmem:[%s2318_s11 + $0x30] sm:$0xff] (!%p1697_p7), %v2246_v16 }
  0x18   : > { %1905 = vmatprep.subr.bf16.mxu0 (!%p1697_p7), %v2136_v2  ;;  %2031 = vmatprep.subr.bf16.mxu1 (!%p1697_p7), %v2136_v2  ;;  %605 = vst [vmem:[%s2318_s11 + $0x38] sm:$0xff] (!%p1697_p7), %v2246_v16  ;;  %606 = vst [vmem:[%s2318_s11 + $0x40] sm:$0xff] (!%p1697_p7), %v2246_v16 }
  0x19   : > { %607 = vst [vmem:[%s2318_s11 + $0x48] sm:$0xff] (!%p1697_p7), %v2246_v16  ;;  %608 = vst [vmem:[%s2318_s11 + $0x50] sm:$0xff] (!%p1697_p7), %v2246_v16 }
  0x1a   : > { %609 = vst [vmem:[%s2318_s11 + $0x58] sm:$0xff] (!%p1697_p7), %v2246_v16  ;;  %610 = vst [vmem:[%s2318_s11 + $0x60] sm:$0xff] (!%p1697_p7), %v2246_v16 }
  0x1b   : > { %1906 = vmatpush3.bf16.msra.mxu0 %v2136_v2  ;;  %2039 = vmatpush3.bf16.msra.mxu1 %v2136_v2  ;;  %611 = vst [vmem:[%s2318_s11 + $0x68] sm:$0xff] %v2246_v16  ;;  %612 = vst [vmem:[%s2318_s11 + $0x70] sm:$0xff] %v2246_v16 }
  0x1c   : > { %1907 = vmatprep.subr.bf16.mxu0 %v2137_v3  ;;  %2032 = vmatprep.subr.bf16.mxu1 %v2137_v3  ;;  %613 = vst [vmem:[%s2318_s11 + $0x78] sm:$0xff] %v2246_v16 }
  0x1f   : > { %1908 = vmatpush3.bf16.msra.mxu0 %v2137_v3  ;;  %2040 = vmatpush3.bf16.msra.mxu1 %v2137_v3 }
  0x20   : > { %1909 = vmatprep.subr.bf16.mxu0 %v2138_v6  ;;  %2033 = vmatprep.subr.bf16.mxu1 %v2138_v6 }
  0x23   : > { %1910 = vmatpush3.bf16.msra.mxu0 %v2138_v6  ;;  %2041 = vmatpush3.bf16.msra.mxu1 %v2138_v6 }
  0x24   : > { %1911 = vmatprep.subr.bf16.mxu0 %v2139_v7  ;;  %2034 = vmatprep.subr.bf16.mxu1 %v2139_v7 }
  0x27   : > { %1912 = vmatpush3.bf16.msra.mxu0 %v2139_v7  ;;  %2042 = vmatpush3.bf16.msra.mxu1 %v2139_v7 }
  0x28   : > { %1913 = vmatprep.subr.bf16.mxu0 %v2140_v8  ;;  %2035 = vmatprep.subr.bf16.mxu1 %v2140_v8 }
  0x2b   : > { %1914 = vmatpush3.bf16.msra.mxu0 %v2140_v8  ;;  %2043 = vmatpush3.bf16.msra.mxu1 %v2140_v8 }
  0x2c   : > { %1915 = vmatprep.subr.bf16.mxu0 %v2141_v9  ;;  %2036 = vmatprep.subr.bf16.mxu1 %v2141_v9 }
  0x2f   : > { %1916 = vmatpush3.bf16.msra.mxu0 %v2141_v9  ;;  %2044 = vmatpush3.bf16.msra.mxu1 %v2141_v9 }
  0x32   : > { %1918 = vmatmul.mubr.bf16.vlgmr.msra.gmra.mrb[0].mxu0 %v2144_v10  ;;  %1926 = vmatmul.mubr.bf16.vlgmr.msra.gmra.mrb[0].mxu1 %v2145_v11 }
  0x33   : > { %1921 = vmatprep.mubr.bf16.mxu0 %v2146_v12  ;;  %1929 = vmatprep.mubr.bf16.mxu1 %v2147_v13 }
  0x3a   : > { %1922 = vmatmul.mubr.bf16.gmra.mrb[4].mxu0 %v2148_v14  ;;  %1930 = vmatmul.mubr.bf16.gmra.mrb[4].mxu1 %v2149_v15 }
 0x105   : > { %v1919_v17 = vpop.f32.mrb[0].mxu0  ;;  %v1927_v18 = vpop.f32.mrb[0].mxu1 }
 0x106   : > { %v519_v19 = vpop.f32.mrb[1].mxu0  ;;  %v551_v20 = vpop.f32.mrb[1].mxu1 }
 0x107   : > { %v1920_v21 = vpop.f32.mrb[2].mxu0  ;;  %v1928_v22 = vpop.f32.mrb[2].mxu1 }
 0x108   : > { %v583_v23 = vpack.c.bf16 %v1920_v21, %v1919_v17  ;;  %v587_v24 = vpack.c.bf16 %v1928_v22, %v1927_v18  ;;  %v522_v25 = vpop.f32.mrb[3].mxu0  ;;  %v554_v26 = vpop.f32.mrb[3].mxu1 }
 0x109   : > { %v582_v27 = vpack.c.bf16 %v522_v25, %v519_v19  ;;  %v586_v28 = vpack.c.bf16 %v554_v26, %v551_v20 }
 0x10a   : > { %591 = vst [vmem:[#allocation2 + $0x8] sm:$0xff] %v583_v23  ;;  %595 = vst [vmem:[#allocation2 + $0x28] sm:$0xff] %v587_v24 }
 0x10b   : > { %590 = vst [vmem:[#allocation2] sm:$0xff] %v582_v27  ;;  %594 = vst [vmem:[#allocation2 + $0x20] sm:$0xff] %v586_v28 }
 0x10d   : > { %v1923_v29 = vpop.f32.mrb[4].mxu0  ;;  %v1931_v30 = vpop.f32.mrb[4].mxu1 }
 0x10e   : > { %v535_v31 = vpop.f32.mrb[5].mxu0  ;;  %v567_v32 = vpop.f32.mrb[5].mxu1 }
 0x10f   : > { %v1924_v33 = vpop.f32.mrb[6].mxu0  ;;  %v1932_v34 = vpop.f32.mrb[6].mxu1 }
 0x110   : > { %v585_v35 = vpack.c.bf16 %v1924_v33, %v1923_v29  ;;  %v589_v36 = vpack.c.bf16 %v1932_v34, %v1931_v30  ;;  %v538_v37 = vpop.f32.mrb[7].mxu0  ;;  %v570_v38 = vpop.f32.mrb[7].mxu1 }
 0x111   : > { %v584_v39 = vpack.c.bf16 %v538_v37, %v535_v31  ;;  %v588_v40 = vpack.c.bf16 %v570_v38, %v567_v32 }
 0x112   : > { %593 = vst [vmem:[#allocation2 + $0x18] sm:$0xff] %v585_v35  ;;  %597 = vst [vmem:[#allocation2 + $0x38] sm:$0xff] %v589_v36 }
 0x113   : > { %592 = vst [vmem:[#allocation2 + $0x10] sm:$0xff] %v584_v39  ;;  %596 = vst [vmem:[#allocation2 + $0x30] sm:$0xff] %v588_v40 }
 0x114 PF: > { %v2150_v41 = vld [vmem:[%s2539_s5] sm:$0xff]   ;;  %v2151_v42 = vld [vmem:[%s2539_s5 + $0x8] sm:$0xff]   ;;  %v2152_v43 = vld [vmem:[%s2539_s5 + $0x10] sm:$0xff]  }
 0x115   : > { %1933 = vmatprep.subr.bf16.mxu0 %v2150_v41  ;;  %2045 = vmatprep.subr.bf16.mxu1 %v2150_v41  ;;  %v2153_v44 = vld [vmem:[%s2539_s5 + $0x18] sm:$0xff]   ;;  %v2158_v45 = vld [vmem:[%s2323_s14] sm:$0xff]   ;;  %v2155_v47 = vld [vmem:[%s2539_s5 + $0x28] sm:$0xff]  }
 0x116   : > { %1934 = vmatpush3.bf16.msra.mxu0 %v2150_v41  ;;  %2053 = vmatpush3.bf16.msra.mxu1 %v2150_v41  ;;  %v2154_v46 = vld [vmem:[%s2539_s5 + $0x20] sm:$0xff]   ;;  %v2156_v48 = vld [vmem:[%s2539_s5 + $0x30] sm:$0xff]   ;;  %v2157_v49 = vld [vmem:[%s2539_s5 + $0x38] sm:$0xff]  }
 0x117   : > { %1935 = vmatprep.subr.bf16.mxu0 %v2151_v42  ;;  %2046 = vmatprep.subr.bf16.mxu1 %v2151_v42  ;;  %v2174_v50 = vld [vmem:[%s2323_s14 + $0x40] sm:$0xff]   ;;  %v2159_v51 = vld [vmem:[%s2323_s14 + $0x8] sm:$0xff]   ;;  %v2160_v54 = vld [vmem:[%s2323_s14 + $0x10] sm:$0xff]  }
 0x118   : > { %1949 = vmatprep.mubr.bf16.mxu0 %v2158_v45  ;;  %v646_v52 = vld [vmem:[#allocation2] sm:$0xff]  ;;  %1965 = vmatprep.mubr.bf16.mxu1 %v2174_v50  ;;  %v2175_v53 = vld [vmem:[%s2323_s14 + $0x48] sm:$0xff]   ;;  %v2178_v55 = vld [vmem:[%s2323_s14 + $0x50] sm:$0xff]  }
 0x119   : > { %v647_v56 = vld [vmem:[#allocation2 + $0x8] sm:$0xff]  ;;  %v2161_v57 = vld [vmem:[%s2323_s14 + $0x18] sm:$0xff]   ;;  %v2162_v60 = vld [vmem:[%s2323_s14 + $0x20] sm:$0xff]  }
 0x11a   : > { %1936 = vmatpush3.bf16.msra.mxu0 %v2151_v42  ;;  %2054 = vmatpush3.bf16.msra.mxu1 %v2151_v42  ;;  %v648_v58 = vld [vmem:[#allocation2 + $0x10] sm:$0xff]  ;;  %v2179_v59 = vld [vmem:[%s2323_s14 + $0x58] sm:$0xff]   ;;  %v2182_v61 = vld [vmem:[%s2323_s14 + $0x60] sm:$0xff]  }
 0x11b   : > { %1937 = vmatprep.subr.bf16.mxu0 %v2152_v43  ;;  %2047 = vmatprep.subr.bf16.mxu1 %v2152_v43  ;;  %v649_v62 = vld [vmem:[#allocation2 + $0x18] sm:$0xff]  ;;  %v650_v63 = vld [vmem:[#allocation2 + $0x20] sm:$0xff]  ;;  %v2163_v1 = vld [vmem:[%s2323_s14 + $0x28] sm:$0xff]  }
 0x11c   : > { %v2190_v0 = vld [vmem:[%s2333_s20 + $0x40] sm:$0xff]   ;;  %v2164_v3 = vld [vmem:[%s2323_s14 + $0x30] sm:$0xff]   ;;  %v2192_v4 = vld [vmem:[%s2333_s20 + $0x48] sm:$0xff]  }
 0x11d   : > { %v2191_v2 = vld [vmem:[%s2333_s20] sm:$0xff]   ;;  %1440 = vxpose.xlu0.c.b16.start [1/8] %v2190_v0, 128  ;;  %v2183_v5 = vld [vmem:[%s2323_s14 + $0x68] sm:$0xff]   ;;  %v2186_v7 = vld [vmem:[%s2323_s14 + $0x70] sm:$0xff]  }
 0x11e   : > { %1938 = vmatpush3.bf16.msra.mxu0 %v2152_v43  ;;  %2055 = vmatpush3.bf16.msra.mxu1 %v2152_v43  ;;  %v651_v6 = vld [vmem:[#allocation2 + $0x28] sm:$0xff]  ;;  %v2194_v9 = vld [vmem:[%s2333_s20 + $0x50] sm:$0xff]   ;;  %v2165_v11 = vld [vmem:[%s2323_s14 + $0x38] sm:$0xff]  }
 0x11f   : > { %1939 = vmatprep.subr.bf16.mxu0 %v2153_v44  ;;  %2048 = vmatprep.subr.bf16.mxu1 %v2153_v44  ;;  %v2193_v8 = vld [vmem:[%s2333_s20 + $0x8] sm:$0xff]   ;;  %v652_v10 = vld [vmem:[#allocation2 + $0x30] sm:$0xff]  ;;  %v2196_v13 = vld [vmem:[%s2333_s20 + $0x58] sm:$0xff]  }
 0x120   : > { %1424 = vxpose.xlu1.c.b16.start [1/8] %v2191_v2, 128  ;;  %v2195_v12 = vld [vmem:[%s2333_s20 + $0x10] sm:$0xff]   ;;  %v2187_v14 = vld [vmem:[%s2323_s14 + $0x78] sm:$0xff]   ;;  %v2166_v16 = vld [vmem:[%s2328_s17] sm:$0xff]  }
 0x121   : > { %1441 = vxpose.xlu0.c.b16.cont [2/8] %v2192_v4, 128  ;;  %v653_v15 = vld [vmem:[#allocation2 + $0x38] sm:$0xff]  ;;  %v2198_v18 = vld [vmem:[%s2333_s20 + $0x60] sm:$0xff]   ;;  %v2200_v20 = vld [vmem:[%s2333_s20 + $0x68] sm:$0xff]  }
 0x122   : > { %1940 = vmatpush3.bf16.msra.mxu0 %v2153_v44  ;;  %2056 = vmatpush3.bf16.msra.mxu1 %v2153_v44  ;;  %v2197_v17 = vld [vmem:[%s2333_s20 + $0x18] sm:$0xff]   ;;  %v2199_v19 = vld [vmem:[%s2333_s20 + $0x20] sm:$0xff]   ;;  %v2167_v21 = vld [vmem:[%s2328_s17 + $0x8] sm:$0xff]  }
 0x123   : > { %1941 = vmatprep.subr.bf16.mxu0 %v2154_v46  ;;  %2049 = vmatprep.subr.bf16.mxu1 %v2154_v46  ;;  %v2168_v22 = vld [vmem:[%s2328_s17 + $0x10] sm:$0xff]   ;;  %v2201_v23 = vld [vmem:[%s2333_s20 + $0x28] sm:$0xff]   ;;  %v2204_v26 = vld [vmem:[%s2333_s20 + $0x78] sm:$0xff]  }
 0x124   : > { %1425 = vxpose.xlu1.c.b16.cont [2/8] %v2193_v8, 128  ;;  %v2202_v24 = vld [vmem:[%s2333_s20 + $0x70] sm:$0xff]   ;;  %v2169_v27 = vld [vmem:[%s2328_s17 + $0x18] sm:$0xff]   ;;  %v2170_v28 = vld [vmem:[%s2328_s17 + $0x20] sm:$0xff]  }
 0x125   : > { %1442 = vxpose.xlu0.c.b16.cont [3/8] %v2194_v9, 128  ;;  %v2203_v25 = vld [vmem:[%s2333_s20 + $0x30] sm:$0xff]   ;;  %v2205_v29 = vld [vmem:[%s2333_s20 + $0x38] sm:$0xff]   ;;  %v2171_v30 = vld [vmem:[%s2328_s17 + $0x28] sm:$0xff]  }
 0x126   : > { %1942 = vmatpush3.bf16.msra.mxu0 %v2154_v46  ;;  %2057 = vmatpush3.bf16.msra.mxu1 %v2154_v46  ;;  %v2172_v31 = vld [vmem:[%s2328_s17 + $0x30] sm:$0xff]   ;;  %v2173_v32 = vld [vmem:[%s2328_s17 + $0x38] sm:$0xff]   ;;  %v2176_v33 = vld [vmem:[%s2328_s17 + $0x40] sm:$0xff]  }
 0x127   : > { %1943 = vmatprep.subr.bf16.mxu0 %v2155_v47  ;;  %2050 = vmatprep.subr.bf16.mxu1 %v2155_v47  ;;  %v2177_v34 = vld [vmem:[%s2328_s17 + $0x48] sm:$0xff]   ;;  %v2180_v35 = vld [vmem:[%s2328_s17 + $0x50] sm:$0xff]   ;;  %v2181_v36 = vld [vmem:[%s2328_s17 + $0x58] sm:$0xff]  }
 0x128   : > { %1426 = vxpose.xlu1.c.b16.cont [3/8] %v2195_v12, 128  ;;  %v2184_v37 = vld [vmem:[%s2328_s17 + $0x60] sm:$0xff]   ;;  %v2185_v38 = vld [vmem:[%s2328_s17 + $0x68] sm:$0xff]   ;;  %v2188_v39 = vld [vmem:[%s2328_s17 + $0x70] sm:$0xff]  }
 0x129   : > { %1443 = vxpose.xlu0.c.b16.cont [4/8] %v2196_v13, 128  ;;  %v2189_v40 = vld [vmem:[%s2328_s17 + $0x78] sm:$0xff]  }
 0x12a   : > { %1944 = vmatpush3.bf16.msra.mxu0 %v2155_v47  ;;  %2058 = vmatpush3.bf16.msra.mxu1 %v2155_v47 }
 0x12b   : > { %1945 = vmatprep.subr.bf16.mxu0 %v2156_v48  ;;  %2051 = vmatprep.subr.bf16.mxu1 %v2156_v48 }
 0x12c   : > { %1427 = vxpose.xlu1.c.b16.cont [4/8] %v2197_v17, 128 }
 0x12d   : > { %1444 = vxpose.xlu0.c.b16.cont [5/8] %v2198_v18, 128 }
 0x12e   : > { %1946 = vmatpush3.bf16.msra.mxu0 %v2156_v48  ;;  %2059 = vmatpush3.bf16.msra.mxu1 %v2156_v48 }
 0x12f   : > { %1947 = vmatprep.subr.bf16.mxu0 %v2157_v49  ;;  %2052 = vmatprep.subr.bf16.mxu1 %v2157_v49 }
 0x130   : > { %1428 = vxpose.xlu1.c.b16.cont [5/8] %v2199_v19, 128 }
 0x131   : > { %1445 = vxpose.xlu0.c.b16.cont [6/8] %v2200_v20, 128 }
 0x132   : > { %1948 = vmatpush3.bf16.msra.mxu0 %v2157_v49  ;;  %2060 = vmatpush3.bf16.msra.mxu1 %v2157_v49 }
 0x133   : > { %1981 = vmatprep.subr.bf16.mxu0 %v646_v52 }
 0x134   : > { %1429 = vxpose.xlu1.c.b16.cont [6/8] %v2201_v23, 128 }
 0x135   : > { %1950 = vmatmul.mubr.bf16.vlgmr.msra.gmra.mrb[0].mxu0 %v2159_v51  ;;  %1966 = vmatmul.mubr.bf16.vlgmr.msra.gmra.mrb[0].mxu1 %v2175_v53 }
 0x136   : > { %1982 = vmatpush3.bf16.msra.mxu0 %v646_v52  ;;  %1953 = vmatprep.mubr.bf16.mxu0 %v2160_v54 }
 0x137   : > { %1983 = vmatprep.subr.bf16.mxu0 %v647_v56  ;;  %1969 = vmatprep.mubr.bf16.mxu1 %v2178_v55 }
 0x138   : > { %1446 = vxpose.xlu0.c.b16.cont [7/8] %v2202_v24, 128  ;;  %1430 = vxpose.xlu1.c.b16.cont [7/8] %v2203_v25, 128 }
 0x13a   : > { %1984 = vmatpush3.bf16.msra.mxu0 %v647_v56 }
 0x13b   : > { %1985 = vmatprep.subr.bf16.mxu0 %v648_v58 }
 0x13c   : > { %1447 = vxpose.xlu0.c.b16.end [8/8] %v2204_v26, 128  ;;  %1431 = vxpose.xlu1.c.b16.end [8/8] %v2205_v29, 128 }
 0x13d   : > { %1954 = vmatmul.mubr.bf16.gmra.mrb[4].mxu0 %v2161_v57  ;;  %1970 = vmatmul.mubr.bf16.gmra.mrb[4].mxu1 %v2179_v59 }
 0x13e   : > { %1986 = vmatpush3.bf16.msra.mxu0 %v648_v58  ;;  %1957 = vmatprep.mubr.bf16.mxu0 %v2162_v60 }
 0x13f   : > { %1987 = vmatprep.subr.bf16.mxu0 %v649_v62  ;;  %1973 = vmatprep.mubr.bf16.mxu1 %v2182_v61 }
 0x142   : > { %1988 = vmatpush3.bf16.msra.mxu0 %v649_v62 }
 0x143   : > { %1989 = vmatprep.subr.bf16.mxu0 %v650_v63 }
 0x145   : > { %1958 = vmatmul.mubr.bf16.gmra.mrb[8].mxu0 %v2163_v1  ;;  %1974 = vmatmul.mubr.bf16.gmra.mrb[8].mxu1 %v2183_v5 }
 0x146   : > { %1990 = vmatpush3.bf16.msra.mxu0 %v650_v63  ;;  %1961 = vmatprep.mubr.bf16.mxu0 %v2164_v3 }
 0x147   : > { %1991 = vmatprep.subr.bf16.mxu0 %v651_v6  ;;  %1977 = vmatprep.mubr.bf16.mxu1 %v2186_v7 }
 0x14a   : > { %1992 = vmatpush3.bf16.msra.mxu0 %v651_v6 }
 0x14b   : > { %1993 = vmatprep.subr.bf16.mxu0 %v652_v10 }
 0x14d   : > { %1962 = vmatmul.mubr.bf16.gmra.mrb[12].mxu0 %v2165_v11  ;;  %1978 = vmatmul.mubr.bf16.gmra.mrb[12].mxu1 %v2187_v14 }
 0x14e   : > { %1994 = vmatpush3.bf16.msra.mxu0 %v652_v10  ;;  %1997 = vmatprep.mubr.bf16.mxu0 %v2166_v16 }
 0x14f   : > { %1995 = vmatprep.subr.bf16.mxu0 %v653_v15 }
 0x152   : > { %1996 = vmatpush3.bf16.msra.mxu0 %v653_v15 }
 0x155   : > { %1998 = vmatmul.mubr.bf16.vlgmr.msra.gmra.mrb[0].mxu0 %v2167_v21 }
 0x156   : > { %2001 = vmatprep.mubr.bf16.mxu0 %v2168_v22 }
 0x15d   : > { %2002 = vmatmul.mubr.bf16.gmra.mrb[4].mxu0 %v2169_v27 }
 0x15e   : > { %2005 = vmatprep.mubr.bf16.mxu0 %v2170_v28 }
 0x165   : > { %2006 = vmatmul.mubr.bf16.gmra.mrb[8].mxu0 %v2171_v30 }
 0x166   : > { %2009 = vmatprep.mubr.bf16.mxu0 %v2172_v31 }
 0x16d   : > { %2010 = vmatmul.mubr.bf16.gmra.mrb[12].mxu0 %v2173_v32 }
 0x16e   : > { %2013 = vmatprep.mubr.bf16.mxu0 %v2176_v33 }
 0x175   : > { %2014 = vmatmul.mubr.bf16.gmra.mrb[16].mxu0 %v2177_v34 }
 0x176   : > { %2017 = vmatprep.mubr.bf16.mxu0 %v2180_v35 }
 0x17d   : > { %2018 = vmatmul.mubr.bf16.gmra.mrb[20].mxu0 %v2181_v36 }
 0x17e   : > { %2021 = vmatprep.mubr.bf16.mxu0 %v2184_v37 }
 0x185   : > { %2022 = vmatmul.mubr.bf16.gmra.mrb[24].mxu0 %v2185_v38 }
 0x186   : > { %2025 = vmatprep.mubr.bf16.mxu0 %v2188_v39  ;;  %v1448_v41 = vpop.trf.xlu0 }
 0x187   : > { %1488 = vmatprep.mubr.bf16.mxu1 %v1448_v41 }
 0x18d   : > { %2026 = vmatmul.mubr.bf16.gmra.mrb[28].mxu0 %v2189_v40 }
 0x208   : > { %v1967_v42 = vpop.f32.mrb[0].mxu1 }
 0x209   : > { %v944_v43 = vpop.f32.mrb[1].mxu1 }
 0x20a   : > { %v1968_v44 = vpop.f32.mrb[2].mxu1 }
 0x20b   : > { %v947_v45 = vpop.f32.mrb[3].mxu1 }
 0x210   : > { %v1971_v46 = vpop.f32.mrb[4].mxu1 }
 0x211   : > { %v960_v47 = vpop.f32.mrb[5].mxu1 }
 0x212   : > { %v1972_v48 = vpop.f32.mrb[6].mxu1 }
 0x213   : > { %v963_v49 = vpop.f32.mrb[7].mxu1 }
 0x218   : > { %v1975_v50 = vpop.f32.mrb[8].mxu1 }
 0x219   : > { %v976_v51 = vpop.f32.mrb[9].mxu1 }
 0x21a   : > { %v1976_v52 = vpop.f32.mrb[10].mxu1 }
 0x21b   : > { %v2472_v53 = vpop.f32.mrb[11].mxu1 }
 0x220   : > { %v2474_v54 = vpop.f32.mrb[12].mxu1 }
 0x221   : > { %v2476_v55 = vpop.f32.mrb[13].mxu1 }
 0x222   : > { %v2478_v56 = vpop.f32.mrb[14].mxu1 }
 0x223   : > { %v2480_v57 = vpop.f32.mrb[15].mxu1 }
 0x228   : > { %v1999_v58 = vpop.f32.mrb[0].mxu0 }
 0x229   : > { %v1137_v59 = vpop.f32.mrb[1].mxu0 }
 0x22a   : > { %v2000_v60 = vpop.f32.mrb[2].mxu0 }
 0x22b   : > { %v1313_v61 = vpack.c.bf16 %v2000_v60, %v1999_v58  ;;  %v1140_v62 = vpop.f32.mrb[3].mxu0 }
 0x22c   : > { %v1312_v63 = vpack.c.bf16 %v1140_v62, %v1137_v59  ;;  %v1432_v62 = vpop.trf.xlu1 }
 0x230   : > { %v2003_v0 = vpop.f32.mrb[4].mxu0 }
 0x231   : > { %v1153_v1 = vpop.f32.mrb[5].mxu0 }
 0x232   : > { %v2004_v2 = vpop.f32.mrb[6].mxu0 }
 0x233   : > { %v1315_v3 = vpack.c.bf16 %v2004_v2, %v2003_v0  ;;  %v1156_v4 = vpop.f32.mrb[7].mxu0 }
 0x234   : > { %v1314_v5 = vpack.c.bf16 %v1156_v4, %v1153_v1 }
 0x238   : > { %v2007_v6 = vpop.f32.mrb[8].mxu0 }
 0x239   : > { %v1169_v7 = vpop.f32.mrb[9].mxu0 }
 0x23a   : > { %v2008_v8 = vpop.f32.mrb[10].mxu0 }
 0x23b   : > { %v1317_v9 = vpack.c.bf16 %v2008_v8, %v2007_v6  ;;  %v1172_v10 = vpop.f32.mrb[11].mxu0 }
 0x23c   : > { %v1316_v11 = vpack.c.bf16 %v1172_v10, %v1169_v7  ;;  %v1264_v10 = vld [vmem:[%s2318_s11] sm:$0xff] }
 0x240   : > { %v2011_v12 = vpop.f32.mrb[12].mxu0 }
 0x241   : > { %v1185_v13 = vpop.f32.mrb[13].mxu0 }
 0x242   : > { %v2012_v14 = vpop.f32.mrb[14].mxu0 }
 0x243   : > { %v1319_v15 = vpack.c.bf16 %v2012_v14, %v2011_v12  ;;  %v1188_v16 = vpop.f32.mrb[15].mxu0  ;;  %v1265_v14 = vld [vmem:[%s2318_s11 + $0x8] sm:$0xff] }
 0x244   : > { %v1318_v17 = vpack.c.bf16 %v1188_v16, %v1185_v13 }
 0x248   : > { %v2015_v18 = vpop.f32.mrb[16].mxu0 }
 0x249   : > { %v1210_v19 = vadd.f32 %v2015_v18, %v1967_v42  ;;  %v1201_v20 = vpop.f32.mrb[17].mxu0 }
 0x24a   : > { %v1202_v21 = vadd.f32 %v1201_v20, %v944_v43  ;;  %v2016_v22 = vpop.f32.mrb[18].mxu0  ;;  %v1266_v20 = vld [vmem:[%s2318_s11 + $0x10] sm:$0xff] }
 0x24b   : > { %v1213_v23 = vadd.f32 %v2016_v22, %v1968_v44  ;;  %v1204_v24 = vpop.f32.mrb[19].mxu0 }
 0x24c   : > { %v1205_v25 = vadd.f32 %v1204_v24, %v947_v45  ;;  %v1267_v24 = vld [vmem:[%s2318_s11 + $0x18] sm:$0xff] }
 0x24d   : > { %v1321_v26 = vpack.c.bf16 %v1213_v23, %v1210_v19 }
 0x24e   : > { %v1320_v27 = vpack.c.bf16 %v1205_v25, %v1202_v21 }
 0x250   : > { %v2019_v28 = vpop.f32.mrb[20].mxu0  ;;  %1837 = vmatprep.subr.bf16.mxu1 %v1320_v27 }
 0x251   : > { %v1226_v29 = vadd.f32 %v2019_v28, %v1971_v46  ;;  %v1217_v30 = vpop.f32.mrb[21].mxu0  ;;  %1838 = vmatpush3.bf16.msra.mxu1 %v1312_v63  ;;  %v1433_v63 = vpop.trf.xlu1 }
 0x252   : > { %v1218_v31 = vadd.f32 %v1217_v30, %v960_v47  ;;  %v2020_v32 = vpop.f32.mrb[22].mxu0  ;;  %1839 = vmatprep.subr.bf16.mxu1 %v1321_v26  ;;  %v1268_v30 = vld [vmem:[%s2318_s11 + $0x20] sm:$0xff] }
 0x253   : > { %v1229_v33 = vadd.f32 %v2020_v32, %v1972_v48  ;;  %v1220_v34 = vpop.f32.mrb[23].mxu0 }
 0x254   : > { %v1221_v35 = vadd.f32 %v1220_v34, %v963_v49  ;;  %v1269_v34 = vld [vmem:[%s2318_s11 + $0x28] sm:$0xff] }
 0x255   : > { %v1323_v36 = vpack.c.bf16 %v1229_v33, %v1226_v29  ;;  %1840 = vmatpush3.bf16.msra.mxu1 %v1313_v61  ;;  %v1434_v0 = vpop.trf.xlu1 }
 0x256   : > { %v1322_v37 = vpack.c.bf16 %v1221_v35, %v1218_v31 }
 0x258   : > { %v2023_v38 = vpop.f32.mrb[24].mxu0  ;;  %1841 = vmatprep.subr.bf16.mxu1 %v1322_v37 }
 0x259   : > { %v1242_v39 = vadd.f32 %v2023_v38, %v1975_v50  ;;  %v1233_v40 = vpop.f32.mrb[25].mxu0  ;;  %1842 = vmatpush3.bf16.msra.mxu1 %v1314_v5 }
 0x25a   : > { %v1234_v41 = vadd.f32 %v1233_v40, %v976_v51  ;;  %v2024_v42 = vpop.f32.mrb[26].mxu0  ;;  %1843 = vmatprep.subr.bf16.mxu1 %v1323_v36  ;;  %v1270_v40 = vld [vmem:[%s2318_s11 + $0x30] sm:$0xff] }
 0x25b   : > { %v1245_v43 = vadd.f32 %v2024_v42, %v1976_v52  ;;  %v1236_v44 = vpop.f32.mrb[27].mxu0 }
 0x25c   : > { %v1237_v45 = vadd.f32 %v1236_v44, %v2472_v53  ;;  %v1271_v44 = vld [vmem:[%s2318_s11 + $0x38] sm:$0xff] }
 0x25d   : > { %v1325_v46 = vpack.c.bf16 %v1245_v43, %v1242_v39  ;;  %1844 = vmatpush3.bf16.msra.mxu1 %v1315_v3 }
 0x25e   : > { %v1324_v47 = vpack.c.bf16 %v1237_v45, %v1234_v41 }
 0x260   : > { %v2027_v48 = vpop.f32.mrb[28].mxu0  ;;  %1845 = vmatprep.subr.bf16.mxu1 %v1324_v47 }
 0x261   : > { %v1258_v49 = vadd.f32 %v2027_v48, %v2474_v54  ;;  %v1249_v58 = vpop.f32.mrb[29].mxu0  ;;  %1846 = vmatpush3.bf16.msra.mxu1 %v1316_v11  ;;  %v1449_v54 = vpop.trf.xlu0 }
 0x262   : > { %v1250_v50 = vadd.f32 %v1249_v58, %v2476_v55  ;;  %v2028_v59 = vpop.f32.mrb[30].mxu0  ;;  %1847 = vmatprep.subr.bf16.mxu1 %v1325_v46  ;;  %v1272_v58 = vld [vmem:[%s2318_s11 + $0x40] sm:$0xff] }
 0x263   : > { %v1261_v51 = vadd.f32 %v2028_v59, %v2478_v56  ;;  %v1252_v60 = vpop.f32.mrb[31].mxu0 }
 0x264   : > { %v1253_v52 = vadd.f32 %v1252_v60, %v2480_v57  ;;  %v1435_v57 = vpop.trf.xlu1  ;;  %v1273_v60 = vld [vmem:[%s2318_s11 + $0x48] sm:$0xff] }
 0x265   : > { %v1327_v61 = vpack.c.bf16 %v1261_v51, %v1258_v49  ;;  %1848 = vmatpush3.bf16.msra.mxu1 %v1317_v9  ;;  %v1450_v55 = vpop.trf.xlu0 }
 0x266   : > { %v1326_v53 = vpack.c.bf16 %v1253_v52, %v1250_v50 }
 0x268   : > { %1849 = vmatprep.subr.bf16.mxu1 %v1326_v53  ;;  %v1436_v2 = vpop.trf.xlu1 }
 0x269   : > { %1850 = vmatpush3.bf16.msra.mxu1 %v1318_v17  ;;  %v1451_v56 = vpop.trf.xlu0 }
 0x26a   : > { %1851 = vmatprep.subr.bf16.mxu1 %v1327_v61 }
 0x26c   : > { %v1437_v4 = vpop.trf.xlu1 }
 0x26d   : > { %1852 = vmatpush3.bf16.msra.mxu1 %v1319_v15  ;;  %v1452_v1 = vpop.trf.xlu0 }
 0x270   : > { %1489 = vmatmul.mubr.bf16.vlgmr.msra.gmra.mrb[16].mxu1 %v1432_v62  ;;  %v1438_v6 = vpop.trf.xlu1 }
 0x271   : > { %1496 = vmatprep.mubr.bf16.mxu1 %v1449_v54  ;;  %v1453_v3 = vpop.trf.xlu0 }
 0x274   : > { %v1439_v8 = vpop.trf.xlu1 }
 0x275   : > { %v1454_v5 = vpop.trf.xlu0 }
 0x278   : > { %1497 = vmatmul.mubr.bf16.gmra.mrb[20].mxu1 %v1433_v63  ;;  %v1274_v63 = vld [vmem:[%s2318_s11 + $0x50] sm:$0xff] }
 0x279   : > { %1504 = vmatprep.mubr.bf16.mxu1 %v1450_v55  ;;  %v1455_v7 = vpop.trf.xlu0 }
 0x280   : > { %1505 = vmatmul.mubr.bf16.gmra.mrb[24].mxu1 %v1434_v0 }
 0x281   : > { %1512 = vmatprep.mubr.bf16.mxu1 %v1451_v56 }
 0x288   : > { %1513 = vmatmul.mubr.bf16.gmra.mrb[28].mxu1 %v1435_v57  ;;  %v1275_v57 = vld [vmem:[%s2318_s11 + $0x58] sm:$0xff] }
 0x289   : > { %1520 = vmatprep.mubr.bf16.mxu1 %v1452_v1 }
 0x290   : > { %1521 = vmatmul.mubr.bf16.gmra.mrb[32].mxu1 %v1436_v2 }
 0x291   : > { %1528 = vmatprep.mubr.bf16.mxu1 %v1453_v3 }
 0x298   : > { %1529 = vmatmul.mubr.bf16.gmra.mrb[36].mxu1 %v1437_v4 }
 0x299   : > { %1536 = vmatprep.mubr.bf16.mxu1 %v1454_v5 }
 0x2a0   : > { %1537 = vmatmul.mubr.bf16.gmra.mrb[40].mxu1 %v1438_v6  ;;  %v1276_v6 = vld [vmem:[%s2318_s11 + $0x60] sm:$0xff] }
 0x2a1   : > { %1544 = vmatprep.mubr.bf16.mxu1 %v1455_v7 }
 0x2a8   : > { %1545 = vmatmul.mubr.bf16.gmra.mrb[44].mxu1 %v1439_v8 }
 0x343   : > { %v1853_v9 = vpop.f32.mrb[16].mxu1 }
 0x344   : > { %v1854_v11 = vpop.f32.mrb[17].mxu1 }
 0x345   : > { %v1855_v12 = vadd.f32 %v1854_v11, %v1853_v9  ;;  %v1856_v13 = vpop.f32.mrb[18].mxu1 }
 0x346   : > { %v1857_v15 = vpop.f32.mrb[19].mxu1 }
 0x347   : > { %v1553_v16 = vadd.f32 %v1855_v12, %v1264_v10  ;;  %v1858_v17 = vadd.f32 %v1857_v15, %v1856_v13  ;;  %v1277_v10 = vld [vmem:[%s2318_s11 + $0x68] sm:$0xff] }
 0x349   : > { %1569 = vst [vmem:[%s2318_s11] sm:$0xff] %v1553_v16  ;;  %v1554_v18 = vadd.f32 %v1858_v17, %v1265_v14  ;;  %v1278_v16 = vld [vmem:[%s2318_s11 + $0x70] sm:$0xff] }
 0x34b   : > { %1570 = vst [vmem:[%s2318_s11 + $0x8] sm:$0xff] %v1554_v18  ;;  %v1859_v19 = vpop.f32.mrb[20].mxu1 }
 0x34c   : > { %v1860_v21 = vpop.f32.mrb[21].mxu1 }
 0x34d   : > { %v1861_v22 = vadd.f32 %v1860_v21, %v1859_v19  ;;  %v1862_v23 = vpop.f32.mrb[22].mxu1 }
 0x34e   : > { %v1863_v25 = vpop.f32.mrb[23].mxu1 }
 0x34f   : > { %v1555_v26 = vadd.f32 %v1861_v22, %v1266_v20  ;;  %v1864_v27 = vadd.f32 %v1863_v25, %v1862_v23  ;;  %v1279_v20 = vld [vmem:[%s2318_s11 + $0x78] sm:$0xff] }
 0x351   : > { %1571 = vst [vmem:[%s2318_s11 + $0x10] sm:$0xff] %v1555_v26  ;;  %v1556_v28 = vadd.f32 %v1864_v27, %v1267_v24 }
 0x353   : > { %1572 = vst [vmem:[%s2318_s11 + $0x18] sm:$0xff] %v1556_v28  ;;  %v1865_v29 = vpop.f32.mrb[24].mxu1 }
 0x354   : > { %v1866_v31 = vpop.f32.mrb[25].mxu1 }
 0x355   : > { %v1867_v32 = vadd.f32 %v1866_v31, %v1865_v29  ;;  %v1868_v33 = vpop.f32.mrb[26].mxu1 }
 0x356   : > { %v1869_v35 = vpop.f32.mrb[27].mxu1 }
 0x357   : > { %v1557_v36 = vadd.f32 %v1867_v32, %v1268_v30  ;;  %v1870_v37 = vadd.f32 %v1869_v35, %v1868_v33 }
 0x359   : > { %1573 = vst [vmem:[%s2318_s11 + $0x20] sm:$0xff] %v1557_v36  ;;  %v1558_v38 = vadd.f32 %v1870_v37, %v1269_v34 }
 0x35b   : > { %1574 = vst [vmem:[%s2318_s11 + $0x28] sm:$0xff] %v1558_v38  ;;  %v1871_v39 = vpop.f32.mrb[28].mxu1 }
 0x35c   : > { %v1872_v41 = vpop.f32.mrb[29].mxu1 }
 0x35d   : > { %v1873_v42 = vadd.f32 %v1872_v41, %v1871_v39  ;;  %v1874_v43 = vpop.f32.mrb[30].mxu1 }
 0x35e   : > { %v1875_v45 = vpop.f32.mrb[31].mxu1 }
 0x35f   : > { %v1559_v46 = vadd.f32 %v1873_v42, %v1270_v40  ;;  %v1876_v47 = vadd.f32 %v1875_v45, %v1874_v43 }
 0x361   : > { %1575 = vst [vmem:[%s2318_s11 + $0x30] sm:$0xff] %v1559_v46  ;;  %v1560_v48 = vadd.f32 %v1876_v47, %v1271_v44 }
 0x363   : > { %1576 = vst [vmem:[%s2318_s11 + $0x38] sm:$0xff] %v1560_v48  ;;  %v1877_v49 = vpop.f32.mrb[32].mxu1 }
 0x364   : > { %v1878_v50 = vpop.f32.mrb[33].mxu1 }
 0x365   : > { %v1879_v59 = vadd.f32 %v1878_v50, %v1877_v49  ;;  %v1880_v51 = vpop.f32.mrb[34].mxu1 }
 0x366   : > { %v1881_v52 = vpop.f32.mrb[35].mxu1 }
 0x367   : > { %v1561_v61 = vadd.f32 %v1879_v59, %v1272_v58  ;;  %v1882_v53 = vadd.f32 %v1881_v52, %v1880_v51 }
 0x369   : > { %1577 = vst [vmem:[%s2318_s11 + $0x40] sm:$0xff] %v1561_v61  ;;  %v1562_v62 = vadd.f32 %v1882_v53, %v1273_v60 }
 0x36b   : > { %1578 = vst [vmem:[%s2318_s11 + $0x48] sm:$0xff] %v1562_v62  ;;  %v1883_v54 = vpop.f32.mrb[36].mxu1 }
 0x36c   : > { %v1884_v55 = vpop.f32.mrb[37].mxu1 }
 0x36d   : > { %v1885_v0 = vadd.f32 %v1884_v55, %v1883_v54  ;;  %v1886_v56 = vpop.f32.mrb[38].mxu1 }
 0x36e   : > { %v1887_v1 = vpop.f32.mrb[39].mxu1 }
 0x36f   : > { %v1563_v2 = vadd.f32 %v1885_v0, %v1274_v63  ;;  %v1888_v3 = vadd.f32 %v1887_v1, %v1886_v56 }
 0x371   : > { %1579 = vst [vmem:[%s2318_s11 + $0x50] sm:$0xff] %v1563_v2  ;;  %v1564_v4 = vadd.f32 %v1888_v3, %v1275_v57 }
 0x373   : > { %1580 = vst [vmem:[%s2318_s11 + $0x58] sm:$0xff] %v1564_v4  ;;  %v1889_v5 = vpop.f32.mrb[40].mxu1 }
 0x374   : > { %v1890_v7 = vpop.f32.mrb[41].mxu1 }
 0x375   : > { %v1891_v8 = vadd.f32 %v1890_v7, %v1889_v5  ;;  %v1892_v9 = vpop.f32.mrb[42].mxu1 }
 0x376   : > { %v1893_v11 = vpop.f32.mrb[43].mxu1 }
 0x377   : > { %v1565_v12 = vadd.f32 %v1891_v8, %v1276_v6  ;;  %v1894_v13 = vadd.f32 %v1893_v11, %v1892_v9 }
 0x379   : > { %1581 = vst [vmem:[%s2318_s11 + $0x60] sm:$0xff] %v1565_v12  ;;  %v1566_v14 = vadd.f32 %v1894_v13, %v1277_v10 }
 0x37b   : > { %1582 = vst [vmem:[%s2318_s11 + $0x68] sm:$0xff] %v1566_v14  ;;  %v1895_v15 = vpop.f32.mrb[44].mxu1 }
 0x37c   : > { %v1896_v17 = vpop.f32.mrb[45].mxu1 }
 0x37d   : > { %v1897_v18 = vadd.f32 %v1896_v17, %v1895_v15  ;;  %v1898_v19 = vpop.f32.mrb[46].mxu1 }
 0x37e   : > { %v1899_v21 = vpop.f32.mrb[47].mxu1 }
 0x37f   : > { %v1567_v22 = vadd.f32 %v1897_v18, %v1278_v16  ;;  %v1900_v23 = vadd.f32 %v1899_v21, %v1898_v19 }
 0x381   : > { %1583 = vst [vmem:[%s2318_s11 + $0x70] sm:$0xff] %v1567_v22  ;;  %v1568_v24 = vadd.f32 %v1900_v23, %v1279_v20 }
 0x383   : > { %1584 = vst [vmem:[%s2318_s11 + $0x78] sm:$0xff] %v1568_v24 }
 0x384 PF: > { %s16_s25 = sadd.s32 1, %s2244_s25   ;;  %s2541_s21 = smov %s2236_s23 }
 0x385   : > { %p13_p8 = scmp.ge.s32.totalorder %s16_s25, 6   ;;  %s2542_s22 = smov %s2240_s24 }
 0x386   : > { %s2543_s23 = smov %s2546_s26  ;;  %s2544_s24 = smov %s2550_s27 }
 0x387   :  { %15 = sbr.rel (!%p13_p8) target bundleno = 3 (0x3), region = 84 }

// kernel: model_forward.5
= control target key start
LH: loop header
LB: loop body
LE: loop exit
PB: predicated region body
PF: predicated region fallthrough
CT: control target
= control target key end

     0   :  { %s3052_s0 = inlined_call_operand.vmem [shape: bf16[128,128], index: 0, kind: input, shape index: {}]   ;;  %s3053_s1 = inlined_call_operand.hbm [shape: bf16[1024,128], index: 1, kind: input, shape index: {}]   ;;  %s3054_s2 = inlined_call_operand.hbm [shape: bf16[1024,128], index: 2, kind: input, shape index: {}]   ;;  %s3055_s3 = inlined_call_operand.hbm [shape: bf16[1024,128], index: 3, kind: input, shape index: {}]   ;;  %s3056_s4 = inlined_call_operand.vmem [shape: bf16[128,128], index: 4, kind: input, shape index: {}]   ;;  %s3057_s5 = inlined_call_operand.hbm [shape: bf16[128,128], index: 5, kind: input, shape index: {}]   ;;  %s3058_s6 = inlined_call_operand.vmem [shape: f32[2,128,128], index: 6, kind: output, shape index: {}]  }
   0x1   :  { %3079 = sst [smem:[#allocation18_spill]] %s3052_s0 }
   0x2   :  { %3080 = sst [smem:[#allocation19_spill]] %s3054_s2 }
   0x3   :  { %3081 = sst [smem:[#allocation20_spill]] %s3056_s4 }
   0x4   :  { %11 = vsyncpa [#allocation4], 0 }
   0x5   :  { %13 = vsyncpa [#allocation4 + $0x1], 0 }
   0x6   :  { %14 = vsyncpa [#allocation6], 0 }
   0x7   :  { %16 = vsyncpa [#allocation6 + $0x1], 0 }
   0x8   :  { %17 = vsyncpa [#allocation9], 0  ;;  %s2605_s21 = smov 0   ;;  %s2607_s22 = smov 0  }
   0x9   :  { %s2609_s23 = smov 0   ;;  %s2611_s24 = smov 0  }
   0xa   :  { %s2613_s25 = smov 0   ;;  %s2615_s26 = smov 0  }
   0xb   :  { %s2617_s27 = smov 0   ;;  %s2619_s28 = smov 0  }
   0xc LB: > { %3082 = sst [smem:[#allocation13_spill]] %s2553_s26  ;;  %s32_s29 = sadd.s32 1, %s2553_s26  ;;  %s2561_s28 = sphi %s2619_s28, %s23_s28   ;;  %s2557_s27 = sphi %s2617_s27, %s3109_s27   ;;  %s2553_s26 = sphi %s2615_s26, %s3108_s26   ;;  %s2549_s25 = sphi %s2613_s25, %s3107_s25   ;;  %s2545_s24 = sphi %s2611_s24, %s3106_s24   ;;  %s2541_s23 = sphi %s2609_s23, %s3112_s23   ;;  %s2537_s22 = sphi %s2607_s22, %s3111_s22   ;;  %s2533_s21 = sphi %s2605_s21, %s3110_s21  }
   0xd   : > { %3083 = sst [smem:[#allocation14_spill]] %s2557_s27  ;;  %s35_s30 = sadd.s32 1, %s2557_s27 }
   0xe   : > { %p33_p0 = scmp.ge.s32.totalorder %s32_s29, 2  ;;  %s1775_s7 = sshll.u32 %s2557_s27, 1 }
   0xf   : > { %s61_s8 = sadd.s32 %s2553_s26, %s1775_s7  ;;  %s67_s9 = sadd.s32 1, %s2541_s23 }
  0x10   : > { %s3114_s29 = smov (%p33_p0, %s32_s29), 0  ;;  %s3116_s30 = smov (!%p33_p0, %s35_s30), %s2557_s27 }
  0x11   : > { %3084 = sst [smem:[#allocation15_spill]] %s3114_s29  ;;  %p74_p1 = scmp.ne.s32.totalorder %s2541_s23, %s2537_s22 }
  0x12   : > { %p75_p2 = scmp.eq.s32.totalorder %s2561_s28, 0  ;;  %p37_p3 = scmp.ge.s32.totalorder %s3116_s30, 2 }
  0x13   : > { %p2227_p5 = scmp.lt.s32.totalorder %s2561_s28, 4  ;;  %s3059_s11 = sand.u32 1, %s2541_s23  }
  0x14   : > { %p76_p4 = por %p75_p2, %p74_p1  ;;  %s3118_s30 = smov (%p37_p3, %s3116_s30), 0 }
  0x15   : > { %3085 = sst [smem:[#allocation16_spill]] %s3118_s30  ;;  %s1776_s10 = sshll.u32 %s3118_s30, 1 }
  0x16   : > { %s63_s12 = sadd.s32 %s1776_s10, %s3114_s29  ;;  %s2664_s13 = sshll.u32 %s3059_s11, 7 }
  0x17   : > { %s64_s14 = ssub.s32 %s61_s8, %s63_s12  ;;  %s2666_s15 = sshll.u32 %s61_s8, 11 }
  0x18   : > { %p65_p6 = scmp.eq.s32.totalorder %s64_s14, 0  ;;  %p2668_p7 = pnand %p2227_p5, %p76_p4 }
  0x19   : > { %s274_s17 = sand.u32 1, %s2561_s28   ;;  %s3088_s2 = sld [smem:[#allocation19_spill]] }
  0x1a   : > { %s3086_s16 = scalar_select %p2668_p7, 1, 0 }
  0x1b   : > { %s2674_s18 = scalar_select %p65_p6, %s2541_s23, %s67_s9  }
  0x1c   : > { %s278_s8 = scalar_lea.vmem [#allocation5], %s2664_s13  ;;  %s2685_s12 = scalar_lea.sflag [#allocation6], %s274_s17 }
  0x1d   : > { %3087 = sst [smem:[#allocation17_spill]] %s2674_s18  ;;  %s287_s10 = sshll.u32 %s278_s8, 4  ;;  %s2683_s10 = int_to_ptr.vmem [resolvable:$true] %s287_s10 }
  0x1e   : > { %p2691_p9 = pneg %p2668_p7 }
  0x1f   : > { %s2680_s7 = scalar_lea.hbm %s3088_s2, %s2666_s15  ;;  %s2374_s11 = scalar_lea.hbm %s3088_s2, 8192 }
  0x20   : > { %s2369_s14 = scalar_lea.hbm %s2680_s7, 2048  ;;  %p2375_p12 = scmp.lt.u32.totalorder %s2680_s7, %s3088_s2 }
  0x21   : > { %p2370_p8 = scmp.ne.s32.totalorder %s2680_s7, %s2369_s14  ;;  %p2376_p13 = scmp.lt.u32.totalorder %s2374_s11, %s2369_s14 }
  0x22   : > { %s3089_s9 = scalar_select %p2691_p9, 1, 0 }
  0x23   : > { %p2372_p10 = pnand %p2691_p9, %p2370_p8  ;;  %p2377_p0 = por %p2376_p13, %p2375_p12 }
  0x24   : > { %p2378_p1 = scmp.lt.u32.totalorder %s2369_s14, %s2680_s7 }
  0x25   : > { %p2373_p11 = pneg %p2372_p10 }
  0x26   : > { %p2379_p2 = por %p2378_p1, %p2377_p0 }
  0x28   : > { %p2380_p3 = pnand %p2379_p2, %p2373_p11 }
  0x2a   : > { %2383 = shalt.err (!%p2380_p3)
}
  0x2b   : > { %s2384_s17 = scalar_lea.vmem %s2683_s10, 2048  ;;  %s2563_s19 = smov [#allocation5]  }
  0x2c   : > { %p2385_p4 = scmp.ne.s32.totalorder %s2683_s10, %s2384_s17  ;;  %s2389_s20 = sshll.u32 %s2563_s19, 4  ;;  %s2390_s20 = int_to_ptr.vmem [resolvable:$false] %s2389_s20 }
  0x2d   : > { %s2391_s30 = scalar_lea.vmem %s2390_s20, 4096  ;;  %p2392_p8 = scmp.lt.s32.totalorder %s2683_s10, %s2390_s20 }
  0x2e   : > { %p2387_p5 = pnand %p2385_p4, %p2691_p9  ;;  %p2393_p10 = scmp.lt.s32.totalorder %s2391_s30, %s2384_s17 }
  0x30   : > { %p2388_p6 = pneg %p2387_p5  ;;  %p2394_p12 = por %p2393_p10, %p2392_p8 }
  0x32   : > { %p2395_p13 = pnand %p2394_p12, %p2388_p6 }
  0x34   : > { %2398 = shalt.err (!%p2395_p13)
}
  0x35   : > { %s3062_s11 = smov 64   ;;  %s3064_s14 = smov 4  }
  0x36   : > { %2222 = dma.hbm_to_vmem [thread:$0]  (!%p2668_p7), %s2680_s7, 2048, %s2683_s10, %s2685_s12, %s3062_s11, %s3062_s11, %s3064_s14  }
  0x37   : > { %s3061_s8 = sadd.s32 4294967295, %s2561_s28   ;;  %p80_p11 = scmp.ne.s32.totalorder %s2537_s22, %s2533_s21 }
  0x38   : > { %p2723_p0 = scmp.eq.s32.totalorder %s3061_s8, 0  ;;  %p1781_p1 = scmp.ge.s32.totalorder %s2561_s28, 1 }
  0x39   : > { %p219_p2 = scmp.lt.s32.totalorder %s2561_s28, 5  ;;  %s2566_s21 = smov [#allocation8]  }
  0x3a   : > { %s3090_s17 = scalar_select %p2723_p0, 1, 0 }
  0x3b   : > { %p2731_p3 = por %p2723_p0, %p80_p11  ;;  %p2735_p4 = pnand %p1781_p1, %p219_p2 }
  0x3c   : > { %s237_s7 = sshll.u32 %s2566_s21, 4  ;;  %s2745_s8 = scalar_lea.hbm %s3053_s1, %s2666_s15  ;;  %s238_s7 = int_to_ptr.vmem [resolvable:$true] %s237_s7 }
  0x3d   : > { %s3091_s19 = scalar_select %p2731_p3, 1, 0 }
  0x3e   : > { %s3092_s20 = scalar_select %p2735_p4, 1, 0 }
  0x3f   : > { %p2212_p5 = pneg %p2735_p4  ;;  %s255_s14 = scalar_lea.vmem [#allocation3], %s2664_s13 }
  0x40   : > { %s264_s2 = sshll.u32 %s255_s14, 4  ;;  %s2760_s27 = scalar_lea.hbm %s3055_s3, %s2666_s15  ;;  %s2754_s2 = int_to_ptr.vmem [resolvable:$true] %s264_s2 }
  0x41   : > { %p2749_p6 = pnand %p2212_p5, %p2723_p0  ;;  %s2399_s10 = scalar_lea.hbm %s3057_s5, 1024 }
  0x42   : > { %p2400_p8 = scmp.ne.s32.totalorder %s3057_s5, %s2399_s10  ;;  %p2406_p11 = scmp.lt.u32.totalorder %s2399_s10, %s3057_s5 }
  0x43   : > { %p2401_p10 = pneg %p2749_p6 }
  0x45   : > { %p2402_p12 = pnand %p2401_p10, %p2400_p8 }
  0x47   : > { %p2403_p13 = pneg %p2402_p12 }
  0x49   : > { %p2408_p1 = pnand %p2406_p11, %p2403_p13 }
  0x4b   : > { %2411 = shalt.err (!%p2408_p1)
}
  0x4c   : > { %s2412_s29 = scalar_lea.vmem %s238_s7, 1024  ;;  %p2420_p3 = scmp.lt.s32.totalorder %s238_s7, %s238_s7 }
  0x4d   : > { %p2413_p2 = scmp.ne.s32.totalorder %s238_s7, %s2412_s29  ;;  %p2421_p4 = scmp.lt.s32.totalorder %s2412_s29, %s2412_s29 }
  0x4f   : > { %p2415_p5 = pnand %p2413_p2, %p2401_p10  ;;  %p2422_p7 = por %p2421_p4, %p2420_p3 }
  0x51   : > { %p2416_p0 = pneg %p2415_p5 }
  0x53   : > { %p2423_p9 = pnand %p2422_p7, %p2416_p0 }
  0x55   : > { %2426 = shalt.err (!%p2423_p9)
}
  0x56   : > { %s3094_s0 = smov 4   ;;  %s3095_s26 = smov 64  }
  0x57   : > { %2215 = dma.hbm_to_vmem [thread:$0]  (!%p2749_p6), %s3057_s5, 1024, %s238_s7, [#allocation9], %s3095_s26, %s3095_s26, %s3094_s0  }
  0x58   : > { %s3096_s4 = sand.u32 1, %s2541_s23   ;;  %s2427_s10 = scalar_lea.hbm %s2745_s8, 2048 }
  0x59   : > { %s2783_s21 = scalar_lea.sflag [#allocation4], %s3096_s4  ;;  %p2428_p7 = scmp.ne.s32.totalorder %s2745_s8, %s2427_s10 }
  0x5a   : > { %p3097_p9 = scmp.ne.s32.totalorder %s3089_s9, 0  ;;  %s2432_s14 = scalar_lea.hbm %s3053_s1, 8192 }
  0x5b   : > { %p2433_p4 = scmp.lt.u32.totalorder %s2745_s8, %s3053_s1  ;;  %p2434_p8 = scmp.lt.u32.totalorder %s2432_s14, %s2427_s10 }
  0x5c   : > { %p2430_p0 = pnand %p2428_p7, %p3097_p9  ;;  %p2436_p12 = scmp.lt.u32.totalorder %s2427_s10, %s2745_s8 }
  0x5d   : > { %p2435_p10 = por %p2434_p8, %p2433_p4 }
  0x5e   : > { %p2431_p3 = pneg %p2430_p0 }
  0x5f   : > { %p2437_p6 = por %p2436_p12, %p2435_p10 }
  0x61   : > { %p2438_p13 = pnand %p2437_p6, %p2431_p3 }
  0x63   : > { %2441 = shalt.err (!%p2438_p13)
}
  0x64   : > { %s2442_s7 = scalar_lea.vmem %s2754_s2, 2048  ;;  %s2567_s18 = smov [#allocation3]  }
  0x65   : > { %p2443_p11 = scmp.ne.s32.totalorder %s2754_s2, %s2442_s7  ;;  %s2447_s4 = sshll.u32 %s2567_s18, 4  ;;  %s2448_s4 = int_to_ptr.vmem [resolvable:$false] %s2447_s4 }
  0x66   : > { %s2449_s11 = scalar_lea.vmem %s2448_s4, 4096  ;;  %p2450_p5 = scmp.lt.s32.totalorder %s2754_s2, %s2448_s4 }
  0x67   : > { %p2445_p1 = pnand %p2443_p11, %p3097_p9  ;;  %p2451_p7 = scmp.lt.s32.totalorder %s2449_s11, %s2442_s7 }
  0x69   : > { %p2446_p2 = pneg %p2445_p1  ;;  %p2452_p0 = por %p2451_p7, %p2450_p5 }
  0x6b   : > { %p2453_p4 = pnand %p2452_p0, %p2446_p2 }
  0x6d   : > { %2456 = shalt.err (!%p2453_p4)
}
  0x6e   : > { %p3098_p3 = scmp.ne.s32.totalorder %s3086_s16, 0  ;;  %s301_s10 = scalar_lea.vmem [#allocation7], %s2664_s13 }
  0x6f   : > { %s310_s30 = sshll.u32 %s301_s10, 4  ;;  %s2457_s14 = scalar_lea.hbm %s2760_s27, 2048  ;;  %s2811_s30 = int_to_ptr.vmem [resolvable:$true] %s310_s30 }
  0x70   : > { %2219 = dma.hbm_to_vmem [thread:$0]  (!%p3098_p3), %s2745_s8, 2048, %s2754_s2, %s2783_s21, %s3095_s26, %s3095_s26, %s3094_s0  }
  0x71   : > { %p2458_p8 = scmp.ne.s32.totalorder %s2760_s27, %s2457_s14  ;;  %s2462_s7 = scalar_lea.hbm %s3055_s3, 8192 }
  0x72   : > { %p2463_p6 = scmp.lt.u32.totalorder %s2760_s27, %s3055_s3  ;;  %p2464_p13 = scmp.lt.u32.totalorder %s2462_s7, %s2457_s14 }
  0x73   : > { %p2460_p10 = pnand %p2458_p8, %p3097_p9  ;;  %p2466_p1 = scmp.lt.u32.totalorder %s2457_s14, %s2760_s27 }
  0x74   : > { %p2465_p11 = por %p2464_p13, %p2463_p6 }
  0x75   : > { %p2461_p12 = pneg %p2460_p10 }
  0x76   : > { %p2467_p2 = por %p2466_p1, %p2465_p11 }
  0x78   : > { %p2468_p5 = pnand %p2467_p2, %p2461_p12 }
  0x7a   : > { %2471 = shalt.err (!%p2468_p5)
}
  0x7b   : > { %s2472_s2 = scalar_lea.vmem %s2811_s30, 2048  ;;  %s2568_s13 = smov [#allocation7]  }
  0x7c   : > { %p2473_p7 = scmp.ne.s32.totalorder %s2811_s30, %s2472_s2  ;;  %s2477_s8 = sshll.u32 %s2568_s13, 4  ;;  %s2478_s8 = int_to_ptr.vmem [resolvable:$false] %s2477_s8 }
  0x7d   : > { %s2479_s21 = scalar_lea.vmem %s2478_s8, 4096  ;;  %p2480_p8 = scmp.lt.s32.totalorder %s2811_s30, %s2478_s8 }
  0x7e   : > { %p2475_p0 = pnand %p2473_p7, %p3097_p9  ;;  %p2481_p10 = scmp.lt.s32.totalorder %s2479_s21, %s2472_s2 }
  0x80   : > { %p2476_p4 = pneg %p2475_p0  ;;  %p2482_p6 = por %p2481_p10, %p2480_p8 }
  0x82   : > { %p2483_p13 = pnand %p2482_p6, %p2476_p4 }
  0x84   : > { %2486 = shalt.err (!%p2483_p13)
}
  0x85   : > { %2225 = dma.hbm_to_vmem [thread:$0]  (!%p3098_p3), %s2760_s27, 2048, %s2811_s30, %s2685_s12, %s3095_s26, %s3095_s26, %s3094_s0  }
  0x86   : > { %p3099_p9 = scmp.ne.s32.totalorder %s3092_s20, 0 }
  0x87   : > { %s324_s9 = sand.u32 (!%p3099_p9), 1, %s2537_s22   ;;  %p3100_p12 = scmp.ne.s32.totalorder (!%p3099_p9), %s3091_s19, 0 }
  0x88   : > { %322 = sbr.rel (%p3099_p9) target bundleno = 1041 (0x411), region = 44  ;;  %s1797_s11 = sshll.u32 (!%p3099_p9), %s324_s9, 7 }
  0x89   : > { %s325_s10 = scalar_lea.sflag (!%p3099_p9), [#allocation4], %s324_s9  ;;  %s2841_s14 = scalar_lea.vmem (!%p3099_p9), [#allocation3], %s1797_s11 }
  0x8f   : > { %2520 = dma.done.wait (%p3100_p12), %s325_s10, 2048  }
  0x90   : > { %2522 = vsyncadd (%p3100_p12), %s325_s10, 4294965248  ;;  %s3101_s16 = sadd.s32 4294967295, %s2561_s28   ;;  %s2849_s12 = scalar_lea.vmem [#allocation5], %s1797_s11 }
  0x91   : > { %s333_s29 = sand.u32 1, %s3101_s16  }
  0x92   : > { %s334_s27 = scalar_lea.sflag [#allocation6], %s333_s29 }
  0x93   : > { %2524 = dma.done.wait (%p3100_p12), %s334_s27, 4096  }
  0x94   : > { %2526 = vsyncadd (%p3100_p12), %s334_s27, 4294963200  ;;  %s2855_s20 = scalar_lea.vmem [#allocation7], %s1797_s11  ;;  %p3102_p3 = scmp.ne.s32.totalorder %s3090_s17, 0 }
  0x96   : > { %2528 = dma.done.wait (%p3102_p3), [#allocation9], 1024  }
  0x97   : > { %2530 = vsyncadd (%p3102_p3), [#allocation9], 4294966272  ;;  %p398_p11 = scmp.lt.s32.totalorder %s2549_s25, 1  ;;  %p1803_p1 = scmp.ne.s32.totalorder %s2545_s24, 0 }
  0x98   : > { %s3103_s18 = sld [smem:[#allocation20_spill]] (!%p1803_p1)  ;;  %s3104_s9 = sld [smem:[#allocation18_spill]] (!%p1803_p1)  ;;  %v2569_v16 = vmov (!%p1803_p1), 0.0  }
  0x99   : > { %s3120_s25 = smov (!%p398_p11, %s2549_s25), 1  ;;  %407 = sbr.rel (%p1803_p1) target bundleno = 417 (0x1a1), region = 64 }
  0x9a   : > { %s1881_s0 = sshll.u32 %s3120_s25, 7 }
  0x9b   : > { %s2866_s15 = scalar_lea.vmem %s3058_s6, %s1881_s0 }
  0x9c   : > { %649 = vst [vmem:[%s2866_s15] sm:$0xff] (!%p1803_p1), %v2569_v16  ;;  %650 = vst [vmem:[%s2866_s15 + $0x8] sm:$0xff] (!%p1803_p1), %v2569_v16 }
  0x9d   : > { %651 = vst [vmem:[%s2866_s15 + $0x10] sm:$0xff] (!%p1803_p1), %v2569_v16  ;;  %652 = vst [vmem:[%s2866_s15 + $0x18] sm:$0xff] (!%p1803_p1), %v2569_v16 }
  0x9e   : > { %v2297_v0 = vld [vmem:[%s3103_s18] sm:$0xff] (!%p1803_p1)   ;;  %v2298_v1 = vld [vmem:[%s3103_s18 + $0x8] sm:$0xff] (!%p1803_p1)   ;;  %v2299_v2 = vld [vmem:[%s3103_s18 + $0x10] sm:$0xff] (!%p1803_p1)   ;;  %653 = vst [vmem:[%s2866_s15 + $0x20] sm:$0xff] (!%p1803_p1), %v2569_v16 }
  0x9f   : > { %2010 = vmatprep.subr.bf16.mxu0 (!%p1803_p1), %v2297_v0  ;;  %2138 = vmatprep.subr.bf16.mxu1 (!%p1803_p1), %v2297_v0  ;;  %v2300_v3 = vld [vmem:[%s3103_s18 + $0x18] sm:$0xff] (!%p1803_p1)   ;;  %v2305_v4 = vld [vmem:[%s3104_s9] sm:$0xff] (!%p1803_p1)   ;;  %v2302_v7 = vld [vmem:[%s3103_s18 + $0x28] sm:$0xff] (!%p1803_p1)   ;;  %654 = vst [vmem:[%s2866_s15 + $0x28] sm:$0xff] (!%p1803_p1), %v2569_v16 }
  0xa0   : > { %2011 = vmatpush3.bf16.msra.mxu0 %v2297_v0  ;;  %2146 = vmatpush3.bf16.msra.mxu1 %v2297_v0  ;;  %v2306_v5 = vld [vmem:[%s3104_s9 + $0x20] sm:$0xff]   ;;  %v2303_v8 = vld [vmem:[%s3103_s18 + $0x30] sm:$0xff]   ;;  %v2304_v9 = vld [vmem:[%s3103_s18 + $0x38] sm:$0xff]   ;;  %655 = vst [vmem:[%s2866_s15 + $0x30] sm:$0xff] %v2569_v16 }
  0xa1   : > { %2012 = vmatprep.subr.bf16.mxu0 %v2298_v1  ;;  %2139 = vmatprep.subr.bf16.mxu1 %v2298_v1  ;;  %v2301_v6 = vld [vmem:[%s3103_s18 + $0x20] sm:$0xff]   ;;  %v2307_v10 = vld [vmem:[%s3104_s9 + $0x8] sm:$0xff]   ;;  %v2309_v12 = vld [vmem:[%s3104_s9 + $0x10] sm:$0xff]   ;;  %656 = vst [vmem:[%s2866_s15 + $0x38] sm:$0xff] %v2569_v16 }
  0xa2   : > { %2026 = vmatprep.mubr.bf16.mxu0 %v2305_v4  ;;  %2034 = vmatprep.mubr.bf16.mxu1 %v2306_v5  ;;  %v2308_v11 = vld [vmem:[%s3104_s9 + $0x28] sm:$0xff]   ;;  %v2310_v13 = vld [vmem:[%s3104_s9 + $0x30] sm:$0xff]   ;;  %v2311_v14 = vld [vmem:[%s3104_s9 + $0x18] sm:$0xff]   ;;  %657 = vst [vmem:[%s2866_s15 + $0x40] sm:$0xff] %v2569_v16 }
  0xa3   : > { %v2312_v15 = vld [vmem:[%s3104_s9 + $0x38] sm:$0xff]   ;;  %658 = vst [vmem:[%s2866_s15 + $0x48] sm:$0xff] %v2569_v16  ;;  %659 = vst [vmem:[%s2866_s15 + $0x50] sm:$0xff] %v2569_v16 }
  0xa4   : > { %2013 = vmatpush3.bf16.msra.mxu0 %v2298_v1  ;;  %2147 = vmatpush3.bf16.msra.mxu1 %v2298_v1  ;;  %660 = vst [vmem:[%s2866_s15 + $0x58] sm:$0xff] %v2569_v16  ;;  %661 = vst [vmem:[%s2866_s15 + $0x60] sm:$0xff] %v2569_v16 }
  0xa5   : > { %2014 = vmatprep.subr.bf16.mxu0 %v2299_v2  ;;  %2140 = vmatprep.subr.bf16.mxu1 %v2299_v2  ;;  %662 = vst [vmem:[%s2866_s15 + $0x68] sm:$0xff] %v2569_v16  ;;  %663 = vst [vmem:[%s2866_s15 + $0x70] sm:$0xff] %v2569_v16 }
  0xa6   : > { %664 = vst [vmem:[%s2866_s15 + $0x78] sm:$0xff] %v2569_v16 }
  0xa8   : > { %2015 = vmatpush3.bf16.msra.mxu0 %v2299_v2  ;;  %2148 = vmatpush3.bf16.msra.mxu1 %v2299_v2 }
  0xa9   : > { %2016 = vmatprep.subr.bf16.mxu0 %v2300_v3  ;;  %2141 = vmatprep.subr.bf16.mxu1 %v2300_v3 }
  0xac   : > { %2017 = vmatpush3.bf16.msra.mxu0 %v2300_v3  ;;  %2149 = vmatpush3.bf16.msra.mxu1 %v2300_v3 }
  0xad   : > { %2018 = vmatprep.subr.bf16.mxu0 %v2301_v6  ;;  %2142 = vmatprep.subr.bf16.mxu1 %v2301_v6 }
  0xb0   : > { %2019 = vmatpush3.bf16.msra.mxu0 %v2301_v6  ;;  %2150 = vmatpush3.bf16.msra.mxu1 %v2301_v6 }
  0xb1   : > { %2020 = vmatprep.subr.bf16.mxu0 %v2302_v7  ;;  %2143 = vmatprep.subr.bf16.mxu1 %v2302_v7 }
  0xb4   : > { %2021 = vmatpush3.bf16.msra.mxu0 %v2302_v7  ;;  %2151 = vmatpush3.bf16.msra.mxu1 %v2302_v7 }
  0xb5   : > { %2022 = vmatprep.subr.bf16.mxu0 %v2303_v8  ;;  %2144 = vmatprep.subr.bf16.mxu1 %v2303_v8 }
  0xb8   : > { %2023 = vmatpush3.bf16.msra.mxu0 %v2303_v8  ;;  %2152 = vmatpush3.bf16.msra.mxu1 %v2303_v8 }
  0xb9   : > { %2024 = vmatprep.subr.bf16.mxu0 %v2304_v9  ;;  %2145 = vmatprep.subr.bf16.mxu1 %v2304_v9 }
  0xbc   : > { %2025 = vmatpush3.bf16.msra.mxu0 %v2304_v9  ;;  %2153 = vmatpush3.bf16.msra.mxu1 %v2304_v9 }
  0xbf   : > { %2027 = vmatmul.mubr.bf16.vlgmr.msra.gmra.mrb[0].mxu0 %v2307_v10  ;;  %2035 = vmatmul.mubr.bf16.vlgmr.msra.gmra.mrb[0].mxu1 %v2308_v11 }
  0xc0   : > { %2030 = vmatprep.mubr.bf16.mxu0 %v2309_v12  ;;  %2038 = vmatprep.mubr.bf16.mxu1 %v2310_v13 }
  0xc7   : > { %2031 = vmatmul.mubr.bf16.gmra.mrb[4].mxu0 %v2311_v14  ;;  %2039 = vmatmul.mubr.bf16.gmra.mrb[4].mxu1 %v2312_v15 }
 0x192   : > { %v2028_v17 = vpop.f32.mrb[0].mxu0  ;;  %v2036_v18 = vpop.f32.mrb[0].mxu1 }
 0x193   : > { %v570_v19 = vpop.f32.mrb[1].mxu0  ;;  %v602_v20 = vpop.f32.mrb[1].mxu1 }
 0x194   : > { %v2029_v21 = vpop.f32.mrb[2].mxu0  ;;  %v2037_v22 = vpop.f32.mrb[2].mxu1 }
 0x195   : > { %v634_v23 = vpack.c.bf16 %v2029_v21, %v2028_v17  ;;  %v638_v24 = vpack.c.bf16 %v2037_v22, %v2036_v18  ;;  %v573_v25 = vpop.f32.mrb[3].mxu0  ;;  %v605_v26 = vpop.f32.mrb[3].mxu1 }
 0x196   : > { %v633_v27 = vpack.c.bf16 %v573_v25, %v570_v19  ;;  %v637_v28 = vpack.c.bf16 %v605_v26, %v602_v20 }
 0x197   : > { %642 = vst [vmem:[#allocation2 + $0x8] sm:$0xff] %v634_v23  ;;  %646 = vst [vmem:[#allocation2 + $0x28] sm:$0xff] %v638_v24 }
 0x198   : > { %641 = vst [vmem:[#allocation2] sm:$0xff] %v633_v27  ;;  %645 = vst [vmem:[#allocation2 + $0x20] sm:$0xff] %v637_v28 }
 0x19a   : > { %v2032_v29 = vpop.f32.mrb[4].mxu0  ;;  %v2040_v30 = vpop.f32.mrb[4].mxu1 }
 0x19b   : > { %v586_v31 = vpop.f32.mrb[5].mxu0  ;;  %v618_v32 = vpop.f32.mrb[5].mxu1 }
 0x19c   : > { %v2033_v33 = vpop.f32.mrb[6].mxu0  ;;  %v2041_v34 = vpop.f32.mrb[6].mxu1 }
 0x19d   : > { %v636_v35 = vpack.c.bf16 %v2033_v33, %v2032_v29  ;;  %v640_v36 = vpack.c.bf16 %v2041_v34, %v2040_v30  ;;  %v589_v37 = vpop.f32.mrb[7].mxu0  ;;  %v621_v38 = vpop.f32.mrb[7].mxu1 }
 0x19e   : > { %v635_v39 = vpack.c.bf16 %v589_v37, %v586_v31  ;;  %v639_v40 = vpack.c.bf16 %v621_v38, %v618_v32 }
 0x19f   : > { %644 = vst [vmem:[#allocation2 + $0x18] sm:$0xff] %v636_v35  ;;  %648 = vst [vmem:[#allocation2 + $0x38] sm:$0xff] %v640_v36 }
 0x1a0   : > { %643 = vst [vmem:[#allocation2 + $0x10] sm:$0xff] %v635_v39  ;;  %647 = vst [vmem:[#allocation2 + $0x30] sm:$0xff] %v639_v40 }
 0x1a1 PF: > { %v2313_v41 = vld [vmem:[#allocation8] sm:$0xff]   ;;  %v2314_v42 = vld [vmem:[#allocation8 + $0x8] sm:$0xff]   ;;  %v2315_v43 = vld [vmem:[#allocation8 + $0x10] sm:$0xff]  }
 0x1a2   : > { %2042 = vmatprep.subr.bf16.mxu0 %v2313_v41  ;;  %2154 = vmatprep.subr.bf16.mxu1 %v2313_v41  ;;  %v2316_v44 = vld [vmem:[#allocation8 + $0x18] sm:$0xff]   ;;  %v2321_v45 = vld [vmem:[%s2841_s14] sm:$0xff]   ;;  %v2318_v47 = vld [vmem:[#allocation8 + $0x28] sm:$0xff]  }
 0x1a3   : > { %2043 = vmatpush3.bf16.msra.mxu0 %v2313_v41  ;;  %2162 = vmatpush3.bf16.msra.mxu1 %v2313_v41  ;;  %v2317_v46 = vld [vmem:[#allocation8 + $0x20] sm:$0xff]   ;;  %v2319_v48 = vld [vmem:[#allocation8 + $0x30] sm:$0xff]   ;;  %v2320_v49 = vld [vmem:[#allocation8 + $0x38] sm:$0xff]  }
 0x1a4   : > { %2044 = vmatprep.subr.bf16.mxu0 %v2314_v42  ;;  %2155 = vmatprep.subr.bf16.mxu1 %v2314_v42  ;;  %v2337_v50 = vld [vmem:[%s2841_s14 + $0x40] sm:$0xff]   ;;  %v2322_v51 = vld [vmem:[%s2841_s14 + $0x8] sm:$0xff]   ;;  %v2323_v54 = vld [vmem:[%s2841_s14 + $0x10] sm:$0xff]  }
 0x1a5   : > { %2058 = vmatprep.mubr.bf16.mxu0 %v2321_v45  ;;  %v697_v52 = vld [vmem:[#allocation2] sm:$0xff]  ;;  %2074 = vmatprep.mubr.bf16.mxu1 %v2337_v50  ;;  %v2338_v53 = vld [vmem:[%s2841_s14 + $0x48] sm:$0xff]   ;;  %v2341_v55 = vld [vmem:[%s2841_s14 + $0x50] sm:$0xff]  }
 0x1a6   : > { %v698_v56 = vld [vmem:[#allocation2 + $0x8] sm:$0xff]  ;;  %v2324_v57 = vld [vmem:[%s2841_s14 + $0x18] sm:$0xff]   ;;  %v2325_v60 = vld [vmem:[%s2841_s14 + $0x20] sm:$0xff]  }
 0x1a7   : > { %2045 = vmatpush3.bf16.msra.mxu0 %v2314_v42  ;;  %2163 = vmatpush3.bf16.msra.mxu1 %v2314_v42  ;;  %v699_v58 = vld [vmem:[#allocation2 + $0x10] sm:$0xff]  ;;  %v2342_v59 = vld [vmem:[%s2841_s14 + $0x58] sm:$0xff]   ;;  %v2345_v61 = vld [vmem:[%s2841_s14 + $0x60] sm:$0xff]  }
 0x1a8   : > { %2046 = vmatprep.subr.bf16.mxu0 %v2315_v43  ;;  %2156 = vmatprep.subr.bf16.mxu1 %v2315_v43  ;;  %v700_v62 = vld [vmem:[#allocation2 + $0x18] sm:$0xff]  ;;  %v701_v63 = vld [vmem:[#allocation2 + $0x20] sm:$0xff]  ;;  %v2326_v1 = vld [vmem:[%s2841_s14 + $0x28] sm:$0xff]  }
 0x1a9   : > { %v2353_v0 = vld [vmem:[%s2855_s20 + $0x40] sm:$0xff]   ;;  %v2327_v3 = vld [vmem:[%s2841_s14 + $0x30] sm:$0xff]   ;;  %v2355_v4 = vld [vmem:[%s2855_s20 + $0x48] sm:$0xff]  }
 0x1aa   : > { %v2354_v2 = vld [vmem:[%s2855_s20] sm:$0xff]   ;;  %1491 = vxpose.xlu0.c.b16.start [1/8] %v2353_v0, 128  ;;  %v2346_v5 = vld [vmem:[%s2841_s14 + $0x68] sm:$0xff]   ;;  %v2349_v7 = vld [vmem:[%s2841_s14 + $0x70] sm:$0xff]  }
 0x1ab   : > { %2047 = vmatpush3.bf16.msra.mxu0 %v2315_v43  ;;  %2164 = vmatpush3.bf16.msra.mxu1 %v2315_v43  ;;  %v702_v6 = vld [vmem:[#allocation2 + $0x28] sm:$0xff]  ;;  %v2357_v9 = vld [vmem:[%s2855_s20 + $0x50] sm:$0xff]   ;;  %v2328_v11 = vld [vmem:[%s2841_s14 + $0x38] sm:$0xff]  }
 0x1ac   : > { %2048 = vmatprep.subr.bf16.mxu0 %v2316_v44  ;;  %2157 = vmatprep.subr.bf16.mxu1 %v2316_v44  ;;  %v2356_v8 = vld [vmem:[%s2855_s20 + $0x8] sm:$0xff]   ;;  %v703_v10 = vld [vmem:[#allocation2 + $0x30] sm:$0xff]  ;;  %v2359_v13 = vld [vmem:[%s2855_s20 + $0x58] sm:$0xff]  }
 0x1ad   : > { %1475 = vxpose.xlu1.c.b16.start [1/8] %v2354_v2, 128  ;;  %v2358_v12 = vld [vmem:[%s2855_s20 + $0x10] sm:$0xff]   ;;  %v2350_v14 = vld [vmem:[%s2841_s14 + $0x78] sm:$0xff]   ;;  %v2329_v16 = vld [vmem:[%s2849_s12] sm:$0xff]  }
 0x1ae   : > { %1492 = vxpose.xlu0.c.b16.cont [2/8] %v2355_v4, 128  ;;  %v704_v15 = vld [vmem:[#allocation2 + $0x38] sm:$0xff]  ;;  %v2361_v18 = vld [vmem:[%s2855_s20 + $0x60] sm:$0xff]   ;;  %v2363_v20 = vld [vmem:[%s2855_s20 + $0x68] sm:$0xff]  }
 0x1af   : > { %2049 = vmatpush3.bf16.msra.mxu0 %v2316_v44  ;;  %2165 = vmatpush3.bf16.msra.mxu1 %v2316_v44  ;;  %v2360_v17 = vld [vmem:[%s2855_s20 + $0x18] sm:$0xff]   ;;  %v2362_v19 = vld [vmem:[%s2855_s20 + $0x20] sm:$0xff]   ;;  %v2330_v21 = vld [vmem:[%s2849_s12 + $0x8] sm:$0xff]  }
 0x1b0   : > { %2050 = vmatprep.subr.bf16.mxu0 %v2317_v46  ;;  %2158 = vmatprep.subr.bf16.mxu1 %v2317_v46  ;;  %v2331_v22 = vld [vmem:[%s2849_s12 + $0x10] sm:$0xff]   ;;  %v2364_v23 = vld [vmem:[%s2855_s20 + $0x28] sm:$0xff]   ;;  %v2367_v26 = vld [vmem:[%s2855_s20 + $0x78] sm:$0xff]  }
 0x1b1   : > { %1476 = vxpose.xlu1.c.b16.cont [2/8] %v2356_v8, 128  ;;  %v2365_v24 = vld [vmem:[%s2855_s20 + $0x70] sm:$0xff]   ;;  %v2332_v27 = vld [vmem:[%s2849_s12 + $0x18] sm:$0xff]   ;;  %v2333_v28 = vld [vmem:[%s2849_s12 + $0x20] sm:$0xff]  }
 0x1b2   : > { %1493 = vxpose.xlu0.c.b16.cont [3/8] %v2357_v9, 128  ;;  %v2366_v25 = vld [vmem:[%s2855_s20 + $0x30] sm:$0xff]   ;;  %v2368_v29 = vld [vmem:[%s2855_s20 + $0x38] sm:$0xff]   ;;  %v2334_v30 = vld [vmem:[%s2849_s12 + $0x28] sm:$0xff]  }
 0x1b3   : > { %2051 = vmatpush3.bf16.msra.mxu0 %v2317_v46  ;;  %2166 = vmatpush3.bf16.msra.mxu1 %v2317_v46  ;;  %v2335_v31 = vld [vmem:[%s2849_s12 + $0x30] sm:$0xff]   ;;  %v2336_v32 = vld [vmem:[%s2849_s12 + $0x38] sm:$0xff]   ;;  %v2339_v33 = vld [vmem:[%s2849_s12 + $0x40] sm:$0xff]  }
 0x1b4   : > { %2052 = vmatprep.subr.bf16.mxu0 %v2318_v47  ;;  %2159 = vmatprep.subr.bf16.mxu1 %v2318_v47  ;;  %v2340_v34 = vld [vmem:[%s2849_s12 + $0x48] sm:$0xff]   ;;  %v2343_v35 = vld [vmem:[%s2849_s12 + $0x50] sm:$0xff]   ;;  %v2344_v36 = vld [vmem:[%s2849_s12 + $0x58] sm:$0xff]  }
 0x1b5   : > { %1477 = vxpose.xlu1.c.b16.cont [3/8] %v2358_v12, 128  ;;  %v2347_v37 = vld [vmem:[%s2849_s12 + $0x60] sm:$0xff]   ;;  %v2348_v38 = vld [vmem:[%s2849_s12 + $0x68] sm:$0xff]   ;;  %v2351_v39 = vld [vmem:[%s2849_s12 + $0x70] sm:$0xff]  }
 0x1b6   : > { %1494 = vxpose.xlu0.c.b16.cont [4/8] %v2359_v13, 128  ;;  %v2352_v40 = vld [vmem:[%s2849_s12 + $0x78] sm:$0xff]  }
 0x1b7   : > { %2053 = vmatpush3.bf16.msra.mxu0 %v2318_v47  ;;  %2167 = vmatpush3.bf16.msra.mxu1 %v2318_v47 }
 0x1b8   : > { %2054 = vmatprep.subr.bf16.mxu0 %v2319_v48  ;;  %2160 = vmatprep.subr.bf16.mxu1 %v2319_v48 }
 0x1b9   : > { %1478 = vxpose.xlu1.c.b16.cont [4/8] %v2360_v17, 128 }
 0x1ba   : > { %1495 = vxpose.xlu0.c.b16.cont [5/8] %v2361_v18, 128 }
 0x1bb   : > { %2055 = vmatpush3.bf16.msra.mxu0 %v2319_v48  ;;  %2168 = vmatpush3.bf16.msra.mxu1 %v2319_v48 }
 0x1bc   : > { %2056 = vmatprep.subr.bf16.mxu0 %v2320_v49  ;;  %2161 = vmatprep.subr.bf16.mxu1 %v2320_v49 }
 0x1bd   : > { %1479 = vxpose.xlu1.c.b16.cont [5/8] %v2362_v19, 128 }
 0x1be   : > { %1496 = vxpose.xlu0.c.b16.cont [6/8] %v2363_v20, 128 }
 0x1bf   : > { %2057 = vmatpush3.bf16.msra.mxu0 %v2320_v49  ;;  %2169 = vmatpush3.bf16.msra.mxu1 %v2320_v49 }
 0x1c0   : > { %2090 = vmatprep.subr.bf16.mxu0 %v697_v52 }
 0x1c1   : > { %1480 = vxpose.xlu1.c.b16.cont [6/8] %v2364_v23, 128 }
 0x1c2   : > { %2059 = vmatmul.mubr.bf16.vlgmr.msra.gmra.mrb[0].mxu0 %v2322_v51  ;;  %2075 = vmatmul.mubr.bf16.vlgmr.msra.gmra.mrb[0].mxu1 %v2338_v53 }
 0x1c3   : > { %2091 = vmatpush3.bf16.msra.mxu0 %v697_v52  ;;  %2062 = vmatprep.mubr.bf16.mxu0 %v2323_v54 }
 0x1c4   : > { %2092 = vmatprep.subr.bf16.mxu0 %v698_v56  ;;  %2078 = vmatprep.mubr.bf16.mxu1 %v2341_v55 }
 0x1c5   : > { %1497 = vxpose.xlu0.c.b16.cont [7/8] %v2365_v24, 128  ;;  %1481 = vxpose.xlu1.c.b16.cont [7/8] %v2366_v25, 128 }
 0x1c7   : > { %2093 = vmatpush3.bf16.msra.mxu0 %v698_v56 }
 0x1c8   : > { %2094 = vmatprep.subr.bf16.mxu0 %v699_v58 }
 0x1c9   : > { %1498 = vxpose.xlu0.c.b16.end [8/8] %v2367_v26, 128  ;;  %1482 = vxpose.xlu1.c.b16.end [8/8] %v2368_v29, 128 }
 0x1ca   : > { %2063 = vmatmul.mubr.bf16.gmra.mrb[4].mxu0 %v2324_v57  ;;  %2079 = vmatmul.mubr.bf16.gmra.mrb[4].mxu1 %v2342_v59 }
 0x1cb   : > { %2095 = vmatpush3.bf16.msra.mxu0 %v699_v58  ;;  %2066 = vmatprep.mubr.bf16.mxu0 %v2325_v60 }
 0x1cc   : > { %2096 = vmatprep.subr.bf16.mxu0 %v700_v62  ;;  %2082 = vmatprep.mubr.bf16.mxu1 %v2345_v61 }
 0x1cf   : > { %2097 = vmatpush3.bf16.msra.mxu0 %v700_v62 }
 0x1d0   : > { %2098 = vmatprep.subr.bf16.mxu0 %v701_v63 }
 0x1d2   : > { %2067 = vmatmul.mubr.bf16.gmra.mrb[8].mxu0 %v2326_v1  ;;  %2083 = vmatmul.mubr.bf16.gmra.mrb[8].mxu1 %v2346_v5 }
 0x1d3   : > { %2099 = vmatpush3.bf16.msra.mxu0 %v701_v63  ;;  %2070 = vmatprep.mubr.bf16.mxu0 %v2327_v3 }
 0x1d4   : > { %2100 = vmatprep.subr.bf16.mxu0 %v702_v6  ;;  %2086 = vmatprep.mubr.bf16.mxu1 %v2349_v7 }
 0x1d7   : > { %2101 = vmatpush3.bf16.msra.mxu0 %v702_v6 }
 0x1d8   : > { %2102 = vmatprep.subr.bf16.mxu0 %v703_v10 }
 0x1da   : > { %2071 = vmatmul.mubr.bf16.gmra.mrb[12].mxu0 %v2328_v11  ;;  %2087 = vmatmul.mubr.bf16.gmra.mrb[12].mxu1 %v2350_v14 }
 0x1db   : > { %2103 = vmatpush3.bf16.msra.mxu0 %v703_v10  ;;  %2106 = vmatprep.mubr.bf16.mxu0 %v2329_v16 }
 0x1dc   : > { %2104 = vmatprep.subr.bf16.mxu0 %v704_v15 }
 0x1df   : > { %2105 = vmatpush3.bf16.msra.mxu0 %v704_v15 }
 0x1e2   : > { %2107 = vmatmul.mubr.bf16.vlgmr.msra.gmra.mrb[0].mxu0 %v2330_v21 }
 0x1e3   : > { %2110 = vmatprep.mubr.bf16.mxu0 %v2331_v22 }
 0x1ea   : > { %2111 = vmatmul.mubr.bf16.gmra.mrb[4].mxu0 %v2332_v27 }
 0x1eb   : > { %2114 = vmatprep.mubr.bf16.mxu0 %v2333_v28 }
 0x1f2   : > { %2115 = vmatmul.mubr.bf16.gmra.mrb[8].mxu0 %v2334_v30 }
 0x1f3   : > { %2118 = vmatprep.mubr.bf16.mxu0 %v2335_v31 }
 0x1fa   : > { %2119 = vmatmul.mubr.bf16.gmra.mrb[12].mxu0 %v2336_v32 }
 0x1fb   : > { %2122 = vmatprep.mubr.bf16.mxu0 %v2339_v33 }
 0x202   : > { %2123 = vmatmul.mubr.bf16.gmra.mrb[16].mxu0 %v2340_v34 }
 0x203   : > { %2126 = vmatprep.mubr.bf16.mxu0 %v2343_v35 }
 0x20a   : > { %2127 = vmatmul.mubr.bf16.gmra.mrb[20].mxu0 %v2344_v36 }
 0x20b   : > { %2130 = vmatprep.mubr.bf16.mxu0 %v2347_v37 }
 0x212   : > { %2131 = vmatmul.mubr.bf16.gmra.mrb[24].mxu0 %v2348_v38 }
 0x213   : > { %2134 = vmatprep.mubr.bf16.mxu0 %v2351_v39  ;;  %v1499_v41 = vpop.trf.xlu0 }
 0x214   : > { %1539 = vmatprep.mubr.bf16.mxu1 %v1499_v41 }
 0x21a   : > { %2135 = vmatmul.mubr.bf16.gmra.mrb[28].mxu0 %v2352_v40 }
 0x295   : > { %v2076_v42 = vpop.f32.mrb[0].mxu1 }
 0x296   : > { %v995_v43 = vpop.f32.mrb[1].mxu1 }
 0x297   : > { %v2077_v44 = vpop.f32.mrb[2].mxu1 }
 0x298   : > { %v998_v45 = vpop.f32.mrb[3].mxu1 }
 0x29d   : > { %v2080_v46 = vpop.f32.mrb[4].mxu1 }
 0x29e   : > { %v1011_v47 = vpop.f32.mrb[5].mxu1 }
 0x29f   : > { %v2081_v48 = vpop.f32.mrb[6].mxu1 }
 0x2a0   : > { %v1014_v49 = vpop.f32.mrb[7].mxu1 }
 0x2a5   : > { %v2084_v50 = vpop.f32.mrb[8].mxu1 }
 0x2a6   : > { %v1027_v51 = vpop.f32.mrb[9].mxu1 }
 0x2a7   : > { %v2085_v52 = vpop.f32.mrb[10].mxu1 }
 0x2a8   : > { %v2981_v53 = vpop.f32.mrb[11].mxu1 }
 0x2ad   : > { %v2983_v54 = vpop.f32.mrb[12].mxu1 }
 0x2ae   : > { %v2985_v55 = vpop.f32.mrb[13].mxu1 }
 0x2af   : > { %v2987_v56 = vpop.f32.mrb[14].mxu1 }
 0x2b0   : > { %v2989_v57 = vpop.f32.mrb[15].mxu1 }
 0x2b5   : > { %v2108_v58 = vpop.f32.mrb[0].mxu0 }
 0x2b6   : > { %v1188_v59 = vpop.f32.mrb[1].mxu0 }
 0x2b7   : > { %v2109_v60 = vpop.f32.mrb[2].mxu0 }
 0x2b8   : > { %v1364_v61 = vpack.c.bf16 %v2109_v60, %v2108_v58  ;;  %v1191_v62 = vpop.f32.mrb[3].mxu0 }
 0x2b9   : > { %v1363_v63 = vpack.c.bf16 %v1191_v62, %v1188_v59  ;;  %v1483_v62 = vpop.trf.xlu1 }
 0x2bd   : > { %v2112_v0 = vpop.f32.mrb[4].mxu0 }
 0x2be   : > { %v1204_v1 = vpop.f32.mrb[5].mxu0 }
 0x2bf   : > { %v2113_v2 = vpop.f32.mrb[6].mxu0 }
 0x2c0   : > { %v1366_v3 = vpack.c.bf16 %v2113_v2, %v2112_v0  ;;  %v1207_v4 = vpop.f32.mrb[7].mxu0 }
 0x2c1   : > { %v1365_v5 = vpack.c.bf16 %v1207_v4, %v1204_v1 }
 0x2c5   : > { %v2116_v6 = vpop.f32.mrb[8].mxu0 }
 0x2c6   : > { %v1220_v7 = vpop.f32.mrb[9].mxu0 }
 0x2c7   : > { %v2117_v8 = vpop.f32.mrb[10].mxu0 }
 0x2c8   : > { %v1368_v9 = vpack.c.bf16 %v2117_v8, %v2116_v6  ;;  %v1223_v10 = vpop.f32.mrb[11].mxu0 }
 0x2c9   : > { %v1367_v11 = vpack.c.bf16 %v1223_v10, %v1220_v7  ;;  %v1315_v10 = vld [vmem:[%s2866_s15] sm:$0xff] }
 0x2cd   : > { %v2120_v12 = vpop.f32.mrb[12].mxu0 }
 0x2ce   : > { %v1236_v13 = vpop.f32.mrb[13].mxu0 }
 0x2cf   : > { %v2121_v14 = vpop.f32.mrb[14].mxu0 }
 0x2d0   : > { %v1370_v15 = vpack.c.bf16 %v2121_v14, %v2120_v12  ;;  %v1239_v16 = vpop.f32.mrb[15].mxu0  ;;  %v1316_v14 = vld [vmem:[%s2866_s15 + $0x8] sm:$0xff] }
 0x2d1   : > { %v1369_v17 = vpack.c.bf16 %v1239_v16, %v1236_v13 }
 0x2d5   : > { %v2124_v18 = vpop.f32.mrb[16].mxu0 }
 0x2d6   : > { %v1261_v19 = vadd.f32 %v2124_v18, %v2076_v42  ;;  %v1252_v20 = vpop.f32.mrb[17].mxu0 }
 0x2d7   : > { %v1253_v21 = vadd.f32 %v1252_v20, %v995_v43  ;;  %v2125_v22 = vpop.f32.mrb[18].mxu0  ;;  %v1317_v20 = vld [vmem:[%s2866_s15 + $0x10] sm:$0xff] }
 0x2d8   : > { %v1264_v23 = vadd.f32 %v2125_v22, %v2077_v44  ;;  %v1255_v24 = vpop.f32.mrb[19].mxu0 }
 0x2d9   : > { %v1256_v25 = vadd.f32 %v1255_v24, %v998_v45  ;;  %v1318_v24 = vld [vmem:[%s2866_s15 + $0x18] sm:$0xff] }
 0x2da   : > { %v1372_v26 = vpack.c.bf16 %v1264_v23, %v1261_v19 }
 0x2db   : > { %v1371_v27 = vpack.c.bf16 %v1256_v25, %v1253_v21 }
 0x2dd   : > { %v2128_v28 = vpop.f32.mrb[20].mxu0  ;;  %1946 = vmatprep.subr.bf16.mxu1 %v1371_v27 }
 0x2de   : > { %v1277_v29 = vadd.f32 %v2128_v28, %v2080_v46  ;;  %v1268_v30 = vpop.f32.mrb[21].mxu0  ;;  %1947 = vmatpush3.bf16.msra.mxu1 %v1363_v63  ;;  %v1484_v63 = vpop.trf.xlu1 }
 0x2df   : > { %v1269_v31 = vadd.f32 %v1268_v30, %v1011_v47  ;;  %v2129_v32 = vpop.f32.mrb[22].mxu0  ;;  %1948 = vmatprep.subr.bf16.mxu1 %v1372_v26  ;;  %v1319_v30 = vld [vmem:[%s2866_s15 + $0x20] sm:$0xff] }
 0x2e0   : > { %v1280_v33 = vadd.f32 %v2129_v32, %v2081_v48  ;;  %v1271_v34 = vpop.f32.mrb[23].mxu0 }
 0x2e1   : > { %v1272_v35 = vadd.f32 %v1271_v34, %v1014_v49  ;;  %v1320_v34 = vld [vmem:[%s2866_s15 + $0x28] sm:$0xff] }
 0x2e2   : > { %v1374_v36 = vpack.c.bf16 %v1280_v33, %v1277_v29  ;;  %1949 = vmatpush3.bf16.msra.mxu1 %v1364_v61  ;;  %v1485_v0 = vpop.trf.xlu1 }
 0x2e3   : > { %v1373_v37 = vpack.c.bf16 %v1272_v35, %v1269_v31 }
 0x2e5   : > { %v2132_v38 = vpop.f32.mrb[24].mxu0  ;;  %1950 = vmatprep.subr.bf16.mxu1 %v1373_v37 }
 0x2e6   : > { %v1293_v39 = vadd.f32 %v2132_v38, %v2084_v50  ;;  %v1284_v40 = vpop.f32.mrb[25].mxu0  ;;  %1951 = vmatpush3.bf16.msra.mxu1 %v1365_v5 }
 0x2e7   : > { %v1285_v41 = vadd.f32 %v1284_v40, %v1027_v51  ;;  %v2133_v42 = vpop.f32.mrb[26].mxu0  ;;  %1952 = vmatprep.subr.bf16.mxu1 %v1374_v36  ;;  %v1321_v40 = vld [vmem:[%s2866_s15 + $0x30] sm:$0xff] }
 0x2e8   : > { %v1296_v43 = vadd.f32 %v2133_v42, %v2085_v52  ;;  %v1287_v44 = vpop.f32.mrb[27].mxu0 }
 0x2e9   : > { %v1288_v45 = vadd.f32 %v1287_v44, %v2981_v53  ;;  %v1322_v44 = vld [vmem:[%s2866_s15 + $0x38] sm:$0xff] }
 0x2ea   : > { %v1376_v46 = vpack.c.bf16 %v1296_v43, %v1293_v39  ;;  %1953 = vmatpush3.bf16.msra.mxu1 %v1366_v3 }
 0x2eb   : > { %v1375_v47 = vpack.c.bf16 %v1288_v45, %v1285_v41 }
 0x2ed   : > { %v2136_v48 = vpop.f32.mrb[28].mxu0  ;;  %1954 = vmatprep.subr.bf16.mxu1 %v1375_v47 }
 0x2ee   : > { %v1309_v49 = vadd.f32 %v2136_v48, %v2983_v54  ;;  %v1300_v58 = vpop.f32.mrb[29].mxu0  ;;  %1955 = vmatpush3.bf16.msra.mxu1 %v1367_v11  ;;  %v1500_v54 = vpop.trf.xlu0 }
 0x2ef   : > { %v1301_v50 = vadd.f32 %v1300_v58, %v2985_v55  ;;  %v2137_v59 = vpop.f32.mrb[30].mxu0  ;;  %1956 = vmatprep.subr.bf16.mxu1 %v1376_v46  ;;  %v1323_v58 = vld [vmem:[%s2866_s15 + $0x40] sm:$0xff] }
 0x2f0   : > { %v1312_v51 = vadd.f32 %v2137_v59, %v2987_v56  ;;  %v1303_v60 = vpop.f32.mrb[31].mxu0 }
 0x2f1   : > { %v1304_v52 = vadd.f32 %v1303_v60, %v2989_v57  ;;  %v1486_v57 = vpop.trf.xlu1  ;;  %v1324_v60 = vld [vmem:[%s2866_s15 + $0x48] sm:$0xff] }
 0x2f2   : > { %v1378_v61 = vpack.c.bf16 %v1312_v51, %v1309_v49  ;;  %1957 = vmatpush3.bf16.msra.mxu1 %v1368_v9  ;;  %v1501_v55 = vpop.trf.xlu0 }
 0x2f3   : > { %v1377_v53 = vpack.c.bf16 %v1304_v52, %v1301_v50 }
 0x2f5   : > { %1958 = vmatprep.subr.bf16.mxu1 %v1377_v53  ;;  %v1487_v2 = vpop.trf.xlu1 }
 0x2f6   : > { %1959 = vmatpush3.bf16.msra.mxu1 %v1369_v17  ;;  %v1502_v56 = vpop.trf.xlu0 }
 0x2f7   : > { %1960 = vmatprep.subr.bf16.mxu1 %v1378_v61 }
 0x2f9   : > { %v1488_v4 = vpop.trf.xlu1 }
 0x2fa   : > { %1961 = vmatpush3.bf16.msra.mxu1 %v1370_v15  ;;  %v1503_v1 = vpop.trf.xlu0 }
 0x2fd   : > { %1540 = vmatmul.mubr.bf16.vlgmr.msra.gmra.mrb[16].mxu1 %v1483_v62  ;;  %v1489_v6 = vpop.trf.xlu1 }
 0x2fe   : > { %1547 = vmatprep.mubr.bf16.mxu1 %v1500_v54  ;;  %v1504_v3 = vpop.trf.xlu0 }
 0x301   : > { %v1490_v8 = vpop.trf.xlu1 }
 0x302   : > { %v1505_v5 = vpop.trf.xlu0 }
 0x305   : > { %1548 = vmatmul.mubr.bf16.gmra.mrb[20].mxu1 %v1484_v63  ;;  %v1325_v63 = vld [vmem:[%s2866_s15 + $0x50] sm:$0xff] }
 0x306   : > { %1555 = vmatprep.mubr.bf16.mxu1 %v1501_v55  ;;  %v1506_v7 = vpop.trf.xlu0 }
 0x30d   : > { %1556 = vmatmul.mubr.bf16.gmra.mrb[24].mxu1 %v1485_v0 }
 0x30e   : > { %1563 = vmatprep.mubr.bf16.mxu1 %v1502_v56 }
 0x315   : > { %1564 = vmatmul.mubr.bf16.gmra.mrb[28].mxu1 %v1486_v57  ;;  %v1326_v57 = vld [vmem:[%s2866_s15 + $0x58] sm:$0xff] }
 0x316   : > { %1571 = vmatprep.mubr.bf16.mxu1 %v1503_v1 }
 0x31d   : > { %1572 = vmatmul.mubr.bf16.gmra.mrb[32].mxu1 %v1487_v2 }
 0x31e   : > { %1579 = vmatprep.mubr.bf16.mxu1 %v1504_v3 }
 0x325   : > { %1580 = vmatmul.mubr.bf16.gmra.mrb[36].mxu1 %v1488_v4 }
 0x326   : > { %1587 = vmatprep.mubr.bf16.mxu1 %v1505_v5 }
 0x32d   : > { %1588 = vmatmul.mubr.bf16.gmra.mrb[40].mxu1 %v1489_v6  ;;  %v1327_v6 = vld [vmem:[%s2866_s15 + $0x60] sm:$0xff] }
 0x32e   : > { %1595 = vmatprep.mubr.bf16.mxu1 %v1506_v7 }
 0x335   : > { %1596 = vmatmul.mubr.bf16.gmra.mrb[44].mxu1 %v1490_v8 }
 0x3d0   : > { %v1962_v9 = vpop.f32.mrb[16].mxu1 }
 0x3d1   : > { %v1963_v11 = vpop.f32.mrb[17].mxu1 }
 0x3d2   : > { %v1964_v12 = vadd.f32 %v1963_v11, %v1962_v9  ;;  %v1965_v13 = vpop.f32.mrb[18].mxu1 }
 0x3d3   : > { %v1966_v15 = vpop.f32.mrb[19].mxu1 }
 0x3d4   : > { %v1604_v16 = vadd.f32 %v1964_v12, %v1315_v10  ;;  %v1967_v17 = vadd.f32 %v1966_v15, %v1965_v13  ;;  %v1328_v10 = vld [vmem:[%s2866_s15 + $0x68] sm:$0xff] }
 0x3d6   : > { %1620 = vst [vmem:[%s2866_s15] sm:$0xff] %v1604_v16  ;;  %v1605_v18 = vadd.f32 %v1967_v17, %v1316_v14  ;;  %v1329_v16 = vld [vmem:[%s2866_s15 + $0x70] sm:$0xff] }
 0x3d8   : > { %1621 = vst [vmem:[%s2866_s15 + $0x8] sm:$0xff] %v1605_v18  ;;  %v1968_v19 = vpop.f32.mrb[20].mxu1 }
 0x3d9   : > { %v1969_v21 = vpop.f32.mrb[21].mxu1 }
 0x3da   : > { %v1970_v22 = vadd.f32 %v1969_v21, %v1968_v19  ;;  %v1971_v23 = vpop.f32.mrb[22].mxu1 }
 0x3db   : > { %v1972_v25 = vpop.f32.mrb[23].mxu1 }
 0x3dc   : > { %v1606_v26 = vadd.f32 %v1970_v22, %v1317_v20  ;;  %v1973_v27 = vadd.f32 %v1972_v25, %v1971_v23  ;;  %v1330_v20 = vld [vmem:[%s2866_s15 + $0x78] sm:$0xff] }
 0x3de   : > { %1622 = vst [vmem:[%s2866_s15 + $0x10] sm:$0xff] %v1606_v26  ;;  %v1607_v28 = vadd.f32 %v1973_v27, %v1318_v24 }
 0x3e0   : > { %1623 = vst [vmem:[%s2866_s15 + $0x18] sm:$0xff] %v1607_v28  ;;  %v1974_v29 = vpop.f32.mrb[24].mxu1 }
 0x3e1   : > { %v1975_v31 = vpop.f32.mrb[25].mxu1 }
 0x3e2   : > { %v1976_v32 = vadd.f32 %v1975_v31, %v1974_v29  ;;  %v1977_v33 = vpop.f32.mrb[26].mxu1 }
 0x3e3   : > { %v1978_v35 = vpop.f32.mrb[27].mxu1 }
 0x3e4   : > { %v1608_v36 = vadd.f32 %v1976_v32, %v1319_v30  ;;  %v1979_v37 = vadd.f32 %v1978_v35, %v1977_v33 }
 0x3e6   : > { %1624 = vst [vmem:[%s2866_s15 + $0x20] sm:$0xff] %v1608_v36  ;;  %v1609_v38 = vadd.f32 %v1979_v37, %v1320_v34 }
 0x3e8   : > { %1625 = vst [vmem:[%s2866_s15 + $0x28] sm:$0xff] %v1609_v38  ;;  %v1980_v39 = vpop.f32.mrb[28].mxu1 }
 0x3e9   : > { %v1981_v41 = vpop.f32.mrb[29].mxu1 }
 0x3ea   : > { %v1982_v42 = vadd.f32 %v1981_v41, %v1980_v39  ;;  %v1983_v43 = vpop.f32.mrb[30].mxu1 }
 0x3eb   : > { %v1984_v45 = vpop.f32.mrb[31].mxu1 }
 0x3ec   : > { %v1610_v46 = vadd.f32 %v1982_v42, %v1321_v40  ;;  %v1985_v47 = vadd.f32 %v1984_v45, %v1983_v43 }
 0x3ee   : > { %1626 = vst [vmem:[%s2866_s15 + $0x30] sm:$0xff] %v1610_v46  ;;  %v1611_v48 = vadd.f32 %v1985_v47, %v1322_v44 }
 0x3f0   : > { %1627 = vst [vmem:[%s2866_s15 + $0x38] sm:$0xff] %v1611_v48  ;;  %v1986_v49 = vpop.f32.mrb[32].mxu1 }
 0x3f1   : > { %v1987_v50 = vpop.f32.mrb[33].mxu1 }
 0x3f2   : > { %v1988_v59 = vadd.f32 %v1987_v50, %v1986_v49  ;;  %v1989_v51 = vpop.f32.mrb[34].mxu1 }
 0x3f3   : > { %v1990_v52 = vpop.f32.mrb[35].mxu1 }
 0x3f4   : > { %v1612_v61 = vadd.f32 %v1988_v59, %v1323_v58  ;;  %v1991_v53 = vadd.f32 %v1990_v52, %v1989_v51 }
 0x3f6   : > { %1628 = vst [vmem:[%s2866_s15 + $0x40] sm:$0xff] %v1612_v61  ;;  %v1613_v62 = vadd.f32 %v1991_v53, %v1324_v60 }
 0x3f8   : > { %1629 = vst [vmem:[%s2866_s15 + $0x48] sm:$0xff] %v1613_v62  ;;  %v1992_v54 = vpop.f32.mrb[36].mxu1 }
 0x3f9   : > { %v1993_v55 = vpop.f32.mrb[37].mxu1 }
 0x3fa   : > { %v1994_v0 = vadd.f32 %v1993_v55, %v1992_v54  ;;  %v1995_v56 = vpop.f32.mrb[38].mxu1 }
 0x3fb   : > { %v1996_v1 = vpop.f32.mrb[39].mxu1 }
 0x3fc   : > { %v1614_v2 = vadd.f32 %v1994_v0, %v1325_v63  ;;  %v1997_v3 = vadd.f32 %v1996_v1, %v1995_v56 }
 0x3fe   : > { %1630 = vst [vmem:[%s2866_s15 + $0x50] sm:$0xff] %v1614_v2  ;;  %v1615_v4 = vadd.f32 %v1997_v3, %v1326_v57 }
 0x400   : > { %1631 = vst [vmem:[%s2866_s15 + $0x58] sm:$0xff] %v1615_v4  ;;  %v1998_v5 = vpop.f32.mrb[40].mxu1 }
 0x401   : > { %v1999_v7 = vpop.f32.mrb[41].mxu1 }
 0x402   : > { %v2000_v8 = vadd.f32 %v1999_v7, %v1998_v5  ;;  %v2001_v9 = vpop.f32.mrb[42].mxu1 }
 0x403   : > { %v2002_v11 = vpop.f32.mrb[43].mxu1 }
 0x404   : > { %v1616_v12 = vadd.f32 %v2000_v8, %v1327_v6  ;;  %v2003_v13 = vadd.f32 %v2002_v11, %v2001_v9 }
 0x406   : > { %1632 = vst [vmem:[%s2866_s15 + $0x60] sm:$0xff] %v1616_v12  ;;  %v1617_v14 = vadd.f32 %v2003_v13, %v1328_v10 }
 0x408   : > { %1633 = vst [vmem:[%s2866_s15 + $0x68] sm:$0xff] %v1617_v14  ;;  %v2004_v15 = vpop.f32.mrb[44].mxu1 }
 0x409   : > { %v2005_v17 = vpop.f32.mrb[45].mxu1 }
 0x40a   : > { %v2006_v18 = vadd.f32 %v2005_v17, %v2004_v15  ;;  %v2007_v19 = vpop.f32.mrb[46].mxu1 }
 0x40b   : > { %v2008_v21 = vpop.f32.mrb[47].mxu1 }
 0x40c   : > { %v1618_v22 = vadd.f32 %v2006_v18, %v1329_v16  ;;  %v2009_v23 = vadd.f32 %v2008_v21, %v2007_v19 }
 0x40e   : > { %1634 = vst [vmem:[%s2866_s15 + $0x70] sm:$0xff] %v1618_v22  ;;  %v1619_v24 = vadd.f32 %v2009_v23, %v1330_v20 }
 0x410   : > { %1635 = vst [vmem:[%s2866_s15 + $0x78] sm:$0xff] %v1619_v24 }
 0x411 PF: > { %s23_s28 = sadd.s32 1, %s2561_s28   ;;  %s3105_s14 = sld [smem:[#allocation17_spill]] }
 0x412   : > { %p20_p2 = scmp.ge.s32.totalorder %s23_s28, 6   ;;  %s3106_s24 = sld [smem:[#allocation13_spill]] }
 0x413   : > { %s3107_s25 = sld [smem:[#allocation14_spill]]  ;;  %s3108_s26 = sld [smem:[#allocation15_spill]] }
 0x414   : > { %s3109_s27 = sld [smem:[#allocation16_spill]]  ;;  %s3110_s21 = smov %s2537_s22 }
 0x415   : > { %s3111_s22 = smov %s2541_s23  ;;  %22 = sbr.rel (!%p20_p2) target bundleno = 12 (0xc), region = 116 }
 0x417   : > { %s3112_s23 = smov %s3105_s14 }
 0x41c   :  { %1657 = vsyncpa [#allocation4], 1 }
 0x41d   :  { %1659 = vsyncpa [#allocation4 + $0x1], 1 }
 0x41e   :  { %1660 = vsyncpa [#allocation6], 1 }
 0x41f   :  { %1662 = vsyncpa [#allocation6 + $0x1], 1 }
 0x420   :  { %1663 = vsyncpa [#allocation9], 1 }

// kernel: model_forward.8
= control target key start
LH: loop header
LB: loop body
LE: loop exit
PB: predicated region body
PF: predicated region fallthrough
CT: control target
= control target key end

     0   :  { %v1046_v0 = vmov 0   ;;  %v1047_v5 = vmov 0.0   ;;  %s1398_s2 = inlined_call_operand.vmem [shape: f32[128,1], index: 2, kind: input, shape index: {}]   ;;  %s1399_s5 = inlined_call_operand.vmem [shape: bf16[128,128], index: 5, kind: input, shape index: {}]   ;;  %s1400_s4 = inlined_call_operand.vmem [shape: bf16[128,128], index: 4, kind: input, shape index: {}]   ;;  %s1401_s0 = inlined_call_operand.vmem [shape: bf16[128,128], index: 0, kind: input, shape index: {}]   ;;  %s1402_s1 = inlined_call_operand.vmem [shape: f32[2,128,128], index: 1, kind: input, shape index: {}]   ;;  %s1403_s3 = inlined_call_operand.vmem [shape: f32[1,128], index: 3, kind: input, shape index: {}]   ;;  %s1404_s6 = inlined_call_operand.vmem [shape: f32[1,128], index: 6, kind: input, shape index: {}]   ;;  %s1405_s7 = inlined_call_operand.vmem [shape: bf16[128,128], index: 7, kind: output, shape index: {}]  }
   0x1   :  { %981 = vset.pattern.permute.xlu1 %v1046_v0  ;;  %980 = vset.pattern.permute.xlu0 %v1046_v0  ;;  %v78_v1 = vld [vmem:[%s1398_s2 + $0x10] sm:$0xff]  ;;  %v76_v2 = vld [vmem:[%s1398_s2] sm:$0xff]  ;;  %v77_v3 = vld [vmem:[%s1398_s2 + $0x8] sm:$0xff] }
   0x2   :  { %152 = vperm.xlu1 %981, %v78_v1   ;;  %vm94_vm0 = vcmp.gt.f32.partialorder %v78_v1, 0.0  ;;  %142 = vperm.xlu0 %980, %v76_v2   ;;  %vm92_vm1 = vcmp.gt.f32.partialorder %v76_v2, 0.0  ;;  %vm93_vm2 = vcmp.gt.f32.partialorder %v77_v3, 0.0  ;;  %v79_v4 = vld [vmem:[%s1398_s2 + $0x18] sm:$0xff]  ;;  %v80_v11 = vld [vmem:[%s1398_s2 + $0x20] sm:$0xff]  ;;  %v81_v12 = vld [vmem:[%s1398_s2 + $0x28] sm:$0xff] }
   0x3   :  { %v826_v6 = vsel %vm94_vm0, 1.0, %v1047_v5  ;;  %v824_v7 = vsel %vm92_vm1, 1.0, %v1047_v5  ;;  %v825_v8 = vsel %vm93_vm2, 1.0, %v1047_v5  ;;  %vm95_vm3 = vcmp.gt.f32.partialorder %v79_v4, 0.0  ;;  %v1022_v14 = vld [vmem:[%s1399_s5] sm:$0xff]   ;;  %v82_v15 = vld [vmem:[%s1398_s2 + $0x30] sm:$0xff] }
   0x4   :  { %v982_v9 = vpack.i.bf16 %v825_v8, %v824_v7  ;;  %v827_v10 = vsel %vm95_vm3, 1.0, %v1047_v5  ;;  %vm96_vm4 = vcmp.gt.f32.partialorder %v80_v11, 0.0  ;;  %vm97_vm5 = vcmp.gt.f32.partialorder %v81_v12, 0.0  ;;  %898 = vmatprep.subr.bf16.mxu1 %v1022_v14  ;;  %v1023_v16 = vld [vmem:[%s1400_s4] sm:$0xff]   ;;  %v83_v17 = vld [vmem:[%s1398_s2 + $0x38] sm:$0xff]  ;;  %v1024_v18 = vld [vmem:[%s1399_s5 + $0x8] sm:$0xff]  }
   0x5   :  { %v987_v13 = vpack.i.bf16 %v827_v10, %v826_v6  ;;  %899 = vmatpush3.bf16.msra.mxu1 %v1022_v14  ;;  %v828_v19 = vsel %vm96_vm4, 1.0, %v1047_v5  ;;  %v1025_v20 = vld [vmem:[%s1400_s4 + $0x8] sm:$0xff]   ;;  %v829_v21 = vsel %vm97_vm5, 1.0, %v1047_v5  ;;  %vm98_vm6 = vcmp.gt.f32.partialorder %v82_v15, 0.0  ;;  %930 = vmatprep.subr.bf16.mxu0 %v1023_v16  ;;  %v1026_v22 = vld [vmem:[%s1399_s5 + $0x10] sm:$0xff]   ;;  %v1028_v27 = vld [vmem:[%s1399_s5 + $0x18] sm:$0xff]  }
   0x6   :  { %147 = vperm.xlu0 %980, %v77_v3   ;;  %983 = vperm.xlu1 %981, %v982_v9   ;;  %vm99_vm7 = vcmp.gt.f32.partialorder %v83_v17, 0.0  ;;  %v992_v23 = vpack.i.bf16 %v829_v21, %v828_v19  ;;  %v830_v24 = vsel %vm98_vm6, 1.0, %v1047_v5  ;;  %v1027_v25 = vld [vmem:[%s1400_s4 + $0x10] sm:$0xff]   ;;  %v84_v28 = vld [vmem:[%s1398_s2 + $0x40] sm:$0xff]  ;;  %v85_v29 = vld [vmem:[%s1398_s2 + $0x48] sm:$0xff] }
   0x7   :  { %900 = vmatprep.subr.bf16.mxu1 %v1024_v18  ;;  %931 = vmatpush3.bf16.msra.mxu0 %v1023_v16  ;;  %v831_v26 = vsel %vm99_vm7, 1.0, %v1047_v5  ;;  %v1029_v30 = vld [vmem:[%s1400_s4 + $0x18] sm:$0xff]   ;;  %v1030_v32 = vld [vmem:[%s1399_s5 + $0x20] sm:$0xff]   ;;  %vm100_vm8 = vcmp.gt.f32.partialorder %v84_v28, 0.0  ;;  %vm101_vm9 = vcmp.gt.f32.partialorder %v85_v29, 0.0  ;;  %v86_v33 = vld [vmem:[%s1398_s2 + $0x50] sm:$0xff] }
   0x8   :  { %932 = vmatprep.subr.bf16.mxu0 %v1025_v20  ;;  %v997_v31 = vpack.i.bf16 %v831_v26, %v830_v24  ;;  %v87_v34 = vld [vmem:[%s1398_s2 + $0x58] sm:$0xff]  ;;  %v1031_v35 = vld [vmem:[%s1400_s4 + $0x20] sm:$0xff]   ;;  %v832_v36 = vsel %vm100_vm8, 1.0, %v1047_v5  ;;  %v833_v37 = vsel %vm101_vm9, 1.0, %v1047_v5  ;;  %vm102_vm10 = vcmp.gt.f32.partialorder %v86_v33, 0.0  ;;  %v1032_v38 = vld [vmem:[%s1399_s5 + $0x28] sm:$0xff]  }
   0x9   :  { %901 = vmatpush3.bf16.msra.mxu1 %v1024_v18  ;;  %vm103_vm11 = vcmp.gt.f32.partialorder %v87_v34, 0.0  ;;  %v1033_v39 = vld [vmem:[%s1400_s4 + $0x28] sm:$0xff]   ;;  %v1002_v40 = vpack.i.bf16 %v833_v37, %v832_v36  ;;  %v834_v41 = vsel %vm102_vm10, 1.0, %v1047_v5  ;;  %v1034_v43 = vld [vmem:[%s1399_s5 + $0x30] sm:$0xff]   ;;  %v88_v44 = vld [vmem:[%s1398_s2 + $0x60] sm:$0xff] }
   0xa   :  { %157 = vperm.xlu0 %980, %v79_v4   ;;  %988 = vperm.xlu1 %981, %v987_v13   ;;  %v835_v42 = vsel %vm103_vm11, 1.0, %v1047_v5  ;;  %v89_v45 = vld [vmem:[%s1398_s2 + $0x68] sm:$0xff]  ;;  %v1035_v46 = vld [vmem:[%s1400_s4 + $0x30] sm:$0xff]   ;;  %v1038_v48 = vld [vmem:[%s1401_s0] sm:$0xff]   ;;  %vm104_vm12 = vcmp.gt.f32.partialorder %v88_v44, 0.0 }
   0xb   :  { %902 = vmatprep.subr.bf16.mxu1 %v1026_v22  ;;  %933 = vmatpush3.bf16.msra.mxu0 %v1025_v20  ;;  %v1007_v47 = vpack.i.bf16 %v835_v42, %v834_v41  ;;  %v90_v49 = vld [vmem:[%s1398_s2 + $0x70] sm:$0xff]  ;;  %v1036_v50 = vld [vmem:[%s1399_s5 + $0x38] sm:$0xff]   ;;  %vm105_vm13 = vcmp.gt.f32.partialorder %v89_v45, 0.0  ;;  %v836_v53 = vsel %vm104_vm12, 1.0, %v1047_v5  ;;  %v1039_v58 = vld [vmem:[%s1401_s0 + $0x8] sm:$0xff]  }
   0xc   :  { %934 = vmatprep.subr.bf16.mxu0 %v1027_v25  ;;  %v91_v51 = vld [vmem:[%s1398_s2 + $0x78] sm:$0xff]  ;;  %946 = vmatprep.mubr.bf16.mxu0 %v1038_v48  ;;  %vm106_vm14 = vcmp.gt.f32.partialorder %v90_v49, 0.0  ;;  %v837_v54 = vsel %vm105_vm13, 1.0, %v1047_v5  ;;  %v1040_v59 = vld [vmem:[%s1401_s0 + $0x10] sm:$0xff]   ;;  %v1042_v62 = vld [vmem:[%s1401_s0 + $0x20] sm:$0xff]  }
   0xd   :  { %903 = vmatpush3.bf16.msra.mxu1 %v1026_v22  ;;  %v1037_v52 = vld [vmem:[%s1400_s4 + $0x38] sm:$0xff]   ;;  %vm107_vm15 = vcmp.gt.f32.partialorder %v91_v51, 0.0  ;;  %v838_v55 = vsel %vm106_vm14, 1.0, %v1047_v5  ;;  %v1012_v56 = vpack.i.bf16 %v837_v54, %v836_v53  ;;  %v1043_v63 = vld [vmem:[%s1401_s0 + $0x28] sm:$0xff]   ;;  %v1044_v0 = vld [vmem:[%s1401_s0 + $0x30] sm:$0xff]  }
   0xe   :  { %162 = vperm.xlu0 %980, %v80_v11   ;;  %167 = vperm.xlu1 %981, %v81_v12   ;;  %v839_v57 = vsel %vm107_vm15, 1.0, %v1047_v5  ;;  %v1041_v61 = vld [vmem:[%s1401_s0 + $0x18] sm:$0xff]   ;;  %v27_v4 = vld [vmem:[%s1402_s1] sm:$0xff]  ;;  %v28_v6 = vld [vmem:[%s1402_s1 + $0x8] sm:$0xff] }
   0xf   :  { %904 = vmatprep.subr.bf16.mxu1 %v1028_v27  ;;  %935 = vmatpush3.bf16.msra.mxu0 %v1027_v25  ;;  %v1017_v60 = vpack.i.bf16 %v839_v57, %v838_v55  ;;  %v1045_v1 = vld [vmem:[%s1401_s0 + $0x38] sm:$0xff]   ;;  %v808_v5 = vld [vmem:[%s1402_s1 + $0x80] sm:$0xff]  ;;  %v809_v7 = vld [vmem:[%s1402_s1 + $0x88] sm:$0xff] }
  0x10   :  { %936 = vmatprep.subr.bf16.mxu0 %v1029_v30  ;;  %v29_v8 = vld [vmem:[%s1402_s1 + $0x10] sm:$0xff]  ;;  %v60_v10 = vadd.f32 %v808_v5, %v27_v4  ;;  %v61_v12 = vadd.f32 %v809_v7, %v28_v6  ;;  %v1245_v13 = vld [vmem:[%s1403_s3] ss:$0 sm:$0xff]  ;;  %v811_v16 = vld [vmem:[%s1402_s1 + $0x98] sm:$0xff] }
  0x11   :  { %905 = vmatpush3.bf16.msra.mxu1 %v1028_v27  ;;  %v810_v9 = vld [vmem:[%s1402_s1 + $0x90] sm:$0xff]  ;;  %v812_v37 = vld [vmem:[%s1402_s1 + $0xa0] sm:$0xff]  ;;  %v815_v48 = vld [vmem:[%s1402_s1 + $0xb8] sm:$0xff] }
  0x12   :  { %993 = vperm.xlu0 %980, %v992_v23   ;;  %172 = vperm.xlu1 %981, %v82_v15   ;;  %v30_v15 = vld [vmem:[%s1402_s1 + $0x18] sm:$0xff]  ;;  %v62_v19 = vadd.f32 %v810_v9, %v29_v8  ;;  %v33_v53 = vld [vmem:[%s1402_s1 + $0x30] sm:$0xff]  ;;  %v35_v5 = vld [vmem:[%s1402_s1 + $0x40] sm:$0xff] }
  0x13   :  { %906 = vmatprep.subr.bf16.mxu1 %v1030_v32  ;;  %937 = vmatpush3.bf16.msra.mxu0 %v1029_v30  ;;  %v63_v23 = vadd.f32 %v811_v16, %v30_v15  ;;  %v814_v54 = vld [vmem:[%s1402_s1 + $0xb0] sm:$0xff] }
  0x14   :  { %938 = vmatprep.subr.bf16.mxu0 %v1031_v35 }
  0x15   :  { %907 = vmatpush3.bf16.msra.mxu1 %v1030_v32 }
  0x16   :  { %177 = vperm.xlu0 %980, %v83_v17   ;;  %998 = vperm.xlu1 %981, %v997_v31  }
  0x17   :  { %908 = vmatprep.subr.bf16.mxu1 %v1032_v38  ;;  %939 = vmatpush3.bf16.msra.mxu0 %v1031_v35  ;;  %v31_v35 = vld [vmem:[%s1402_s1 + $0x20] sm:$0xff] }
  0x18   :  { %940 = vmatprep.subr.bf16.mxu0 %v1033_v39 }
  0x19   :  { %909 = vmatpush3.bf16.msra.mxu1 %v1032_v38 }
  0x1a   :  { %182 = vperm.xlu0 %980, %v84_v28   ;;  %187 = vperm.xlu1 %981, %v85_v29  }
  0x1b   :  { %910 = vmatprep.subr.bf16.mxu1 %v1034_v43  ;;  %941 = vmatpush3.bf16.msra.mxu0 %v1033_v39  ;;  %v32_v39 = vld [vmem:[%s1402_s1 + $0x28] sm:$0xff] }
  0x1c   :  { %942 = vmatprep.subr.bf16.mxu0 %v1035_v46 }
  0x1d   :  { %911 = vmatpush3.bf16.msra.mxu1 %v1034_v43 }
  0x1e   :  { %1003 = vperm.xlu0 %980, %v1002_v40   ;;  %192 = vperm.xlu1 %981, %v86_v33   ;;  %v813_v40 = vld [vmem:[%s1402_s1 + $0xa8] sm:$0xff] }
  0x1f   :  { %912 = vmatprep.subr.bf16.mxu1 %v1036_v50  ;;  %943 = vmatpush3.bf16.msra.mxu0 %v1035_v46 }
  0x20   :  { %944 = vmatprep.subr.bf16.mxu0 %v1037_v52 }
  0x21   :  { %913 = vmatpush3.bf16.msra.mxu1 %v1036_v50 }
  0x22   :  { %197 = vperm.xlu0 %980, %v87_v34   ;;  %1008 = vperm.xlu1 %981, %v1007_v47   ;;  %v34_v47 = vld [vmem:[%s1402_s1 + $0x38] sm:$0xff] }
  0x23   :  { %945 = vmatpush3.bf16.msra.mxu0 %v1037_v52  ;;  %v67_v55 = vadd.f32 %v815_v48, %v34_v47  ;;  %v820_v47 = vld [vmem:[%s1402_s1 + $0xe0] sm:$0xff] }
  0x26   :  { %202 = vperm.xlu0 %980, %v88_v44   ;;  %207 = vperm.xlu1 %981, %v89_v45   ;;  %v64_v44 = vadd.f32 %v812_v37, %v31_v35  ;;  %v65_v45 = vadd.f32 %v813_v40, %v32_v39 }
  0x27   :  { %947 = vmatmul.mubr.bf16.vlgmr.msra.gmra.mrb[0].mxu0 %v1039_v58 }
  0x28   :  { %950 = vmatprep.mubr.bf16.mxu0 %v1040_v59 }
  0x2a   :  { %1013 = vperm.xlu0 %980, %v1012_v56   ;;  %212 = vperm.xlu1 %981, %v90_v49  }
  0x2e   :  { %217 = vperm.xlu0 %980, %v91_v51   ;;  %1018 = vperm.xlu1 %981, %v1017_v60   ;;  %v66_v60 = vadd.f32 %v814_v54, %v33_v53 }
  0x2f   :  { %951 = vmatmul.mubr.bf16.gmra.mrb[4].mxu0 %v1041_v61 }
  0x30   :  { %954 = vmatprep.mubr.bf16.mxu0 %v1042_v62 }
  0x37   :  { %955 = vmatmul.mubr.bf16.gmra.mrb[8].mxu0 %v1043_v63 }
  0x38   :  { %958 = vmatprep.mubr.bf16.mxu0 %v1044_v0 }
  0x3f   :  { %959 = vmatmul.mubr.bf16.gmra.mrb[12].mxu0 %v1045_v1 }
  0x81   :  { %v153_v2 = vpop.permute.xlu1 %152  ;;  %v143_v3 = vpop.permute.xlu0 %142 }
  0x82   :  { %v220_v20 = vmul.f32 %v143_v3, %v60_v10  ;;  %v222_v31 = vmul.f32 %v153_v2, %v62_v19  ;;  %v816_v10 = vld [vmem:[%s1402_s1 + $0xc0] sm:$0xff]  ;;  %v38_v19 = vld [vmem:[%s1402_s1 + $0x58] sm:$0xff] }
  0x85   :  { %v148_v11 = vpop.permute.xlu0 %147  ;;  %v984_v14 = vpop.permute.xlu1 %983 }
  0x86   :  { %v986_v17 = vunpack.i.h.bf16 %v984_v14  ;;  %v985_v18 = vunpack.i.l.bf16 %v984_v14  ;;  %v221_v24 = vmul.f32 %v148_v11, %v61_v12  ;;  %v36_v12 = vld [vmem:[%s1402_s1 + $0x48] sm:$0xff] }
  0x87   :  { %v817_v14 = vld [vmem:[%s1402_s1 + $0xc8] sm:$0xff] }
  0x88   :  { %v324_v21 = vmul.f32 %v986_v17, %v1245_v13  ;;  %v323_v22 = vmul.f32 %v985_v18, %v1245_v13  ;;  %v68_v17 = vadd.f32 %v816_v10, %v35_v5  ;;  %v69_v18 = vadd.f32 %v817_v14, %v36_v12 }
  0x89   :  { %v158_v25 = vpop.permute.xlu0 %157  ;;  %v989_v26 = vpop.permute.xlu1 %988 }
  0x8a   :  { %v991_v27 = vunpack.i.h.bf16 %v989_v26  ;;  %v990_v28 = vunpack.i.l.bf16 %v989_v26  ;;  %v339_v29 = vadd.f32 %v323_v22, %v220_v20  ;;  %v340_v30 = vadd.f32 %v324_v21, %v221_v24  ;;  %v819_v20 = vld [vmem:[%s1402_s1 + $0xd8] sm:$0xff]  ;;  %v37_v26 = vld [vmem:[%s1402_s1 + $0x50] sm:$0xff] }
  0x8b   :  { %v223_v32 = vmul.f32 %v158_v25, %v63_v23 }
  0x8c   :  { %v326_v33 = vmul.f32 %v991_v27, %v1245_v13  ;;  %v325_v34 = vmul.f32 %v990_v28, %v1245_v13  ;;  %v387_v41 = vpack.c.bf16 %v340_v30, %v339_v29  ;;  %v818_v27 = vld [vmem:[%s1402_s1 + $0xd0] sm:$0xff]  ;;  %v71_v28 = vadd.f32 %v819_v20, %v38_v19 }
  0x8d   :  { %v163_v36 = vpop.permute.xlu0 %162  ;;  %v168_v38 = vpop.permute.xlu1 %167 }
  0x8e   :  { %v341_v42 = vadd.f32 %v325_v34, %v222_v31  ;;  %v342_v43 = vadd.f32 %v326_v33, %v223_v32  ;;  %914 = vmatprep.mubr.bf16.mxu1 %v387_v41  ;;  %v224_v56 = vmul.f32 %v163_v36, %v64_v44  ;;  %v225_v57 = vmul.f32 %v168_v38, %v65_v45 }
  0x8f   :  { %v70_v33 = vadd.f32 %v818_v27, %v37_v26 }
  0x90   :  { %v388_v46 = vpack.c.bf16 %v342_v43, %v341_v42  ;;  %v39_v42 = vld [vmem:[%s1402_s1 + $0x60] sm:$0xff] }
  0x91   :  { %v994_v49 = vpop.permute.xlu0 %993  ;;  %v173_v50 = vpop.permute.xlu1 %172  ;;  %v72_v53 = vadd.f32 %v820_v47, %v39_v42 }
  0x92   :  { %v996_v51 = vunpack.i.h.bf16 %v994_v49  ;;  %v995_v52 = vunpack.i.l.bf16 %v994_v49  ;;  %915 = vmatmul.mubr.bf16.vlgmr.msra.gmra.mrb[0].mxu1 %v388_v46  ;;  %v226_v7 = vmul.f32 %v173_v50, %v66_v60  ;;  %v40_v49 = vld [vmem:[%s1402_s1 + $0x68] sm:$0xff] }
  0x93   :  { %v821_v50 = vld [vmem:[%s1402_s1 + $0xe8] sm:$0xff] }
  0x94   :  { %v328_v58 = vmul.f32 %v996_v51, %v1245_v13  ;;  %v327_v59 = vmul.f32 %v995_v52, %v1245_v13  ;;  %v73_v54 = vadd.f32 %v821_v50, %v40_v49 }
  0x95   :  { %v178_v61 = vpop.permute.xlu0 %177  ;;  %v999_v62 = vpop.permute.xlu1 %998 }
  0x96   :  { %v343_v63 = vadd.f32 %v327_v59, %v224_v56  ;;  %v344_v0 = vadd.f32 %v328_v58, %v225_v57  ;;  %v1001_v1 = vunpack.i.h.bf16 %v999_v62  ;;  %v1000_v2 = vunpack.i.l.bf16 %v999_v62  ;;  %v823_v56 = vld [vmem:[%s1402_s1 + $0xf8] sm:$0xff]  ;;  %v41_v62 = vld [vmem:[%s1402_s1 + $0x70] sm:$0xff] }
  0x97   :  { %v227_v3 = vmul.f32 %v178_v61, %v67_v55  ;;  %v42_v55 = vld [vmem:[%s1402_s1 + $0x78] sm:$0xff] }
  0x98   :  { %v330_v4 = vmul.f32 %v1001_v1, %v1245_v13  ;;  %v389_v6 = vpack.c.bf16 %v344_v0, %v343_v63  ;;  %v329_v8 = vmul.f32 %v1000_v2, %v1245_v13  ;;  %v822_v63 = vld [vmem:[%s1402_s1 + $0xf0] sm:$0xff]  ;;  %v75_v0 = vadd.f32 %v823_v56, %v42_v55 }
  0x99   :  { %v183_v9 = vpop.permute.xlu0 %182  ;;  %v188_v11 = vpop.permute.xlu1 %187  ;;  %v74_v5 = vadd.f32 %v822_v63, %v41_v62 }
  0x9a   :  { %v346_v15 = vadd.f32 %v330_v4, %v227_v3  ;;  %918 = vmatprep.mubr.bf16.mxu1 %v389_v6  ;;  %v345_v16 = vadd.f32 %v329_v8, %v226_v7  ;;  %v228_v29 = vmul.f32 %v183_v9, %v68_v17  ;;  %v229_v30 = vmul.f32 %v188_v11, %v69_v18 }
  0x9c   :  { %v390_v23 = vpack.c.bf16 %v346_v15, %v345_v16 }
  0x9d   :  { %v1004_v21 = vpop.permute.xlu0 %1003  ;;  %v193_v22 = vpop.permute.xlu1 %192 }
  0x9e   :  { %v1006_v24 = vunpack.i.h.bf16 %v1004_v21  ;;  %v1005_v25 = vunpack.i.l.bf16 %v1004_v21  ;;  %919 = vmatmul.mubr.bf16.gmra.mrb[4].mxu1 %v390_v23  ;;  %v230_v44 = vmul.f32 %v193_v22, %v70_v33 }
  0xa0   :  { %v332_v31 = vmul.f32 %v1006_v24, %v1245_v13  ;;  %v331_v32 = vmul.f32 %v1005_v25, %v1245_v13 }
  0xa1   :  { %v198_v34 = vpop.permute.xlu0 %197  ;;  %v1009_v35 = vpop.permute.xlu1 %1008 }
  0xa2   :  { %v347_v36 = vadd.f32 %v331_v32, %v228_v29  ;;  %v348_v37 = vadd.f32 %v332_v31, %v229_v30  ;;  %v1011_v38 = vunpack.i.h.bf16 %v1009_v35  ;;  %v1010_v39 = vunpack.i.l.bf16 %v1009_v35 }
  0xa3   :  { %v231_v40 = vmul.f32 %v198_v34, %v71_v28 }
  0xa4   :  { %v334_v41 = vmul.f32 %v1011_v38, %v1245_v13  ;;  %v391_v43 = vpack.c.bf16 %v348_v37, %v347_v36  ;;  %v333_v45 = vmul.f32 %v1010_v39, %v1245_v13  ;;  %v1352_v37 = vld [vmem:[%s1404_s6] ss:$0 sm:$0xff] }
  0xa5   :  { %v203_v46 = vpop.permute.xlu0 %202  ;;  %v208_v48 = vpop.permute.xlu1 %207 }
  0xa6   :  { %v350_v51 = vadd.f32 %v334_v41, %v231_v40  ;;  %922 = vmatprep.mubr.bf16.mxu1 %v391_v43  ;;  %v349_v52 = vadd.f32 %v333_v45, %v230_v44  ;;  %v232_v1 = vmul.f32 %v203_v46, %v72_v53  ;;  %v233_v2 = vmul.f32 %v208_v48, %v73_v54 }
  0xa8   :  { %v392_v59 = vpack.c.bf16 %v350_v51, %v349_v52 }
  0xa9   :  { %v1014_v57 = vpop.permute.xlu0 %1013  ;;  %v213_v58 = vpop.permute.xlu1 %212 }
  0xaa   :  { %v1016_v60 = vunpack.i.h.bf16 %v1014_v57  ;;  %v1015_v61 = vunpack.i.l.bf16 %v1014_v57  ;;  %923 = vmatmul.mubr.bf16.gmra.mrb[8].mxu1 %v392_v59  ;;  %v234_v16 = vmul.f32 %v213_v58, %v74_v5 }
  0xac   :  { %v336_v3 = vmul.f32 %v1016_v60, %v1245_v13  ;;  %v335_v4 = vmul.f32 %v1015_v61, %v1245_v13 }
  0xad   :  { %v218_v6 = vpop.permute.xlu0 %217  ;;  %v1019_v7 = vpop.permute.xlu1 %1018 }
  0xae   :  { %v351_v8 = vadd.f32 %v335_v4, %v232_v1  ;;  %v352_v9 = vadd.f32 %v336_v3, %v233_v2  ;;  %v1021_v10 = vunpack.i.h.bf16 %v1019_v7  ;;  %v1020_v11 = vunpack.i.l.bf16 %v1019_v7 }
  0xaf   :  { %v235_v12 = vmul.f32 %v218_v6, %v75_v0 }
  0xb0   :  { %v338_v14 = vmul.f32 %v1021_v10, %v1245_v13  ;;  %v393_v15 = vpack.c.bf16 %v352_v9, %v351_v8  ;;  %v337_v17 = vmul.f32 %v1020_v11, %v1245_v13 }
  0xb2   :  { %v354_v18 = vadd.f32 %v338_v14, %v235_v12  ;;  %926 = vmatprep.mubr.bf16.mxu1 %v393_v15  ;;  %v353_v19 = vadd.f32 %v337_v17, %v234_v16 }
  0xb4   :  { %v394_v20 = vpack.c.bf16 %v354_v18, %v353_v19 }
  0xb6   :  { %927 = vmatmul.mubr.bf16.gmra.mrb[12].mxu1 %v394_v20 }
  0xfa   :  { %v948_v21 = vpop.f32.mrb[0].mxu0 }
  0xfb   :  { %v686_v22 = vpop.f32.mrb[1].mxu0 }
  0xfc   :  { %v949_v23 = vpop.f32.mrb[2].mxu0 }
  0xfd   :  { %v689_v24 = vpop.f32.mrb[3].mxu0 }
 0x102   :  { %v952_v25 = vpop.f32.mrb[4].mxu0 }
 0x103   :  { %v702_v26 = vpop.f32.mrb[5].mxu0 }
 0x104   :  { %v953_v27 = vpop.f32.mrb[6].mxu0 }
 0x105   :  { %v705_v28 = vpop.f32.mrb[7].mxu0 }
 0x10a   :  { %v956_v29 = vpop.f32.mrb[8].mxu0 }
 0x10b   :  { %v718_v30 = vpop.f32.mrb[9].mxu0 }
 0x10c   :  { %v957_v31 = vpop.f32.mrb[10].mxu0 }
 0x10d   :  { %v721_v32 = vpop.f32.mrb[11].mxu0 }
 0x112   :  { %v1341_v33 = vpop.f32.mrb[12].mxu0 }
 0x113   :  { %v1343_v13 = vpop.f32.mrb[13].mxu0 }
 0x114   :  { %v1345_v34 = vpop.f32.mrb[14].mxu0 }
 0x115   :  { %v1347_v35 = vpop.f32.mrb[15].mxu0 }
 0x165   :  { %v916_v36 = vpop.f32.mrb[0].mxu1 }
 0x166   :  { %v695_v38 = vadd.f32 %v948_v21, %v916_v36  ;;  %v493_v39 = vpop.f32.mrb[1].mxu1 }
 0x167   :  { %v687_v40 = vadd.f32 %v686_v22, %v493_v39  ;;  %v917_v41 = vpop.f32.mrb[2].mxu1 }
 0x168   :  { %v758_v42 = vadd.f32 %v1352_v37, %v695_v38  ;;  %v698_v43 = vadd.f32 %v949_v23, %v917_v41  ;;  %v496_v44 = vpop.f32.mrb[3].mxu1 }
 0x169   :  { %v756_v45 = vadd.f32 %v1352_v37, %v687_v40  ;;  %v690_v46 = vadd.f32 %v689_v24, %v496_v44 }
 0x16a   :  { %v759_v47 = vadd.f32 %v1352_v37, %v698_v43  ;;  %v774_v49 = vmax.f32 %v758_v42, 0.0 }
 0x16b   :  { %v757_v48 = vadd.f32 %v1352_v37, %v690_v46  ;;  %v772_v51 = vmax.f32 %v756_v45, 0.0 }
 0x16c   :  { %v775_v50 = vmax.f32 %v759_v47, 0.0 }
 0x16d   :  { %v773_v52 = vmax.f32 %v757_v48, 0.0 }
 0x16e   :  { %v789_v53 = vpack.c.bf16 %v775_v50, %v774_v49 }
 0x16f   :  { %v788_v54 = vpack.c.bf16 %v773_v52, %v772_v51 }
 0x170   :  { %797 = vst [vmem:[%s1405_s7 + $0x8] sm:$0xff] %v789_v53 }
 0x171   :  { %796 = vst [vmem:[%s1405_s7] sm:$0xff] %v788_v54  ;;  %v920_v55 = vpop.f32.mrb[4].mxu1 }
 0x172   :  { %v711_v56 = vadd.f32 %v952_v25, %v920_v55  ;;  %v509_v57 = vpop.f32.mrb[5].mxu1 }
 0x173   :  { %v703_v58 = vadd.f32 %v702_v26, %v509_v57  ;;  %v921_v59 = vpop.f32.mrb[6].mxu1 }
 0x174   :  { %v762_v60 = vadd.f32 %v1352_v37, %v711_v56  ;;  %v714_v61 = vadd.f32 %v953_v27, %v921_v59  ;;  %v512_v62 = vpop.f32.mrb[7].mxu1 }
 0x175   :  { %v760_v63 = vadd.f32 %v1352_v37, %v703_v58  ;;  %v706_v0 = vadd.f32 %v705_v28, %v512_v62 }
 0x176   :  { %v763_v1 = vadd.f32 %v1352_v37, %v714_v61  ;;  %v778_v3 = vmax.f32 %v762_v60, 0.0 }
 0x177   :  { %v761_v2 = vadd.f32 %v1352_v37, %v706_v0  ;;  %v776_v5 = vmax.f32 %v760_v63, 0.0 }
 0x178   :  { %v779_v4 = vmax.f32 %v763_v1, 0.0 }
 0x179   :  { %v777_v6 = vmax.f32 %v761_v2, 0.0 }
 0x17a   :  { %v791_v7 = vpack.c.bf16 %v779_v4, %v778_v3 }
 0x17b   :  { %v790_v8 = vpack.c.bf16 %v777_v6, %v776_v5 }
 0x17c   :  { %799 = vst [vmem:[%s1405_s7 + $0x18] sm:$0xff] %v791_v7 }
 0x17d   :  { %798 = vst [vmem:[%s1405_s7 + $0x10] sm:$0xff] %v790_v8  ;;  %v924_v9 = vpop.f32.mrb[8].mxu1 }
 0x17e   :  { %v727_v10 = vadd.f32 %v956_v29, %v924_v9  ;;  %v525_v11 = vpop.f32.mrb[9].mxu1 }
 0x17f   :  { %v719_v12 = vadd.f32 %v718_v30, %v525_v11  ;;  %v925_v14 = vpop.f32.mrb[10].mxu1 }
 0x180   :  { %v766_v15 = vadd.f32 %v1352_v37, %v727_v10  ;;  %v730_v16 = vadd.f32 %v957_v31, %v925_v14  ;;  %v528_v17 = vpop.f32.mrb[11].mxu1 }
 0x181   :  { %v764_v18 = vadd.f32 %v1352_v37, %v719_v12  ;;  %v722_v19 = vadd.f32 %v721_v32, %v528_v17 }
 0x182   :  { %v767_v20 = vadd.f32 %v1352_v37, %v730_v16  ;;  %v782_v22 = vmax.f32 %v766_v15, 0.0 }
 0x183   :  { %v765_v21 = vadd.f32 %v1352_v37, %v722_v19  ;;  %v780_v24 = vmax.f32 %v764_v18, 0.0 }
 0x184   :  { %v783_v23 = vmax.f32 %v767_v20, 0.0 }
 0x185   :  { %v781_v25 = vmax.f32 %v765_v21, 0.0 }
 0x186   :  { %v793_v26 = vpack.c.bf16 %v783_v23, %v782_v22 }
 0x187   :  { %v792_v27 = vpack.c.bf16 %v781_v25, %v780_v24 }
 0x188   :  { %801 = vst [vmem:[%s1405_s7 + $0x28] sm:$0xff] %v793_v26 }
 0x189   :  { %800 = vst [vmem:[%s1405_s7 + $0x20] sm:$0xff] %v792_v27  ;;  %v928_v28 = vpop.f32.mrb[12].mxu1 }
 0x18a   :  { %v743_v29 = vadd.f32 %v1341_v33, %v928_v28  ;;  %v541_v30 = vpop.f32.mrb[13].mxu1 }
 0x18b   :  { %v735_v31 = vadd.f32 %v1343_v13, %v541_v30  ;;  %v929_v32 = vpop.f32.mrb[14].mxu1 }
 0x18c   :  { %v770_v36 = vadd.f32 %v1352_v37, %v743_v29  ;;  %v746_v38 = vadd.f32 %v1345_v34, %v929_v32  ;;  %v544_v39 = vpop.f32.mrb[15].mxu1 }
 0x18d   :  { %v768_v40 = vadd.f32 %v1352_v37, %v735_v31  ;;  %v738_v41 = vadd.f32 %v1347_v35, %v544_v39 }
 0x18e   :  { %v771_v42 = vadd.f32 %v1352_v37, %v746_v38  ;;  %v786_v44 = vmax.f32 %v770_v36, 0.0 }
 0x18f   :  { %v769_v43 = vadd.f32 %v1352_v37, %v738_v41  ;;  %v784_v33 = vmax.f32 %v768_v40, 0.0 }
 0x190   :  { %v787_v45 = vmax.f32 %v771_v42, 0.0 }
 0x191   :  { %v785_v46 = vmax.f32 %v769_v43, 0.0 }
 0x192   :  { %v795_v47 = vpack.c.bf16 %v787_v45, %v786_v44 }
 0x193   :  { %v794_v13 = vpack.c.bf16 %v785_v46, %v784_v33 }
 0x194   :  { %803 = vst [vmem:[%s1405_s7 + $0x38] sm:$0xff] %v795_v47 }
 0x195   :  { %802 = vst [vmem:[%s1405_s7 + $0x30] sm:$0xff] %v794_v13 }

// kernel: model_forward.9
= control target key start
LH: loop header
LB: loop body
LE: loop exit
PB: predicated region body
PF: predicated region fallthrough
CT: control target
= control target key end

     0   :  { %10 = vsyncpa [#allocation3], 0  ;;  %s2076_s0 = inlined_call_operand.vmem [shape: bf16[128,128], index: 0, kind: input, shape index: {}]   ;;  %s2077_s1 = inlined_call_operand.vmem [shape: bf16[128,128], index: 1, kind: input, shape index: {}]   ;;  %s2078_s2 = inlined_call_operand.vmem [shape: bf16[1024,128], index: 2, kind: input, shape index: {}]   ;;  %s2079_s3 = inlined_call_operand.vmem [shape: bf16[1024,128], index: 3, kind: input, shape index: {}]   ;;  %s2080_s4 = inlined_call_operand.vmem [shape: f32[1,128], index: 4, kind: input, shape index: {}]   ;;  %s2081_s5 = inlined_call_operand.hbm [shape: bf16[1024,128], index: 5, kind: output, shape index: {}]  }
   0x1   :  { %12 = vsyncpa [#allocation3 + $0x1], 0  ;;  %s1827_s18 = smov 0   ;;  %s1829_s19 = smov 0  }
   0x2   :  { %s1831_s20 = smov 0   ;;  %s1833_s21 = smov 0  }
   0x3 LB: > { %s1848_s22 = sadd.s32 4294967295, %s1792_s21   ;;  %s1242_s23 = sadd.s32 4294967294, %s1792_s21   ;;  %s1792_s21 = sphi %s1833_s21, %s2087_s21   ;;  %s1788_s20 = sphi %s1831_s20, %s2086_s20   ;;  %s1784_s19 = sphi %s1829_s19, %s2085_s19   ;;  %s1780_s18 = sphi %s1827_s18, %s2084_s18  }
   0x4   : > { %s1852_s24 = sadd.s32 1, %s1792_s21   ;;  %s140_s25 = sadd.s32 1, %s1788_s20 }
   0x5   : > { %s137_s26 = ssub.s32 %s1792_s21, %s1852_s24  ;;  %p150_p0 = scmp.ne.s32.totalorder %s1788_s20, %s1784_s19 }
   0x6   : > { %p138_p1 = scmp.eq.s32.totalorder %s137_s26, 0  ;;  %p151_p2 = scmp.eq.s32.totalorder %s1848_s22, 3 }
   0x7   : > { %p156_p3 = scmp.ne.s32.totalorder %s1784_s19, %s1780_s18  ;;  %p157_p4 = scmp.eq.s32.totalorder %s1242_s23, 3 }
   0x8   : > { %s1863_s27 = scalar_select %p138_p1, %s1788_s20, %s140_s25  }
   0x9   : > { %p1865_p5 = por %p151_p2, %p150_p0  ;;  %p1869_p6 = por %p157_p4, %p156_p3 }
   0xa   : > { %p1245_p7 = scmp.ge.s32.totalorder %s1792_s21, 1  ;;  %p202_p8 = scmp.lt.s32.totalorder %s1792_s21, 5 }
   0xc   : > { %p203_p9 = pnand %p1245_p7, %p202_p8 }
   0xd   : > { %v1682_v0 = vld [vmem:[%s2077_s1] sm:$0xff] (!%p203_p9)   ;;  %s1247_s7 = sshll.u32 (!%p203_p9), %s1848_s22, 5  ;;  %v1684_v2 = vld [vmem:[%s2077_s1 + $0x8] sm:$0xff] (!%p203_p9)   ;;  %v1686_v4 = vld [vmem:[%s2077_s1 + $0x10] sm:$0xff] (!%p203_p9)   ;;  %s232_s15 = sand.u32 (!%p203_p9), 1, %s1784_s19  }
   0xe   : > { %206 = sbr.rel (%p203_p9) target bundleno = 339 (0x153), region = 40  ;;  %v1683_v1 = vld [vmem:[%s2076_s0] sm:$0xff] (!%p203_p9)   ;;  %1513 = vmatprep.subr.bf16.mxu1 (!%p203_p9), %v1682_v0  ;;  %p236_p10 = scmp.lt.s32.totalorder (!%p203_p9), %s1247_s7, 127  ;;  %v1685_v3 = vld [vmem:[%s2076_s0 + $0x8] sm:$0xff] (!%p203_p9)   ;;  %v1687_v5 = vld [vmem:[%s2076_s0 + $0x10] sm:$0xff] (!%p203_p9)  }
   0xf   : > { %1561 = vmatprep.subr.bf16.mxu0 (!%p203_p9), %v1683_v1  ;;  %1514 = vmatpush3.bf16.msra.mxu1 (!%p203_p9), %v1682_v0  ;;  %v1688_v6 = vld [vmem:[%s2077_s1 + $0x18] sm:$0xff] (!%p203_p9)   ;;  %v1690_v8 = vld [vmem:[%s2077_s1 + $0x20] sm:$0xff] (!%p203_p9)   ;;  %v1692_v10 = vld [vmem:[%s2077_s1 + $0x28] sm:$0xff] (!%p203_p9)   ;;  %s1794_s9 = smov (!%p203_p9), [#allocation2]  }
  0x10   : > { %1562 = vmatpush3.bf16.msra.mxu0 (!%p203_p9), %v1683_v1  ;;  %1515 = vmatprep.subr.bf16.mxu1 (!%p203_p9), %v1684_v2  ;;  %v1689_v7 = vld [vmem:[%s2076_s0 + $0x18] sm:$0xff] (!%p203_p9)   ;;  %v1691_v9 = vld [vmem:[%s2076_s0 + $0x20] sm:$0xff] (!%p203_p9)   ;;  %v1693_v11 = vld [vmem:[%s2076_s0 + $0x28] sm:$0xff] (!%p203_p9)   ;;  %s1734_s10 = sshll.u32 (!%p203_p9), %s1794_s9, 4  ;;  %s1735_s10 = int_to_ptr.vmem [resolvable:$false] %s1734_s10 }
  0x11   : > { %1563 = vmatprep.subr.bf16.mxu0 (!%p203_p9), %v1685_v3  ;;  %v1694_v14 = vld [vmem:[%s2077_s1 + $0x30] sm:$0xff] (!%p203_p9)   ;;  %v1696_v16 = vld [vmem:[%s2077_s1 + $0x38] sm:$0xff] (!%p203_p9)   ;;  %v1970_v54 = vld [vmem:[%s2080_s4] ss:$0 sm:$0xff] (!%p203_p9)  ;;  %s1736_s11 = scalar_lea.vmem (!%p203_p9), %s1735_s10, 4096 }
  0x12   : > { %v1695_v15 = vld [vmem:[%s2076_s0 + $0x30] sm:$0xff] (!%p203_p9)   ;;  %v1697_v17 = vld [vmem:[%s2076_s0 + $0x38] sm:$0xff] (!%p203_p9)  }
  0x13   : > { %1516 = vmatpush3.bf16.msra.mxu1 (!%p203_p9), %v1684_v2 }
  0x14   : > { %1564 = vmatpush3.bf16.msra.mxu0 (!%p203_p9), %v1685_v3  ;;  %1517 = vmatprep.subr.bf16.mxu1 (!%p203_p9), %v1686_v4 }
  0x15   : > { %s2089_s7 = smov (!%p236_p10, %s1247_s7), 127  ;;  %1565 = vmatprep.subr.bf16.mxu0 %v1687_v5 }
  0x16   : > { %s1248_s6 = sshll.u32 %s2089_s7, 2 }
  0x17   : > { %1518 = vmatpush3.bf16.msra.mxu1 %v1686_v4  ;;  %s1909_s14 = scalar_lea.vmem %s2079_s3, %s1248_s6  ;;  %s1917_s23 = scalar_lea.vmem %s2078_s2, %s1248_s6 }
  0x18   : > { %1566 = vmatpush3.bf16.msra.mxu0 %v1687_v5  ;;  %1519 = vmatprep.subr.bf16.mxu1 %v1688_v6  ;;  %v1698_v12 = vld [vmem:[%s1909_s14] sm:$0xff]   ;;  %v1700_v18 = vld [vmem:[%s1909_s14 + $0x8] sm:$0xff]   ;;  %v1702_v20 = vld [vmem:[%s1909_s14 + $0x10] sm:$0xff]  }
  0x19   : > { %1567 = vmatprep.subr.bf16.mxu0 %v1689_v7  ;;  %v1699_v13 = vld [vmem:[%s1917_s23] sm:$0xff]   ;;  %1529 = vmatprep.mubr.bf16.mxu1 %v1698_v12  ;;  %v1701_v19 = vld [vmem:[%s1917_s23 + $0x8] sm:$0xff]   ;;  %v1703_v21 = vld [vmem:[%s1917_s23 + $0x10] sm:$0xff]  }
  0x1a   : > { %1577 = vmatprep.mubr.bf16.mxu0 %v1699_v13  ;;  %v1704_v22 = vld [vmem:[%s1909_s14 + $0x18] sm:$0xff]   ;;  %v1706_v24 = vld [vmem:[%s1909_s14 + $0x20] sm:$0xff]   ;;  %v1708_v26 = vld [vmem:[%s1909_s14 + $0x28] sm:$0xff]  }
  0x1b   : > { %1520 = vmatpush3.bf16.msra.mxu1 %v1688_v6  ;;  %v1705_v23 = vld [vmem:[%s1917_s23 + $0x18] sm:$0xff]   ;;  %v1707_v25 = vld [vmem:[%s1917_s23 + $0x20] sm:$0xff]   ;;  %v1709_v27 = vld [vmem:[%s1917_s23 + $0x28] sm:$0xff]  }
  0x1c   : > { %1568 = vmatpush3.bf16.msra.mxu0 %v1689_v7  ;;  %1521 = vmatprep.subr.bf16.mxu1 %v1690_v8  ;;  %v1710_v28 = vld [vmem:[%s1909_s14 + $0x30] sm:$0xff]   ;;  %v1712_v30 = vld [vmem:[%s1909_s14 + $0x38] sm:$0xff]   ;;  %v1714_v32 = vld [vmem:[%s1909_s14 + $0x40] sm:$0xff]  }
  0x1d   : > { %1569 = vmatprep.subr.bf16.mxu0 %v1691_v9  ;;  %v1711_v29 = vld [vmem:[%s1917_s23 + $0x30] sm:$0xff]   ;;  %v1713_v31 = vld [vmem:[%s1917_s23 + $0x38] sm:$0xff]   ;;  %v1715_v33 = vld [vmem:[%s1917_s23 + $0x40] sm:$0xff]  }
  0x1e   : > { %v1716_v34 = vld [vmem:[%s1909_s14 + $0x48] sm:$0xff]   ;;  %v1718_v36 = vld [vmem:[%s1909_s14 + $0x50] sm:$0xff]   ;;  %v1720_v38 = vld [vmem:[%s1909_s14 + $0x58] sm:$0xff]  }
  0x1f   : > { %1522 = vmatpush3.bf16.msra.mxu1 %v1690_v8  ;;  %v1717_v35 = vld [vmem:[%s1917_s23 + $0x48] sm:$0xff]   ;;  %v1719_v37 = vld [vmem:[%s1917_s23 + $0x50] sm:$0xff]   ;;  %v1721_v39 = vld [vmem:[%s1917_s23 + $0x58] sm:$0xff]  }
  0x20   : > { %1570 = vmatpush3.bf16.msra.mxu0 %v1691_v9  ;;  %1523 = vmatprep.subr.bf16.mxu1 %v1692_v10  ;;  %v1722_v40 = vld [vmem:[%s1909_s14 + $0x60] sm:$0xff]   ;;  %v1724_v42 = vld [vmem:[%s1909_s14 + $0x68] sm:$0xff]   ;;  %v1726_v44 = vld [vmem:[%s1909_s14 + $0x70] sm:$0xff]  }
  0x21   : > { %1571 = vmatprep.subr.bf16.mxu0 %v1693_v11  ;;  %v1723_v41 = vld [vmem:[%s1917_s23 + $0x60] sm:$0xff]   ;;  %v1725_v43 = vld [vmem:[%s1917_s23 + $0x68] sm:$0xff]   ;;  %v1727_v45 = vld [vmem:[%s1917_s23 + $0x70] sm:$0xff]  }
  0x22   : > { %v1728_v46 = vld [vmem:[%s1909_s14 + $0x78] sm:$0xff]   ;;  %s1246_s14 = sshll.u32 %s232_s15, 7 }
  0x23   : > { %1524 = vmatpush3.bf16.msra.mxu1 %v1692_v10  ;;  %v1729_v47 = vld [vmem:[%s1917_s23 + $0x78] sm:$0xff]   ;;  %s1978_s17 = scalar_lea.vmem [#allocation2], %s1246_s14  ;;  %s1369_s23 = sshll.u32 %s1848_s22, 11 }
  0x24   : > { %1572 = vmatpush3.bf16.msra.mxu0 %v1693_v11  ;;  %1525 = vmatprep.subr.bf16.mxu1 %v1694_v14  ;;  %s1168_s25 = sshll.u32 %s1978_s17, 4  ;;  %s2027_s6 = scalar_lea.hbm %s2081_s5, %s1369_s23  ;;  %s2029_s25 = int_to_ptr.vmem [resolvable:$true] %s1168_s25 }
  0x25   : > { %1573 = vmatprep.subr.bf16.mxu0 %v1695_v15  ;;  %s2035_s22 = scalar_lea.sflag [#allocation3], %s232_s15  ;;  %s1730_s8 = scalar_lea.vmem %s2029_s25, 2048 }
  0x26   : > { %p1731_p11 = scmp.ne.s32.totalorder %s2029_s25, %s1730_s8  ;;  %p1737_p0 = scmp.lt.s32.totalorder %s2029_s25, %s1735_s10 }
  0x27   : > { %1526 = vmatpush3.bf16.msra.mxu1 %v1694_v14  ;;  %p1738_p1 = scmp.lt.s32.totalorder %s1736_s11, %s1730_s8 }
  0x28   : > { %1574 = vmatpush3.bf16.msra.mxu0 %v1695_v15  ;;  %1527 = vmatprep.subr.bf16.mxu1 %v1696_v16  ;;  %p1732_p12 = pnand %p1731_p11, %p1865_p5 }
  0x29   : > { %1575 = vmatprep.subr.bf16.mxu0 %v1697_v17  ;;  %p1739_p2 = por %p1738_p1, %p1737_p0 }
  0x2a   : > { %p1733_p13 = pneg %p1732_p12 }
  0x2b   : > { %1528 = vmatpush3.bf16.msra.mxu1 %v1696_v16 }
  0x2c   : > { %1576 = vmatpush3.bf16.msra.mxu0 %v1697_v17  ;;  %p1740_p3 = pnand %p1739_p2, %p1733_p13 }
  0x2e   : > { %1530 = vmatmul.mubr.bf16.vlgmr.msra.gmra.mrb[0].mxu1 %v1700_v18 }
  0x2f   : > { %1578 = vmatmul.mubr.bf16.vlgmr.msra.gmra.mrb[0].mxu0 %v1701_v19  ;;  %1533 = vmatprep.mubr.bf16.mxu1 %v1702_v20 }
  0x30   : > { %1581 = vmatprep.mubr.bf16.mxu0 %v1703_v21 }
  0x36   : > { %1534 = vmatmul.mubr.bf16.gmra.mrb[4].mxu1 %v1704_v22 }
  0x37   : > { %1582 = vmatmul.mubr.bf16.gmra.mrb[4].mxu0 %v1705_v23  ;;  %1537 = vmatprep.mubr.bf16.mxu1 %v1706_v24 }
  0x38   : > { %1585 = vmatprep.mubr.bf16.mxu0 %v1707_v25 }
  0x3e   : > { %1538 = vmatmul.mubr.bf16.gmra.mrb[8].mxu1 %v1708_v26 }
  0x3f   : > { %1586 = vmatmul.mubr.bf16.gmra.mrb[8].mxu0 %v1709_v27  ;;  %1541 = vmatprep.mubr.bf16.mxu1 %v1710_v28 }
  0x40   : > { %1589 = vmatprep.mubr.bf16.mxu0 %v1711_v29 }
  0x46   : > { %1542 = vmatmul.mubr.bf16.gmra.mrb[12].mxu1 %v1712_v30 }
  0x47   : > { %1590 = vmatmul.mubr.bf16.gmra.mrb[12].mxu0 %v1713_v31  ;;  %1545 = vmatprep.mubr.bf16.mxu1 %v1714_v32 }
  0x48   : > { %1593 = vmatprep.mubr.bf16.mxu0 %v1715_v33 }
  0x4e   : > { %1546 = vmatmul.mubr.bf16.gmra.mrb[16].mxu1 %v1716_v34 }
  0x4f   : > { %1594 = vmatmul.mubr.bf16.gmra.mrb[16].mxu0 %v1717_v35  ;;  %1549 = vmatprep.mubr.bf16.mxu1 %v1718_v36 }
  0x50   : > { %1597 = vmatprep.mubr.bf16.mxu0 %v1719_v37 }
  0x56   : > { %1550 = vmatmul.mubr.bf16.gmra.mrb[20].mxu1 %v1720_v38 }
  0x57   : > { %1598 = vmatmul.mubr.bf16.gmra.mrb[20].mxu0 %v1721_v39  ;;  %1553 = vmatprep.mubr.bf16.mxu1 %v1722_v40 }
  0x58   : > { %1601 = vmatprep.mubr.bf16.mxu0 %v1723_v41 }
  0x5e   : > { %1554 = vmatmul.mubr.bf16.gmra.mrb[24].mxu1 %v1724_v42 }
  0x5f   : > { %1602 = vmatmul.mubr.bf16.gmra.mrb[24].mxu0 %v1725_v43  ;;  %1557 = vmatprep.mubr.bf16.mxu1 %v1726_v44 }
  0x60   : > { %1605 = vmatprep.mubr.bf16.mxu0 %v1727_v45 }
  0x66   : > { %1558 = vmatmul.mubr.bf16.gmra.mrb[28].mxu1 %v1728_v46 }
  0x67   : > { %1606 = vmatmul.mubr.bf16.gmra.mrb[28].mxu0 %v1729_v47 }
 0x101   : > { %v1531_v48 = vpop.f32.mrb[0].mxu1 }
 0x102   : > { %v1579_v49 = vpop.f32.mrb[0].mxu0  ;;  %v523_v50 = vpop.f32.mrb[1].mxu1 }
 0x103   : > { %v837_v51 = vadd.f32 %v1579_v49, %v1531_v48  ;;  %v828_v52 = vpop.f32.mrb[1].mxu0  ;;  %v1532_v53 = vpop.f32.mrb[2].mxu1 }
 0x104   : > { %v829_v55 = vadd.f32 %v828_v52, %v523_v50  ;;  %v1580_v56 = vpop.f32.mrb[2].mxu0  ;;  %v526_v57 = vpop.f32.mrb[3].mxu1 }
 0x105   : > { %v840_v58 = vadd.f32 %v1580_v56, %v1532_v53  ;;  %v831_v59 = vpop.f32.mrb[3].mxu0  ;;  %v964_v61 = vadd.f32 %v1970_v54, %v837_v51 }
 0x106   : > { %v832_v60 = vadd.f32 %v831_v59, %v526_v57  ;;  %v962_v63 = vadd.f32 %v1970_v54, %v829_v55 }
 0x107   : > { %v965_v62 = vadd.f32 %v1970_v54, %v840_v58 }
 0x108   : > { %v963_v0 = vadd.f32 %v1970_v54, %v832_v60 }
 0x109   : > { %v1378_v1 = vpack.c.bf16 %v965_v62, %v964_v61  ;;  %v1535_v2 = vpop.f32.mrb[4].mxu1 }
 0x10a   : > { %v1373_v3 = vpack.c.bf16 %v963_v0, %v962_v63  ;;  %v1583_v4 = vpop.f32.mrb[4].mxu0  ;;  %v539_v5 = vpop.f32.mrb[5].mxu1 }
 0x10b   : > { %1450 = vst [vmem:[%s1978_s17 + $0x8] sm:$0xff] %v1378_v1   ;;  %v853_v6 = vadd.f32 %v1583_v4, %v1535_v2  ;;  %v844_v7 = vpop.f32.mrb[5].mxu0  ;;  %v1536_v8 = vpop.f32.mrb[6].mxu1 }
 0x10c   : > { %1374 = vst [vmem:[%s1978_s17] sm:$0xff] %v1373_v3   ;;  %v845_v9 = vadd.f32 %v844_v7, %v539_v5  ;;  %v1584_v10 = vpop.f32.mrb[6].mxu0  ;;  %v542_v11 = vpop.f32.mrb[7].mxu1 }
 0x10d   : > { %v856_v12 = vadd.f32 %v1584_v10, %v1536_v8  ;;  %v847_v13 = vpop.f32.mrb[7].mxu0  ;;  %v968_v15 = vadd.f32 %v1970_v54, %v853_v6 }
 0x10e   : > { %v848_v14 = vadd.f32 %v847_v13, %v542_v11  ;;  %v966_v17 = vadd.f32 %v1970_v54, %v845_v9 }
 0x10f   : > { %v969_v16 = vadd.f32 %v1970_v54, %v856_v12 }
 0x110   : > { %v967_v18 = vadd.f32 %v1970_v54, %v848_v14 }
 0x111   : > { %v1388_v19 = vpack.c.bf16 %v969_v16, %v968_v15  ;;  %v1539_v20 = vpop.f32.mrb[8].mxu1 }
 0x112   : > { %v1383_v21 = vpack.c.bf16 %v967_v18, %v966_v17  ;;  %v1587_v22 = vpop.f32.mrb[8].mxu0  ;;  %v555_v23 = vpop.f32.mrb[9].mxu1 }
 0x113   : > { %1452 = vst [vmem:[%s1978_s17 + $0x18] sm:$0xff] %v1388_v19   ;;  %v869_v24 = vadd.f32 %v1587_v22, %v1539_v20  ;;  %v860_v25 = vpop.f32.mrb[9].mxu0  ;;  %v1540_v26 = vpop.f32.mrb[10].mxu1 }
 0x114   : > { %1451 = vst [vmem:[%s1978_s17 + $0x10] sm:$0xff] %v1383_v21   ;;  %v861_v27 = vadd.f32 %v860_v25, %v555_v23  ;;  %v1588_v28 = vpop.f32.mrb[10].mxu0  ;;  %v558_v29 = vpop.f32.mrb[11].mxu1 }
 0x115   : > { %v872_v30 = vadd.f32 %v1588_v28, %v1540_v26  ;;  %v863_v31 = vpop.f32.mrb[11].mxu0  ;;  %v972_v33 = vadd.f32 %v1970_v54, %v869_v24 }
 0x116   : > { %v864_v32 = vadd.f32 %v863_v31, %v558_v29  ;;  %v970_v35 = vadd.f32 %v1970_v54, %v861_v27 }
 0x117   : > { %v973_v34 = vadd.f32 %v1970_v54, %v872_v30 }
 0x118   : > { %v971_v36 = vadd.f32 %v1970_v54, %v864_v32 }
 0x119   : > { %v1398_v37 = vpack.c.bf16 %v973_v34, %v972_v33  ;;  %v1543_v38 = vpop.f32.mrb[12].mxu1 }
 0x11a   : > { %v1393_v39 = vpack.c.bf16 %v971_v36, %v970_v35  ;;  %v1591_v40 = vpop.f32.mrb[12].mxu0  ;;  %v571_v41 = vpop.f32.mrb[13].mxu1 }
 0x11b   : > { %1454 = vst [vmem:[%s1978_s17 + $0x28] sm:$0xff] %v1398_v37   ;;  %v885_v42 = vadd.f32 %v1591_v40, %v1543_v38  ;;  %v876_v43 = vpop.f32.mrb[13].mxu0  ;;  %v1544_v44 = vpop.f32.mrb[14].mxu1 }
 0x11c   : > { %1453 = vst [vmem:[%s1978_s17 + $0x20] sm:$0xff] %v1393_v39   ;;  %v877_v45 = vadd.f32 %v876_v43, %v571_v41  ;;  %v1592_v46 = vpop.f32.mrb[14].mxu0  ;;  %v574_v47 = vpop.f32.mrb[15].mxu1 }
 0x11d   : > { %v888_v48 = vadd.f32 %v1592_v46, %v1544_v44  ;;  %v879_v49 = vpop.f32.mrb[15].mxu0  ;;  %v976_v51 = vadd.f32 %v1970_v54, %v885_v42 }
 0x11e   : > { %v880_v50 = vadd.f32 %v879_v49, %v574_v47  ;;  %v974_v53 = vadd.f32 %v1970_v54, %v877_v45 }
 0x11f   : > { %v977_v52 = vadd.f32 %v1970_v54, %v888_v48 }
 0x120   : > { %v975_v55 = vadd.f32 %v1970_v54, %v880_v50 }
 0x121   : > { %v1408_v56 = vpack.c.bf16 %v977_v52, %v976_v51  ;;  %v1547_v57 = vpop.f32.mrb[16].mxu1 }
 0x122   : > { %v1403_v58 = vpack.c.bf16 %v975_v55, %v974_v53  ;;  %v1595_v59 = vpop.f32.mrb[16].mxu0  ;;  %v587_v60 = vpop.f32.mrb[17].mxu1 }
 0x123   : > { %1456 = vst [vmem:[%s1978_s17 + $0x38] sm:$0xff] %v1408_v56   ;;  %v901_v61 = vadd.f32 %v1595_v59, %v1547_v57  ;;  %v892_v62 = vpop.f32.mrb[17].mxu0  ;;  %v1548_v63 = vpop.f32.mrb[18].mxu1 }
 0x124   : > { %1455 = vst [vmem:[%s1978_s17 + $0x30] sm:$0xff] %v1403_v58   ;;  %v893_v0 = vadd.f32 %v892_v62, %v587_v60  ;;  %v1596_v1 = vpop.f32.mrb[18].mxu0  ;;  %v590_v2 = vpop.f32.mrb[19].mxu1 }
 0x125   : > { %v904_v3 = vadd.f32 %v1596_v1, %v1548_v63  ;;  %v895_v4 = vpop.f32.mrb[19].mxu0  ;;  %v980_v6 = vadd.f32 %v1970_v54, %v901_v61 }
 0x126   : > { %v896_v5 = vadd.f32 %v895_v4, %v590_v2  ;;  %v978_v8 = vadd.f32 %v1970_v54, %v893_v0 }
 0x127   : > { %v981_v7 = vadd.f32 %v1970_v54, %v904_v3 }
 0x128   : > { %v979_v9 = vadd.f32 %v1970_v54, %v896_v5 }
 0x129   : > { %v1418_v10 = vpack.c.bf16 %v981_v7, %v980_v6  ;;  %v1551_v11 = vpop.f32.mrb[20].mxu1 }
 0x12a   : > { %v1413_v12 = vpack.c.bf16 %v979_v9, %v978_v8  ;;  %v1599_v13 = vpop.f32.mrb[20].mxu0  ;;  %v603_v14 = vpop.f32.mrb[21].mxu1 }
 0x12b   : > { %1458 = vst [vmem:[%s1978_s17 + $0x48] sm:$0xff] %v1418_v10   ;;  %v917_v15 = vadd.f32 %v1599_v13, %v1551_v11  ;;  %v908_v16 = vpop.f32.mrb[21].mxu0  ;;  %v1552_v17 = vpop.f32.mrb[22].mxu1 }
 0x12c   : > { %1457 = vst [vmem:[%s1978_s17 + $0x40] sm:$0xff] %v1413_v12   ;;  %v909_v18 = vadd.f32 %v908_v16, %v603_v14  ;;  %v1600_v19 = vpop.f32.mrb[22].mxu0  ;;  %v606_v20 = vpop.f32.mrb[23].mxu1 }
 0x12d   : > { %v920_v21 = vadd.f32 %v1600_v19, %v1552_v17  ;;  %v911_v22 = vpop.f32.mrb[23].mxu0  ;;  %v984_v24 = vadd.f32 %v1970_v54, %v917_v15 }
 0x12e   : > { %v912_v23 = vadd.f32 %v911_v22, %v606_v20  ;;  %v982_v26 = vadd.f32 %v1970_v54, %v909_v18 }
 0x12f   : > { %v985_v25 = vadd.f32 %v1970_v54, %v920_v21 }
 0x130   : > { %v983_v27 = vadd.f32 %v1970_v54, %v912_v23 }
 0x131   : > { %v1428_v28 = vpack.c.bf16 %v985_v25, %v984_v24  ;;  %v1555_v29 = vpop.f32.mrb[24].mxu1 }
 0x132   : > { %v1423_v30 = vpack.c.bf16 %v983_v27, %v982_v26  ;;  %v1603_v31 = vpop.f32.mrb[24].mxu0  ;;  %v619_v32 = vpop.f32.mrb[25].mxu1 }
 0x133   : > { %1460 = vst [vmem:[%s1978_s17 + $0x58] sm:$0xff] %v1428_v28   ;;  %v933_v33 = vadd.f32 %v1603_v31, %v1555_v29  ;;  %v924_v34 = vpop.f32.mrb[25].mxu0  ;;  %v1556_v35 = vpop.f32.mrb[26].mxu1 }
 0x134   : > { %1459 = vst [vmem:[%s1978_s17 + $0x50] sm:$0xff] %v1423_v30   ;;  %v925_v36 = vadd.f32 %v924_v34, %v619_v32  ;;  %v1604_v37 = vpop.f32.mrb[26].mxu0  ;;  %v622_v38 = vpop.f32.mrb[27].mxu1 }
 0x135   : > { %v936_v39 = vadd.f32 %v1604_v37, %v1556_v35  ;;  %v927_v40 = vpop.f32.mrb[27].mxu0  ;;  %v988_v42 = vadd.f32 %v1970_v54, %v933_v33 }
 0x136   : > { %v928_v41 = vadd.f32 %v927_v40, %v622_v38  ;;  %v986_v44 = vadd.f32 %v1970_v54, %v925_v36 }
 0x137   : > { %v989_v43 = vadd.f32 %v1970_v54, %v936_v39 }
 0x138   : > { %v987_v45 = vadd.f32 %v1970_v54, %v928_v41 }
 0x139   : > { %v1438_v46 = vpack.c.bf16 %v989_v43, %v988_v42  ;;  %v1559_v47 = vpop.f32.mrb[28].mxu1 }
 0x13a   : > { %v1433_v48 = vpack.c.bf16 %v987_v45, %v986_v44  ;;  %v1607_v49 = vpop.f32.mrb[28].mxu0  ;;  %v635_v50 = vpop.f32.mrb[29].mxu1 }
 0x13b   : > { %1462 = vst [vmem:[%s1978_s17 + $0x68] sm:$0xff] %v1438_v46   ;;  %v949_v51 = vadd.f32 %v1607_v49, %v1559_v47  ;;  %v940_v52 = vpop.f32.mrb[29].mxu0  ;;  %v1560_v53 = vpop.f32.mrb[30].mxu1 }
 0x13c   : > { %1461 = vst [vmem:[%s1978_s17 + $0x60] sm:$0xff] %v1433_v48   ;;  %v941_v55 = vadd.f32 %v940_v52, %v635_v50  ;;  %v1608_v56 = vpop.f32.mrb[30].mxu0  ;;  %v638_v57 = vpop.f32.mrb[31].mxu1 }
 0x13d   : > { %v952_v58 = vadd.f32 %v1608_v56, %v1560_v53  ;;  %v943_v59 = vpop.f32.mrb[31].mxu0  ;;  %v992_v61 = vadd.f32 %v1970_v54, %v949_v51 }
 0x13e   : > { %v944_v60 = vadd.f32 %v943_v59, %v638_v57  ;;  %v990_v63 = vadd.f32 %v1970_v54, %v941_v55 }
 0x13f   : > { %v993_v62 = vadd.f32 %v1970_v54, %v952_v58 }
 0x140   : > { %v991_v0 = vadd.f32 %v1970_v54, %v944_v60 }
 0x141   : > { %v1448_v1 = vpack.c.bf16 %v993_v62, %v992_v61 }
 0x142   : > { %v1443_v2 = vpack.c.bf16 %v991_v0, %v990_v63 }
 0x143   : > { %1464 = vst [vmem:[%s1978_s17 + $0x78] sm:$0xff] %v1448_v1  }
 0x144   : > { %1463 = vst [vmem:[%s1978_s17 + $0x70] sm:$0xff] %v1443_v2  }
 0x145   : > { %1743 = shalt.err (!%p1740_p3)
}
 0x146   : > { %s1744_s12 = scalar_lea.hbm %s2027_s6, 2048  ;;  %s1748_s16 = scalar_lea.hbm %s2081_s5, 8192 }
 0x147   : > { %p1745_p4 = scmp.ne.s32.totalorder %s2027_s6, %s1744_s12  ;;  %p1749_p9 = scmp.lt.u32.totalorder %s2027_s6, %s2081_s5 }
 0x148   : > { %p1750_p10 = scmp.lt.u32.totalorder %s1748_s16, %s1744_s12  ;;  %p1752_p12 = scmp.lt.u32.totalorder %s1744_s12, %s2027_s6 }
 0x149   : > { %p1746_p7 = pnand %p1745_p4, %p1865_p5 }
 0x14a   : > { %p1751_p11 = por %p1750_p10, %p1749_p9 }
 0x14b   : > { %p1747_p8 = pneg %p1746_p7 }
 0x14c   : > { %p1753_p13 = por %p1752_p12, %p1751_p11 }
 0x14e   : > { %p1754_p0 = pnand %p1753_p13, %p1747_p8 }
 0x150   : > { %1757 = shalt.err (!%p1754_p0)
}
 0x151   : > { %s1795_s17 = smov 64   ;;  %s1796_s23 = smov 4  }
 0x152   : > { %1641 = dma.vmem_to_hbm [thread:$0]  (%p1865_p5), %s2029_s25, 2048, %s2027_s6, %s2035_s22, %s1795_s17, %s1795_s17, %s1796_s23  }
 0x153 PF: > { %p1647_p1 = scmp.ge.s32.totalorder %s1792_s21, 2  ;;  %s1183_s26 = sand.u32 1, %s1780_s18  }
 0x154   : > { %s1184_s30 = scalar_lea.sflag [#allocation3], %s1183_s26 }
 0x155   : > { %p1644_p2 = pnand %p1647_p1, %p1869_p6 }
 0x157   : > { %1775 = dma.done.wait (!%p1644_p2), %s1184_s30, 2048  }
 0x158   : > { %1777 = vsyncadd (!%p1644_p2), %s1184_s30, 4294965248  ;;  %p15_p3 = scmp.ge.s32.totalorder %s1852_s24, 6   ;;  %s2084_s18 = smov %s1784_s19 }
 0x159   : > { %s2085_s19 = smov %s1788_s20  ;;  %s2086_s20 = smov %s1863_s27 }
 0x15a   : > { %s2087_s21 = smov %s1852_s24  ;;  %17 = sbr.rel (!%p15_p3) target bundleno = 3 (0x3), region = 78 }
 0x161   :  { %1189 = vsyncpa [#allocation3], 1 }
 0x162   :  { %1191 = vsyncpa [#allocation3 + $0x1], 1 }

</bundles_post_ra>
